<compile_context>
chip_gen: v7x
topology: tpu7x:2x2x1
jax: 0.10.0
libtpu: 0.0.40
codegen_flags: <defaults>
</compile_context>

<pallas_src>
import math
from functools import partial

import jax
import jax.numpy as jnp
from jax import lax
from jax.experimental import pallas as pl
from jax.experimental.pallas import tpu as pltpu


_NEG_INF = -1e30  # finite "masked" value: exp underflows to exactly 0 in f32


# --------------------------------------------------------------------------
# Small helpers
# --------------------------------------------------------------------------
def _vmem_limit_bytes(default=48 << 20):
    """Generation-aware scoped-VMEM limit (~3/4 of physical, capped)."""
    try:
        cap = int(pltpu.get_tpu_info().vmem_capacity_bytes)
        return int(min(cap * 3 // 4, 96 << 20))
    except Exception:
        return default


def _pick_lane_chunk(total, target=512):
    """Chunk for a lane (last) axis: multiple of 128 dividing `total`, else full."""
    if total <= target:
        return total
    c = (min(target, total) // 128) * 128
    while c >= 128:
        if total % c == 0:
            return c
        c -= 128
    return total


def _pick_sublane_chunk(total, target=256):
    """Chunk for a sublane (2nd-last) axis: multiple of 8 dividing `total`."""
    if total <= target:
        return total
    c = (min(target, total) // 8) * 8
    while c >= 8:
        if total % c == 0:
            return c
        c -= 8
    return total


# --------------------------------------------------------------------------
# Kernel 1: sparsity statistic  M[q] = max_sampled(QK) - sum_sampled(QK)/L_K
# --------------------------------------------------------------------------
def _m_stat_kernel(cnt_ref, bias_ref, q_ref, kt_ref, m_ref, max_sc, sum_sc,
                   *, inv_lk):
    """Grid = (head, L_K chunk).  Running max/sum accumulators in VMEM scratch.

    cnt : (L_Q, TK)  sample multiplicity chunk (shared across heads)
    bias: (L_Q, TK)  0 where sampled, -1e30 elsewhere (precomputed)
    q   : (1, L_Q, D), kt: (1, D, TK)   (compute dtype; f32-accumulated dot)
    m   : (1, 1, L_Q) f32, lane-dense output (written at the last chunk)
    """
    kc = pl.program_id(1)

    @pl.when(kc == 0)
    def _():
        max_sc[...] = jnp.full_like(max_sc, _NEG_INF)
        sum_sc[...] = jnp.zeros_like(sum_sc)

    s = jnp.dot(q_ref[0], kt_ref[0],
                preferred_element_type=jnp.float32)          # (L_Q, TK) f32, MXU
    sum_sc[...] += jnp.sum(s * cnt_ref[...], axis=-1, keepdims=True)
    max_sc[...] = jnp.maximum(
        max_sc[...], jnp.max(s + bias_ref[...], axis=-1, keepdims=True))

    @pl.when(kc == pl.num_programs(1) - 1)
    def _():
        m = max_sc[...] - sum_sc[...] * inv_lk               # (L_Q, 1) f32
        m_ref[...] = m.reshape(1, 1, -1)                     # lane-dense store


def _batched_m_stat(cnt, bias, q_bh, kt_bh, kv_chunk, vmem_limit):
    BH, L_Q, D = q_bh.shape
    L_K = kt_bh.shape[2]
    TK = kv_chunk
    nk = L_K // TK
    kern = partial(_m_stat_kernel, inv_lk=1.0 / L_K)
    m = pl.pallas_call(
        kern,
        out_shape=jax.ShapeDtypeStruct((BH, 1, L_Q), jnp.float32),
        grid=(BH, nk),
        in_specs=[
            pl.BlockSpec((L_Q, TK), lambda h, kc: (0, kc)),      # cnt chunk
            pl.BlockSpec((L_Q, TK), lambda h, kc: (0, kc)),      # bias chunk
            pl.BlockSpec((1, L_Q, D), lambda h, kc: (h, 0, 0)),  # Q
            pl.BlockSpec((1, D, TK), lambda h, kc: (h, 0, kc)),  # K^T chunk
        ],
        out_specs=pl.BlockSpec((1, 1, L_Q), lambda h, kc: (h, 0, 0)),
        scratch_shapes=[pltpu.VMEM((L_Q, 1), jnp.float32),
                        pltpu.VMEM((L_Q, 1), jnp.float32)],
        compiler_params=pltpu.CompilerParams(
            dimension_semantics=("parallel", "arbitrary"),
            vmem_limit_bytes=vmem_limit),
    )(cnt, bias, q_bh, kt_bh)
    return m[:, 0, :]                                            # (BH, L_Q)


# --------------------------------------------------------------------------
# Kernel 2: blocked inclusive cumsum along the sequence axis
# --------------------------------------------------------------------------
def _cumsum_kernel(tri_ref, v_ref, o_ref, carry_ref):
    """Grid = (head, seq chunk).  tri: (C, C) lower-triangular ones (shared,
    constant index_map -> fetched once).  carry: (1, D) f32 running row sum."""
    c = pl.program_id(1)

    @pl.when(c == 0)
    def _():
        carry_ref[...] = jnp.zeros_like(carry_ref)

    part = jnp.dot(tri_ref[...], v_ref[0],
                   preferred_element_type=jnp.float32)       # (C, D) f32, MXU
    out = part + carry_ref[...]
    o_ref[0] = out.astype(o_ref.dtype)
    carry_ref[...] = out[-1:, :]                             # new running sum


def _batched_cumsum(v_bh, seq_chunk, vmem_limit):
    BH, L, D = v_bh.shape
    C = seq_chunk
    nc = L // C
    tri = jnp.tril(jnp.ones((C, C), jnp.float32)).astype(v_bh.dtype)
    return pl.pallas_call(
        _cumsum_kernel,
        out_shape=jax.ShapeDtypeStruct((BH, L, D), jnp.float32),
        grid=(BH, nc),
        in_specs=[
            pl.BlockSpec((C, C), lambda h, c: (0, 0)),           # shared tri
            pl.BlockSpec((1, C, D), lambda h, c: (h, c, 0)),
        ],
        out_specs=pl.BlockSpec((1, C, D), lambda h, c: (h, c, 0)),
        scratch_shapes=[pltpu.VMEM((1, D), jnp.float32)],
        compiler_params=pltpu.CompilerParams(
            dimension_semantics=("parallel", "arbitrary"),
            vmem_limit_bytes=vmem_limit),
    )(tri, v_bh)


# --------------------------------------------------------------------------
# Kernel 3: fused top-u scores + scale + ProbMask + softmax + attn@V
# --------------------------------------------------------------------------
def _topk_attn_kernel(pos_ref, q_ref, kt_ref, v_ref, o_ref,
                      *, scale, mask_flag, use_approx):
    """Grid = (head,).  pos: (1, 1, u) int32 query positions (lane-dense)."""
    s = jnp.dot(q_ref[0], kt_ref[0],
                preferred_element_type=jnp.float32) * scale  # (u, L_K) f32
    if mask_flag:
        u, l_k = s.shape
        key_pos = lax.broadcasted_iota(jnp.int32, (u, l_k), 1)
        q_pos = pos_ref[0].reshape(u, 1)                     # (1,u) -> (u,1)
        s = jnp.where(key_pos > q_pos, _NEG_INF, s)          # ProbMask (causal)
    m = jnp.max(s, axis=-1, keepdims=True)
    p = jnp.exp(s - m)
    denom = jnp.sum(p, axis=-1, keepdims=True)
    if use_approx:
        attn = p * pl.reciprocal(denom, approx=True)         # EUP divide
    else:
        attn = p / denom                                     # exact f32 path
    av = jnp.dot(attn.astype(v_ref.dtype), v_ref[0],
                 preferred_element_type=jnp.float32)         # (u, D)
    o_ref[0] = av.astype(o_ref.dtype)


def _batched_topk_attn(pos_bh, qr_bh, kt_bh, v_bh, *, scale, mask_flag,
                       use_approx, vmem_limit):
    BH, u, D = qr_bh.shape
    L_K = v_bh.shape[1]
    kern = partial(_topk_attn_kernel, scale=float(scale),
                   mask_flag=mask_flag, use_approx=use_approx)
    return pl.pallas_call(
        kern,
        out_shape=jax.ShapeDtypeStruct((BH, u, D), jnp.float32),
        grid=(BH,),
        in_specs=[
            pl.BlockSpec((1, 1, u), lambda h: (h, 0, 0)),        # positions
            pl.BlockSpec((1, u, D), lambda h: (h, 0, 0)),        # top-u Q rows
            pl.BlockSpec((1, D, L_K), lambda h: (h, 0, 0)),      # K^T
            pl.BlockSpec((1, L_K, D), lambda h: (h, 0, 0)),      # V
        ],
        out_specs=pl.BlockSpec((1, u, D), lambda h: (h, 0, 0)),
        compiler_params=pltpu.CompilerParams(
            dimension_semantics=("parallel",),
            vmem_limit_bytes=vmem_limit),
    )(pos_bh, qr_bh, kt_bh, v_bh)


# --------------------------------------------------------------------------
# ProbAttention forward
# --------------------------------------------------------------------------
def prob_attention(queries, keys, values, attn_mask=None, *, rng_key,
                   mask_flag=True, factor=5, scale=None,
                   output_attention=False, compute_dtype=jnp.bfloat16,
                   kv_chunk=None, seq_chunk=None):
    """queries/keys/values: (B, L, H, D).  Returns (context (B,H,L_Q,D) f32, attn)."""
    del attn_mask  # the causal ProbMask is rebuilt internally, as in the reference
    B, L_Q, H, D = queries.shape
    _, L_K, _, _ = keys.shape
    BH = B * H

    U_part = min(factor * int(math.ceil(math.log(L_K))), L_K)
    u = min(factor * int(math.ceil(math.log(L_Q))), L_Q)

    vmem_limit = _vmem_limit_bytes()
    if kv_chunk is None:
        kv_chunk = _pick_lane_chunk(L_K)
    assert L_K % kv_chunk == 0 and (kv_chunk % 128 == 0 or kv_chunk == L_K), \
        "kv_chunk must divide L_K and be a multiple of 128 (or the full L_K)"

    # (B,L,H,D) -> (B,H,L,D), cast ONCE to the compute dtype (bf16 default).
    q = jnp.transpose(queries, (0, 2, 1, 3)).astype(compute_dtype)
    k = jnp.transpose(keys, (0, 2, 1, 3)).astype(compute_dtype)
    v = jnp.transpose(values, (0, 2, 1, 3)).astype(compute_dtype)
    q_bh = q.reshape(BH, L_Q, D)
    k_bh = k.reshape(BH, L_K, D)
    v_bh = v.reshape(BH, L_K, D)
    kt_bh = jnp.transpose(k_bh, (0, 2, 1))                   # (BH, D, L_K)

    # ---- _prob_QK: shared key samples -> sparsity statistic M -> top-u ----
    index_sample = jax.random.randint(rng_key, (L_Q, U_part), 0, L_K)
    cnt_f = jnp.zeros((L_Q, L_K), jnp.float32).at[
        jnp.arange(L_Q)[:, None], index_sample].add(1.0)
    cnt = cnt_f.astype(compute_dtype)                        # sample multiplicity
    bias = jnp.where(cnt_f > 0.0, 0.0, _NEG_INF).astype(compute_dtype)

    M = _batched_m_stat(cnt, bias, q_bh, kt_bh, kv_chunk, vmem_limit)
    M = M.reshape(B, H, L_Q)                                 # f32 statistic
    _, M_top = lax.top_k(M, u)                               # (B, H, u) int32

    q_reduce = jnp.take_along_axis(q, M_top[..., None], axis=2)   # (B,H,u,D)
    qr_bh = q_reduce.reshape(BH, u, D)
    pos_bh = M_top.reshape(BH, 1, u).astype(jnp.int32)       # lane-dense positions

    sc = scale if scale is not None else 1.0 / math.sqrt(D)

    # ---- initial context ----
    if mask_flag:
        assert L_Q == L_K, "causal ProbAttention requires L_Q == L_K"
        if seq_chunk is None:
            seq_chunk = _pick_sublane_chunk(L_Q)
        assert L_Q % seq_chunk == 0 and (seq_chunk % 8 == 0 or seq_chunk == L_Q)
        context = _batched_cumsum(v_bh, seq_chunk, vmem_limit).reshape(B, H, L_Q, D)
    else:
        v_mean = jnp.mean(v_bh.astype(jnp.float32), axis=-2, keepdims=True)
        context = jnp.broadcast_to(v_mean, (BH, L_Q, D)).reshape(B, H, L_Q, D)

    # ---- fused top-u scores / ProbMask / softmax / attn@V ----
    use_approx = jnp.dtype(compute_dtype) != jnp.dtype(jnp.float32)
    ctx_new = _batched_topk_attn(
        pos_bh, qr_bh, kt_bh, v_bh, scale=sc, mask_flag=mask_flag,
        use_approx=bool(use_approx), vmem_limit=vmem_limit,
    ).reshape(B, H, u, D)

    b_idx = jnp.arange(B)[:, None, None]
    h_idx = jnp.arange(H)[None, :, None]
    context = context.at[b_idx, h_idx, M_top, :].set(ctx_new.astype(context.dtype))

    if output_attention:
        # Debug path (rare): recompute the (u, L_K) probabilities in plain JAX.
        # TODO(synk): the scattered attention map is only well defined when
        #             L_Q == L_K (same caveat as the PyTorch reference).
        s_dbg = jnp.einsum("bhud,bhkd->bhuk",
                           q_reduce.astype(jnp.float32),
                           k_bh.reshape(B, H, L_K, D).astype(jnp.float32)) * sc
        if mask_flag:
            key_pos = jnp.arange(L_K)[None, None, None, :]
            s_dbg = jnp.where(key_pos > M_top[..., None], -jnp.inf, s_dbg)
        attn_dbg = jax.nn.softmax(s_dbg, axis=-1)
        attns = jnp.full((B, H, L_K, L_K), 1.0 / L_K, dtype=jnp.float32)
        attns = attns.at[b_idx, h_idx, M_top, :].set(attn_dbg)
        return context, attns
    return context, None


# --------------------------------------------------------------------------
# Pure-JAX reference (PyTorch semantics) for the sanity check
# --------------------------------------------------------------------------
def _reference(queries, keys, values, rng_key, factor=5,
               compute_dtype=jnp.float32, mask_flag=True):
    B, L_Q, H, D = queries.shape
    _, L_K, _, _ = keys.shape
    q = jnp.transpose(queries, (0, 2, 1, 3)).astype(compute_dtype)
    k = jnp.transpose(keys, (0, 2, 1, 3)).astype(compute_dtype)
    v = jnp.transpose(values, (0, 2, 1, 3)).astype(compute_dtype)
    U_part = min(factor * int(math.ceil(math.log(L_K))), L_K)
    u = min(factor * int(math.ceil(math.log(L_Q))), L_Q)
    S = jnp.einsum("bhqd,bhkd->bhqk", q, k, precision="highest",
                   preferred_element_type=jnp.float32)
    index_sample = jax.random.randint(rng_key, (L_Q, U_part), 0, L_K)
    Qs = jnp.take_along_axis(
        S, jnp.broadcast_to(index_sample[None, None], (B, H, L_Q, U_part)), axis=3)
    M = jnp.max(Qs, -1) - jnp.sum(Qs, -1) / L_K
    _, M_top = lax.top_k(M, u)
    scores = jnp.take_along_axis(S, M_top[..., None], axis=2) / math.sqrt(D)
    if mask_flag:
        mask = jnp.arange(L_K)[None, None, None, :] > M_top[..., None]
        scores = jnp.where(mask, -jnp.inf, scores)
    attn = jax.nn.softmax(scores, axis=-1)
    if mask_flag:
        ctx = jnp.cumsum(v.astype(jnp.float32), axis=-2)
    else:
        vm = jnp.mean(v.astype(jnp.float32), axis=-2, keepdims=True)
        ctx = jnp.broadcast_to(vm, (B, H, L_Q, D))
    new = jnp.einsum("bhuk,bhkd->bhud", attn.astype(compute_dtype), v,
                     precision="highest", preferred_element_type=jnp.float32)
    b_idx = jnp.arange(B)[:, None, None]
    h_idx = jnp.arange(H)[None, :, None]
    return ctx.at[b_idx, h_idx, M_top, :].set(new)


def _check_rows(name, out, ref, atol, rtol, max_bad_rows):
    """Row-level comparison tolerant to top-k boundary ties.

    Near-ties in the M statistic can swap the boundary query under differing
    FP summation order (kernel vs reference) -- inherent to the algorithm; a
    flip changes at most 2 rows per head, while a real bug breaks ~u rows/head.
    """
    assert out.shape == ref.shape, f"{name}: shape {out.shape} vs {ref.shape}"
    assert bool(jnp.all(jnp.isfinite(out))), f"{name}: non-finite output"
    ok = jnp.isclose(out.astype(jnp.float32), ref.astype(jnp.float32),
                     atol=atol, rtol=rtol)
    bad_rows = int(jnp.sum(~jnp.all(ok, axis=-1)))
    assert bad_rows <= max_bad_rows, f"{name}: {bad_rows} mismatching rows"


if __name__ == "__main__":
    B, L, H, D = 2, 256, 4, 32          # L_Q == L_K (mask_flag=True requires it)
    root = jax.random.PRNGKey(0)
    kq, kk, kv, ks = jax.random.split(root, 4)
    queries = jax.random.normal(kq, (B, L, H, D), dtype=jnp.float32)
    keys = jax.random.normal(kk, (B, L, H, D), dtype=jnp.float32)
    values = jax.random.normal(kv, (B, L, H, D), dtype=jnp.float32)

    max_bad = 2 * B * H  # allow one top-k boundary flip per head (see _check_rows)

    # ---- strict f32 path vs f32 reference (multi-chunk K axis + cumsum carry) ----
    ref32 = jax.block_until_ready(
        _reference(queries, keys, values, ks, factor=5,
                   compute_dtype=jnp.float32, mask_flag=True))
    ctx32, _ = prob_attention(queries, keys, values, None, rng_key=ks,
                              mask_flag=True, factor=5,
                              compute_dtype=jnp.float32,
                              kv_chunk=128, seq_chunk=128)
    ctx32 = jax.block_until_ready(ctx32)
    assert ctx32.shape == (B, H, L, D)
    _check_rows("f32 causal", ctx32, ref32, atol=5e-3, rtol=5e-3,
                max_bad_rows=max_bad)

    # ---- default bf16 path vs bf16-semantics reference ----
    ref16 = jax.block_until_ready(
        _reference(queries, keys, values, ks, factor=5,
                   compute_dtype=jnp.bfloat16, mask_flag=True))
    ctx16, _ = prob_attention(queries, keys, values, None, rng_key=ks,
                              mask_flag=True, factor=5,
                              kv_chunk=128, seq_chunk=128)
    ctx16 = jax.block_until_ready(ctx16)
    assert ctx16.shape == (B, H, L, D)
    _check_rows("bf16 causal", ctx16, ref16, atol=3e-2, rtol=3e-2,
                max_bad_rows=max_bad)

    # ---- non-causal (mask_flag=False) path, f32 ----
    ref_nc = jax.block_until_ready(
        _reference(queries, keys, values, ks, factor=5,
                   compute_dtype=jnp.float32, mask_flag=False))
    ctx_nc, _ = prob_attention(queries, keys, values, None, rng_key=ks,
                               mask_flag=False, factor=5,
                               compute_dtype=jnp.float32, kv_chunk=128)
    ctx_nc = jax.block_until_ready(ctx_nc)
    assert ctx_nc.shape == (B, H, L, D)
    _check_rows("f32 non-causal", ctx_nc, ref_nc, atol=5e-3, rtol=5e-3,
                max_bad_rows=max_bad)

    print("KERNEL_OK")
</pallas_src>

<mosaic_0001>
module attributes {stable_mosaic.version = 11 : i64} {
  func.func @_m_stat_kernel(%arg0: i32, %arg1: i32, %arg2: memref<256x128xf32, #tpu.memory_space<vmem>>, %arg3: memref<256x128xf32, #tpu.memory_space<vmem>>, %arg4: memref<1x256x32xf32, #tpu.memory_space<vmem>>, %arg5: memref<1x32x128xf32, #tpu.memory_space<vmem>>, %arg6: memref<1x1x256xf32, #tpu.memory_space<vmem>>, %arg7: memref<256x1xf32, #tpu.memory_space<vmem>>, %arg8: memref<256x1xf32, #tpu.memory_space<vmem>>) attributes {dimension_semantics = [#tpu.dimension_semantics<parallel>, #tpu.dimension_semantics<arbitrary>], iteration_bounds = array<i64: 8, 2>, scalar_prefetch = 0 : i64, scratch_operands = 2 : i64, tpu.core_type = #tpu.core_type<tc>, window_params = [{transform_indices = @transform_0, window_bounds = array<i64: 256, 128>}, {transform_indices = @transform_1, window_bounds = array<i64: 256, 128>}, {transform_indices = @transform_2, window_bounds = array<i64: 1, 256, 32>}, {transform_indices = @transform_3, window_bounds = array<i64: 1, 32, 128>}, {transform_indices = @transform_4, window_bounds = array<i64: 1, 1, 256>}]} {
    %c0_i32 = arith.constant 0 : i32
    %0 = arith.cmpi eq, %arg1, %c0_i32 : i32
    %1 = arith.extui %0 : i1 to i32
    %c0_i32_0 = arith.constant 0 : i32
    %2 = arith.cmpi ne, %1, %c0_i32_0 : i32
    scf.if %2 {
      %cst_21 = arith.constant -1.000000e+30 : f32
      %25 = vector.broadcast %cst_21 : f32 to vector<256x1xf32>
      %c0_22 = arith.constant 0 : index
      %c0_23 = arith.constant 0 : index
      %26 = vector.load %arg7[%c0_22, %c0_23] : memref<256x1xf32, #tpu.memory_space<vmem>>, vector<256x1xf32>
      tpu.vector_store %arg7[%c0_22, %c0_23], %25 {strides = array<i32>} : memref<256x1xf32, #tpu.memory_space<vmem>>, vector<256x1xf32>,
      %cst_24 = arith.constant 0.000000e+00 : f32
      %27 = vector.broadcast %cst_24 : f32 to vector<256x1xf32>
      %c0_25 = arith.constant 0 : index
      %c0_26 = arith.constant 0 : index
      %28 = vector.load %arg8[%c0_25, %c0_26] : memref<256x1xf32, #tpu.memory_space<vmem>>, vector<256x1xf32>
      tpu.vector_store %arg8[%c0_25, %c0_26], %27 {strides = array<i32>} : memref<256x1xf32, #tpu.memory_space<vmem>>, vector<256x1xf32>,
    } else {
    }
    %c0 = arith.constant 0 : index
    %c0_1 = arith.constant 0 : index
    %c0_2 = arith.constant 0 : index
    %3 = vector.load %arg4[%c0, %c0_1, %c0_2] : memref<1x256x32xf32, #tpu.memory_space<vmem>>, vector<1x256x32xf32>
    %4 = vector.shape_cast %3 : vector<1x256x32xf32> to vector<256x32xf32>
    %c0_3 = arith.constant 0 : index
    %c0_4 = arith.constant 0 : index
    %c0_5 = arith.constant 0 : index
    %5 = vector.load %arg5[%c0_3, %c0_4, %c0_5] : memref<1x32x128xf32, #tpu.memory_space<vmem>>, vector<1x32x128xf32>
    %6 = vector.shape_cast %5 : vector<1x32x128xf32> to vector<32x128xf32>
    %cst = arith.constant dense<0.000000e+00> : vector<256x128xf32>
    %7 = tpu.matmul %4, %6, %cst {dimension_numbers = #tpu.dot_dimension_numbers<[1], [0], [0], [1], [0, 0, 1, 1], [], []>} : vector<256x32xf32>, vector<32x128xf32>, vector<256x128xf32> -> vector<256x128xf32>
    %c0_6 = arith.constant 0 : index
    %c0_7 = arith.constant 0 : index
    %8 = vector.load %arg8[%c0_6, %c0_7] : memref<256x1xf32, #tpu.memory_space<vmem>>, vector<256x1xf32>
    %c0_8 = arith.constant 0 : index
    %c0_9 = arith.constant 0 : index
    %9 = vector.load %arg2[%c0_8, %c0_9] : memref<256x128xf32, #tpu.memory_space<vmem>>, vector<256x128xf32>
    %10 = arith.mulf %7, %9 : vector<256x128xf32>
    %cst_10 = arith.constant dense<0.000000e+00> : vector<256xf32>
    %11 = vector.multi_reduction <add>, %10, %cst_10 [1] : vector<256x128xf32> to vector<256xf32>
    %12 = vector.shape_cast %11 : vector<256xf32> to vector<256x1xf32>
    %13 = arith.addf %8, %12 : vector<256x1xf32>
    %c0_11 = arith.constant 0 : index
    %c0_12 = arith.constant 0 : index
    %14 = vector.load %arg8[%c0_11, %c0_12] : memref<256x1xf32, #tpu.memory_space<vmem>>, vector<256x1xf32>
    tpu.vector_store %arg8[%c0_11, %c0_12], %13 {strides = array<i32>} : memref<256x1xf32, #tpu.memory_space<vmem>>, vector<256x1xf32>,
    %c0_13 = arith.constant 0 : index
    %c0_14 = arith.constant 0 : index
    %15 = vector.load %arg7[%c0_13, %c0_14] : memref<256x1xf32, #tpu.memory_space<vmem>>, vector<256x1xf32>
    %c0_15 = arith.constant 0 : index
    %c0_16 = arith.constant 0 : index
    %16 = vector.load %arg3[%c0_15, %c0_16] : memref<256x128xf32, #tpu.memory_space<vmem>>, vector<256x128xf32>
    %17 = arith.addf %7, %16 : vector<256x128xf32>
    %cst_17 = arith.constant dense<0xFF800000> : vector<256xf32>
    %18 = vector.multi_reduction <maximumf>, %17, %cst_17 [1] : vector<256x128xf32> to vector<256xf32>
    %19 = vector.shape_cast %18 : vector<256xf32> to vector<256x1xf32>
    %20 = arith.maximumf %15, %19 : vector<256x1xf32>
    %c0_18 = arith.constant 0 : index
    %c0_19 = arith.constant 0 : index
    %21 = vector.load %arg7[%c0_18, %c0_19] : memref<256x1xf32, #tpu.memory_space<vmem>>, vector<256x1xf32>
    tpu.vector_store %arg7[%c0_18, %c0_19], %20 {strides = array<i32>} : memref<256x1xf32, #tpu.memory_space<vmem>>, vector<256x1xf32>,
    %c1_i32 = arith.constant 1 : i32
    %22 = arith.cmpi eq, %arg1, %c1_i32 : i32
    %23 = arith.extui %22 : i1 to i32
    %c0_i32_20 = arith.constant 0 : i32
    %24 = arith.cmpi ne, %23, %c0_i32_20 : i32
    scf.if %24 {
      %c0_21 = arith.constant 0 : index
      %c0_22 = arith.constant 0 : index
      %25 = vector.load %arg7[%c0_21, %c0_22] : memref<256x1xf32, #tpu.memory_space<vmem>>, vector<256x1xf32>
      %c0_23 = arith.constant 0 : index
      %c0_24 = arith.constant 0 : index
      %26 = vector.load %arg8[%c0_23, %c0_24] : memref<256x1xf32, #tpu.memory_space<vmem>>, vector<256x1xf32>
      %cst_25 = arith.constant 3.906250e-03 : f32
      %27 = vector.broadcast %cst_25 : f32 to vector<256x1xf32>
      %28 = arith.mulf %26, %27 : vector<256x1xf32>
      %29 = arith.subf %25, %28 : vector<256x1xf32>
      %30 = vector.shape_cast %29 : vector<256x1xf32> to vector<1x1x256xf32>
      %c0_26 = arith.constant 0 : index
      %c0_27 = arith.constant 0 : index
      %c0_28 = arith.constant 0 : index
      %31 = vector.load %arg6[%c0_26, %c0_27, %c0_28] : memref<1x1x256xf32, #tpu.memory_space<vmem>>, vector<1x1x256xf32>
      tpu.vector_store %arg6[%c0_26, %c0_27, %c0_28], %30 {strides = array<i32>} : memref<1x1x256xf32, #tpu.memory_space<vmem>>, vector<1x1x256xf32>,
    } else {
    }
    return
  }
  func.func @transform_0(%arg0: i32, %arg1: i32) -> (i32, i32) {
    %c0_i32 = arith.constant 0 : i32
    %c0_i32_0 = arith.constant 0 : i32
    return %c0_i32, %arg1 : i32, i32
  }
  func.func @transform_1(%arg0: i32, %arg1: i32) -> (i32, i32) {
    %c0_i32 = arith.constant 0 : i32
    %c0_i32_0 = arith.constant 0 : i32
    return %c0_i32, %arg1 : i32, i32
  }
  func.func @transform_2(%arg0: i32, %arg1: i32) -> (i32, i32, i32) {
    %c0_i32 = arith.constant 0 : i32
    %c0_i32_0 = arith.constant 0 : i32
    %c0_i32_1 = arith.constant 0 : i32
    return %arg0, %c0_i32, %c0_i32_0 : i32, i32, i32
  }
  func.func @transform_3(%arg0: i32, %arg1: i32) -> (i32, i32, i32) {
    %c0_i32 = arith.constant 0 : i32
    %c0_i32_0 = arith.constant 0 : i32
    return %arg0, %c0_i32, %arg1 : i32, i32, i32
  }
  func.func @transform_4(%arg0: i32, %arg1: i32) -> (i32, i32, i32) {
    %c0_i32 = arith.constant 0 : i32
    %c0_i32_0 = arith.constant 0 : i32
    %c0_i32_1 = arith.constant 0 : i32
    return %arg0, %c0_i32, %c0_i32_0 : i32, i32, i32
  }
}

</mosaic_0001>

<bundles_post_ra>
// kernel: tpu_custom_call.1
= control target key start
LH: loop header
LB: loop body
LE: loop exit
PB: predicated region body
PF: predicated region fallthrough
CT: control target
= control target key end

     0   :  { %s6988_s0 = inlined_call_operand.vmem [shape: f32[256,256], index: 0, kind: input, shape index: {}]   ;;  %s6989_s1 = inlined_call_operand.vmem [shape: f32[256,256], index: 1, kind: input, shape index: {}]   ;;  %s6990_s2 = inlined_call_operand.vmem [shape: f32[8,256,32], index: 2, kind: input, shape index: {}]   ;;  %s6991_s3 = inlined_call_operand.vmem [shape: f32[8,32,256], index: 3, kind: input, shape index: {}]   ;;  %s6992_s4 = inlined_call_operand.hbm [shape: f32[8,1,256], index: 4, kind: output, shape index: {}]  }
   0x1   :  { %6996 = sst [smem:[#allocation13_spill]] %s6988_s0 }
   0x2   :  { %6997 = sst [smem:[#allocation14_spill]] %s6989_s1 }
   0x3   :  { %6998 = sst [smem:[#allocation15_spill]] %s6991_s3 }
   0x4   :  { %9 = vsyncpa [#allocation8], 0 }
   0x5   :  { %11 = vsyncpa [#allocation8 + $0x1], 0  ;;  %s5752_s15 = smov 0   ;;  %s5754_s16 = smov 0  }
   0x6   :  { %s5756_s17 = smov 0   ;;  %s5758_s18 = smov 0  }
   0x7   :  { %s5760_s19 = smov 0   ;;  %s5762_s20 = smov 0  }
   0x8   :  { %s5764_s21 = smov 0   ;;  %s5766_s22 = smov 0  }
   0x9   :  { %s5768_s23 = smov 0   ;;  %s5770_s24 = smov 0  }
   0xa   :  { %s5772_s25 = smov 0   ;;  %s5774_s26 = smov 0  }
   0xb LB: > { %6999 = sst [smem:[#allocation10_spill]] %s5716_s25  ;;  %s5258_s27 = sadd.s32 4294967295, %s5720_s26   ;;  %s5720_s26 = sphi %s5774_s26, %s17_s26   ;;  %s5716_s25 = sphi %s5772_s25, %s7011_s25   ;;  %s5712_s24 = sphi %s5770_s24, %s7020_s24   ;;  %s5708_s23 = sphi %s5768_s23, %s7009_s23   ;;  %s5704_s22 = sphi %s5766_s22, %s7019_s22   ;;  %s5700_s21 = sphi %s5764_s21, %s7018_s21   ;;  %s5696_s20 = sphi %s5762_s20, %s7017_s20   ;;  %s5692_s19 = sphi %s5760_s19, %s7016_s19   ;;  %s5688_s18 = sphi %s5758_s18, %s7015_s18   ;;  %s5684_s17 = sphi %s5756_s17, %s7014_s17   ;;  %s5680_s16 = sphi %s5754_s16, %s7013_s16   ;;  %s5676_s15 = sphi %s5752_s15, %s7012_s15  }
   0xc   : > { %s5259_s28 = sadd.s32 4294967294, %s5720_s26   ;;  %s26_s29 = sadd.s32 1, %s5712_s24 }
   0xd   : > { %s29_s30 = sadd.s32 1, %s5716_s25  ;;  %p27_p0 = scmp.ge.s32.totalorder %s26_s29, 2 }
   0xe   : > { %s36_s5 = sadd.s32 1, %s5700_s21  ;;  %p43_p1 = scmp.ne.s32.totalorder %s5700_s21, %s5696_s20 }
   0xf   : > { %p44_p2 = scmp.eq.s32.totalorder %s5720_s26, 0  ;;  %s7022_s29 = smov (%p27_p0, %s26_s29), 0 }
  0x10   : > { %7000 = sst [smem:[#allocation11_spill]] %s7022_s29  ;;  %s7024_s30 = smov (!%p27_p0, %s29_s30), %s5716_s25 }
  0x11   : > { %s33_s6 = ssub.s32 %s5712_s24, %s7022_s29  ;;  %p5825_p3 = por %p44_p2, %p43_p1 }
  0x12   : > { %p31_p4 = scmp.ge.s32.totalorder %s7024_s30, 8  ;;  %p34_p5 = scmp.eq.s32.totalorder %s33_s6, 0 }
  0x13   : > { %s116_s8 = sadd.s32 1, %s5692_s19  ;;  %p123_p6 = scmp.ne.s32.totalorder %s5692_s19, %s5688_s18 }
  0x14   : > { %s7026_s30 = smov (%p31_p4, %s7024_s30), 0  ;;  %s142_s13 = sadd.s32 1, %s5684_s17 }
  0x15   : > { %7002 = sst [smem:[#allocation12_spill]] %s7026_s30  ;;  %s111_s10 = ssub.s32 %s5716_s25, %s7026_s30 }
  0x16   : > { %s5835_s9 = scalar_select %p34_p5, %s5700_s21, %s36_s5  }
  0x17   : > { %p5839_p7 = por %p123_p6, %p44_p2  ;;  %s113_s12 = sor.u32 %s111_s10, %s33_s6 }
  0x18   : > { %p140_p8 = scmp.eq.s32.totalorder %s111_s10, 0  ;;  %p114_p9 = scmp.eq.s32.totalorder %s113_s12, 0 }
  0x19   : > { %p152_p10 = scmp.ne.s32.totalorder %s5684_s17, %s5680_s16  ;;  %p153_p11 = scmp.eq.s32.totalorder %s5258_s27, 15 }
  0x1a   : > { %s5845_s14 = scalar_select %p140_p8, %s5684_s17, %s142_s13  }
  0x1b   : > { %s5848_s29 = scalar_select %p114_p9, %s5692_s19, %s116_s8  }
  0x1c   : > { %p158_p12 = scmp.ne.s32.totalorder %s5680_s16, %s5676_s15  ;;  %p159_p13 = scmp.eq.s32.totalorder %s5259_s28, 15 }
  0x1d   : > { %p5854_p0 = por %p153_p11, %p152_p10  ;;  %p5261_p2 = scmp.ge.s32.totalorder %s5720_s26, 16 }
  0x1e   : > { %p5858_p1 = por %p159_p13, %p158_p12 }
  0x1f   : > { %175 = sbr.rel (%p5261_p2) target bundleno = 102 (0x66), region = 16 }
  0x26   : > { %178 = sbr.rel (!%p5825_p3) target bundleno = 64 (0x40), region = 20  ;;  %s180_s6 = sand.u32 (%p5825_p3), 1, %s5700_s21  }
  0x27   : > { %s5263_s27 = sshll.u32 (%p5825_p3), %s5712_s24, 3  ;;  %s5262_s8 = sshll.u32 (%p5825_p3), %s180_s6, 8 }
  0x28   : > { %s7006_s0 = sld [smem:[#allocation13_spill]] (%p5825_p3)  ;;  %s5875_s13 = scalar_lea.vmem (%p5825_p3), [#allocation4], %s5262_s8 }
  0x2e   : > { %s5870_s12 = scalar_lea.vmem %s7006_s0, %s5263_s27 }
  0x2f   : > { %v274_v0 = vld [vmem:[%s5870_s12] sm:$0xff]  ;;  %v276_v1 = vld [vmem:[%s5870_s12 + $0x10] sm:$0xff] }
  0x30   : > { %v278_v2 = vld [vmem:[%s5870_s12 + $0x20] sm:$0xff]  ;;  %275 = vst [vmem:[%s5875_s13] sm:$0xff] %v274_v0  ;;  %277 = vst [vmem:[%s5875_s13 + $0x8] sm:$0xff] %v276_v1  ;;  %v280_v3 = vld [vmem:[%s5870_s12 + $0x30] sm:$0xff] }
  0x31   : > { %279 = vst [vmem:[%s5875_s13 + $0x10] sm:$0xff] %v278_v2  ;;  %v282_v4 = vld [vmem:[%s5870_s12 + $0x40] sm:$0xff]  ;;  %v284_v5 = vld [vmem:[%s5870_s12 + $0x50] sm:$0xff]  ;;  %281 = vst [vmem:[%s5875_s13 + $0x18] sm:$0xff] %v280_v3 }
  0x32   : > { %283 = vst [vmem:[%s5875_s13 + $0x20] sm:$0xff] %v282_v4  ;;  %285 = vst [vmem:[%s5875_s13 + $0x28] sm:$0xff] %v284_v5  ;;  %v286_v6 = vld [vmem:[%s5870_s12 + $0x60] sm:$0xff]  ;;  %v288_v7 = vld [vmem:[%s5870_s12 + $0x70] sm:$0xff] }
  0x33   : > { %v290_v8 = vld [vmem:[%s5870_s12 + $0x80] sm:$0xff]  ;;  %287 = vst [vmem:[%s5875_s13 + $0x30] sm:$0xff] %v286_v6  ;;  %289 = vst [vmem:[%s5875_s13 + $0x38] sm:$0xff] %v288_v7  ;;  %v292_v9 = vld [vmem:[%s5870_s12 + $0x90] sm:$0xff] }
  0x34   : > { %291 = vst [vmem:[%s5875_s13 + $0x40] sm:$0xff] %v290_v8  ;;  %v294_v10 = vld [vmem:[%s5870_s12 + $0xa0] sm:$0xff]  ;;  %v296_v11 = vld [vmem:[%s5870_s12 + $0xb0] sm:$0xff]  ;;  %293 = vst [vmem:[%s5875_s13 + $0x48] sm:$0xff] %v292_v9 }
  0x35   : > { %295 = vst [vmem:[%s5875_s13 + $0x50] sm:$0xff] %v294_v10  ;;  %297 = vst [vmem:[%s5875_s13 + $0x58] sm:$0xff] %v296_v11  ;;  %v298_v12 = vld [vmem:[%s5870_s12 + $0xc0] sm:$0xff]  ;;  %v300_v13 = vld [vmem:[%s5870_s12 + $0xd0] sm:$0xff] }
  0x36   : > { %v302_v14 = vld [vmem:[%s5870_s12 + $0xe0] sm:$0xff]  ;;  %299 = vst [vmem:[%s5875_s13 + $0x60] sm:$0xff] %v298_v12  ;;  %301 = vst [vmem:[%s5875_s13 + $0x68] sm:$0xff] %v300_v13  ;;  %v304_v15 = vld [vmem:[%s5870_s12 + $0xf0] sm:$0xff] }
  0x37   : > { %303 = vst [vmem:[%s5875_s13 + $0x70] sm:$0xff] %v302_v14  ;;  %v306_v16 = vld [vmem:[%s5870_s12 + $0x100] sm:$0xff]  ;;  %v308_v17 = vld [vmem:[%s5870_s12 + $0x110] sm:$0xff]  ;;  %305 = vst [vmem:[%s5875_s13 + $0x78] sm:$0xff] %v304_v15 }
  0x38   : > { %307 = vst [vmem:[%s5875_s13 + $0x80] sm:$0xff] %v306_v16  ;;  %309 = vst [vmem:[%s5875_s13 + $0x88] sm:$0xff] %v308_v17  ;;  %v310_v18 = vld [vmem:[%s5870_s12 + $0x120] sm:$0xff]  ;;  %v312_v19 = vld [vmem:[%s5870_s12 + $0x130] sm:$0xff] }
  0x39   : > { %v314_v20 = vld [vmem:[%s5870_s12 + $0x140] sm:$0xff]  ;;  %311 = vst [vmem:[%s5875_s13 + $0x90] sm:$0xff] %v310_v18  ;;  %313 = vst [vmem:[%s5875_s13 + $0x98] sm:$0xff] %v312_v19  ;;  %v316_v21 = vld [vmem:[%s5870_s12 + $0x150] sm:$0xff] }
  0x3a   : > { %315 = vst [vmem:[%s5875_s13 + $0xa0] sm:$0xff] %v314_v20  ;;  %v318_v22 = vld [vmem:[%s5870_s12 + $0x160] sm:$0xff]  ;;  %v320_v23 = vld [vmem:[%s5870_s12 + $0x170] sm:$0xff]  ;;  %317 = vst [vmem:[%s5875_s13 + $0xa8] sm:$0xff] %v316_v21 }
  0x3b   : > { %319 = vst [vmem:[%s5875_s13 + $0xb0] sm:$0xff] %v318_v22  ;;  %321 = vst [vmem:[%s5875_s13 + $0xb8] sm:$0xff] %v320_v23  ;;  %v322_v24 = vld [vmem:[%s5870_s12 + $0x180] sm:$0xff]  ;;  %v324_v25 = vld [vmem:[%s5870_s12 + $0x190] sm:$0xff] }
  0x3c   : > { %v326_v26 = vld [vmem:[%s5870_s12 + $0x1a0] sm:$0xff]  ;;  %323 = vst [vmem:[%s5875_s13 + $0xc0] sm:$0xff] %v322_v24  ;;  %325 = vst [vmem:[%s5875_s13 + $0xc8] sm:$0xff] %v324_v25  ;;  %v328_v27 = vld [vmem:[%s5870_s12 + $0x1b0] sm:$0xff] }
  0x3d   : > { %327 = vst [vmem:[%s5875_s13 + $0xd0] sm:$0xff] %v326_v26  ;;  %v330_v28 = vld [vmem:[%s5870_s12 + $0x1c0] sm:$0xff]  ;;  %v332_v29 = vld [vmem:[%s5870_s12 + $0x1d0] sm:$0xff]  ;;  %329 = vst [vmem:[%s5875_s13 + $0xd8] sm:$0xff] %v328_v27 }
  0x3e   : > { %331 = vst [vmem:[%s5875_s13 + $0xe0] sm:$0xff] %v330_v28  ;;  %333 = vst [vmem:[%s5875_s13 + $0xe8] sm:$0xff] %v332_v29  ;;  %v334_v30 = vld [vmem:[%s5870_s12 + $0x1e0] sm:$0xff]  ;;  %v336_v31 = vld [vmem:[%s5870_s12 + $0x1f0] sm:$0xff] }
  0x3f   : > { %335 = vst [vmem:[%s5875_s13 + $0xf0] sm:$0xff] %v334_v30  ;;  %337 = vst [vmem:[%s5875_s13 + $0xf8] sm:$0xff] %v336_v31 }
  0x40 PF: > { %343 = sbr.rel (!%p5825_p3) target bundleno = 90 (0x5a), region = 58  ;;  %s345_s6 = sand.u32 (%p5825_p3), 1, %s5700_s21  }
  0x41   : > { %s5265_s27 = sshll.u32 (%p5825_p3), %s5712_s24, 3  ;;  %s5264_s8 = sshll.u32 (%p5825_p3), %s345_s6, 8 }
  0x42   : > { %s7007_s1 = sld [smem:[#allocation14_spill]] (%p5825_p3)  ;;  %s5950_s7 = scalar_lea.vmem (%p5825_p3), [#allocation5], %s5264_s8 }
  0x48   : > { %s5945_s0 = scalar_lea.vmem %s7007_s1, %s5265_s27 }
  0x49   : > { %v439_v32 = vld [vmem:[%s5945_s0] sm:$0xff]  ;;  %v441_v33 = vld [vmem:[%s5945_s0 + $0x10] sm:$0xff] }
  0x4a   : > { %v443_v34 = vld [vmem:[%s5945_s0 + $0x20] sm:$0xff]  ;;  %440 = vst [vmem:[%s5950_s7] sm:$0xff] %v439_v32  ;;  %442 = vst [vmem:[%s5950_s7 + $0x8] sm:$0xff] %v441_v33  ;;  %v445_v35 = vld [vmem:[%s5945_s0 + $0x30] sm:$0xff] }
  0x4b   : > { %444 = vst [vmem:[%s5950_s7 + $0x10] sm:$0xff] %v443_v34  ;;  %v447_v36 = vld [vmem:[%s5945_s0 + $0x40] sm:$0xff]  ;;  %v449_v37 = vld [vmem:[%s5945_s0 + $0x50] sm:$0xff]  ;;  %446 = vst [vmem:[%s5950_s7 + $0x18] sm:$0xff] %v445_v35 }
  0x4c   : > { %448 = vst [vmem:[%s5950_s7 + $0x20] sm:$0xff] %v447_v36  ;;  %450 = vst [vmem:[%s5950_s7 + $0x28] sm:$0xff] %v449_v37  ;;  %v451_v38 = vld [vmem:[%s5945_s0 + $0x60] sm:$0xff]  ;;  %v453_v39 = vld [vmem:[%s5945_s0 + $0x70] sm:$0xff] }
  0x4d   : > { %v455_v40 = vld [vmem:[%s5945_s0 + $0x80] sm:$0xff]  ;;  %452 = vst [vmem:[%s5950_s7 + $0x30] sm:$0xff] %v451_v38  ;;  %454 = vst [vmem:[%s5950_s7 + $0x38] sm:$0xff] %v453_v39  ;;  %v457_v41 = vld [vmem:[%s5945_s0 + $0x90] sm:$0xff] }
  0x4e   : > { %456 = vst [vmem:[%s5950_s7 + $0x40] sm:$0xff] %v455_v40  ;;  %v459_v42 = vld [vmem:[%s5945_s0 + $0xa0] sm:$0xff]  ;;  %v461_v43 = vld [vmem:[%s5945_s0 + $0xb0] sm:$0xff]  ;;  %458 = vst [vmem:[%s5950_s7 + $0x48] sm:$0xff] %v457_v41 }
  0x4f   : > { %460 = vst [vmem:[%s5950_s7 + $0x50] sm:$0xff] %v459_v42  ;;  %462 = vst [vmem:[%s5950_s7 + $0x58] sm:$0xff] %v461_v43  ;;  %v463_v44 = vld [vmem:[%s5945_s0 + $0xc0] sm:$0xff]  ;;  %v465_v45 = vld [vmem:[%s5945_s0 + $0xd0] sm:$0xff] }
  0x50   : > { %v467_v46 = vld [vmem:[%s5945_s0 + $0xe0] sm:$0xff]  ;;  %464 = vst [vmem:[%s5950_s7 + $0x60] sm:$0xff] %v463_v44  ;;  %466 = vst [vmem:[%s5950_s7 + $0x68] sm:$0xff] %v465_v45  ;;  %v469_v47 = vld [vmem:[%s5945_s0 + $0xf0] sm:$0xff] }
  0x51   : > { %468 = vst [vmem:[%s5950_s7 + $0x70] sm:$0xff] %v467_v46  ;;  %v471_v48 = vld [vmem:[%s5945_s0 + $0x100] sm:$0xff]  ;;  %v473_v49 = vld [vmem:[%s5945_s0 + $0x110] sm:$0xff]  ;;  %470 = vst [vmem:[%s5950_s7 + $0x78] sm:$0xff] %v469_v47 }
  0x52   : > { %472 = vst [vmem:[%s5950_s7 + $0x80] sm:$0xff] %v471_v48  ;;  %474 = vst [vmem:[%s5950_s7 + $0x88] sm:$0xff] %v473_v49  ;;  %v475_v50 = vld [vmem:[%s5945_s0 + $0x120] sm:$0xff]  ;;  %v477_v51 = vld [vmem:[%s5945_s0 + $0x130] sm:$0xff] }
  0x53   : > { %v479_v52 = vld [vmem:[%s5945_s0 + $0x140] sm:$0xff]  ;;  %476 = vst [vmem:[%s5950_s7 + $0x90] sm:$0xff] %v475_v50  ;;  %478 = vst [vmem:[%s5950_s7 + $0x98] sm:$0xff] %v477_v51  ;;  %v481_v53 = vld [vmem:[%s5945_s0 + $0x150] sm:$0xff] }
  0x54   : > { %480 = vst [vmem:[%s5950_s7 + $0xa0] sm:$0xff] %v479_v52  ;;  %v483_v54 = vld [vmem:[%s5945_s0 + $0x160] sm:$0xff]  ;;  %v485_v55 = vld [vmem:[%s5945_s0 + $0x170] sm:$0xff]  ;;  %482 = vst [vmem:[%s5950_s7 + $0xa8] sm:$0xff] %v481_v53 }
  0x55   : > { %484 = vst [vmem:[%s5950_s7 + $0xb0] sm:$0xff] %v483_v54  ;;  %486 = vst [vmem:[%s5950_s7 + $0xb8] sm:$0xff] %v485_v55  ;;  %v487_v56 = vld [vmem:[%s5945_s0 + $0x180] sm:$0xff]  ;;  %v489_v57 = vld [vmem:[%s5945_s0 + $0x190] sm:$0xff] }
  0x56   : > { %v491_v58 = vld [vmem:[%s5945_s0 + $0x1a0] sm:$0xff]  ;;  %488 = vst [vmem:[%s5950_s7 + $0xc0] sm:$0xff] %v487_v56  ;;  %490 = vst [vmem:[%s5950_s7 + $0xc8] sm:$0xff] %v489_v57  ;;  %v493_v59 = vld [vmem:[%s5945_s0 + $0x1b0] sm:$0xff] }
  0x57   : > { %492 = vst [vmem:[%s5950_s7 + $0xd0] sm:$0xff] %v491_v58  ;;  %v495_v60 = vld [vmem:[%s5945_s0 + $0x1c0] sm:$0xff]  ;;  %v497_v61 = vld [vmem:[%s5945_s0 + $0x1d0] sm:$0xff]  ;;  %494 = vst [vmem:[%s5950_s7 + $0xd8] sm:$0xff] %v493_v59 }
  0x58   : > { %496 = vst [vmem:[%s5950_s7 + $0xe0] sm:$0xff] %v495_v60  ;;  %498 = vst [vmem:[%s5950_s7 + $0xe8] sm:$0xff] %v497_v61  ;;  %v499_v62 = vld [vmem:[%s5945_s0 + $0x1e0] sm:$0xff]  ;;  %v501_v63 = vld [vmem:[%s5945_s0 + $0x1f0] sm:$0xff] }
  0x59   : > { %500 = vst [vmem:[%s5950_s7 + $0xf0] sm:$0xff] %v499_v62  ;;  %502 = vst [vmem:[%s5950_s7 + $0xf8] sm:$0xff] %v501_v63 }
  0x5a PF: > { %516 = sbr.rel (!%p5839_p7) target bundleno = 102 (0x66), region = 100  ;;  %s518_s12 = sand.u32 (%p5839_p7), 1, %s5692_s19  }
  0x5b   : > { %s5267_s13 = sshll.u32 (%p5839_p7), %s5716_s25, 3  ;;  %s5266_s6 = sshll.u32 (%p5839_p7), %s518_s12, 5 }
  0x5c   : > { %s522_s27 = sadd.s32 (%p5839_p7), %s5712_s24, %s5267_s13  ;;  %s7008_s3 = sld [smem:[#allocation15_spill]] (%p5839_p7) }
  0x5d   : > { %s5268_s8 = sshll.u32 (%p5839_p7), %s522_s27, 3  ;;  %s520_s0 = scalar_lea.vmem (%p5839_p7), [#allocation6], %s5266_s6 }
  0x62   : > { %s524_s1 = scalar_lea.vmem %s7008_s3, %s5268_s8 }
  0x63   : > { %v558_v0 = vld [vmem:[%s524_s1] sm:$0xff]  ;;  %v560_v1 = vld [vmem:[%s524_s1 + $0x10] sm:$0xff] }
  0x64   : > { %v562_v2 = vld [vmem:[%s524_s1 + $0x20] sm:$0xff]  ;;  %559 = vst [vmem:[%s520_s0] sm:$0xff] %v558_v0  ;;  %561 = vst [vmem:[%s520_s0 + $0x8] sm:$0xff] %v560_v1  ;;  %v564_v3 = vld [vmem:[%s524_s1 + $0x30] sm:$0xff] }
  0x65   : > { %563 = vst [vmem:[%s520_s0 + $0x10] sm:$0xff] %v562_v2  ;;  %565 = vst [vmem:[%s520_s0 + $0x18] sm:$0xff] %v564_v3 }
  0x66 PF: > { %p5269_p3 = scmp.ge.s32.totalorder %s5720_s26, 1  ;;  %p570_p4 = scmp.lt.s32.totalorder %s5720_s26, 17 }
  0x68   : > { %p571_p5 = pnand %p5269_p3, %p570_p4 }
  0x69   : > { %s577_s11 = sand.u32 (!%p571_p5), 1, %s5696_s20   ;;  %s591_s7 = sand.u32 (!%p571_p5), 1, %s5688_s18  }
  0x6a   : > { %574 = sbr.rel (%p571_p5) target bundleno = 989 (0x3dd), region = 138  ;;  %s5270_s12 = sshll.u32 (!%p571_p5), %s577_s11, 8 }
  0x6b   : > { %s5272_s13 = sshll.u32 (!%p571_p5), %s591_s7, 5  ;;  %s626_s1 = sand.u32 (!%p571_p5), 1, %s5680_s16  }
  0x6c   : > { %s6028_s6 = sshll.u32 (!%p571_p5), %s626_s1, 1  ;;  %p629_p6 = scmp.lt.s32.totalorder (!%p571_p5), %s5708_s23, 7 }
  0x6d   : > { %s6037_s3 = scalar_lea.vmem (!%p571_p5), [#allocation4], %s5270_s12  ;;  %s6039_s25 = scalar_lea.vmem (!%p571_p5), [#allocation5], %s5270_s12 }
  0x6e   : > { %s6041_s18 = scalar_lea.vmem (!%p571_p5), [#allocation6], %s5272_s13  ;;  %s628_s20 = scalar_lea.vmem (!%p571_p5), [#allocation7], %s6028_s6 }
  0x6f   : > { %p5276_p7 = scmp.ne.s32.totalorder (!%p571_p5), %s5704_s22, 0 }
  0x71   : > { %s630_s27 = scalar_select %p629_p6, %s5708_s23, 7 }
  0x72   : > { %637 = sbr.rel (%p5276_p7) target bundleno = 147 (0x93), region = 154  ;;  %vm638_vm0 = vcmask (!%p5276_p7), 7168   ;;  %v5722_v4 = vmov (!%p5276_p7), -1e+30   ;;  %v5723_v5 = vmov (!%p5276_p7), 0.0  }
  0x73   : > { %s5379_s8 = sshll.u32 %s630_s27, 8  ;;  %639 = vst.msk [vmem:[#allocation2] sm:$0xff] (!%p5276_p7), %vm638_vm0, %v5722_v4  ;;  %640 = vst.msk [vmem:[#allocation2 + $0x8] sm:$0xff] (!%p5276_p7), %vm638_vm0, %v5722_v4 }
  0x74   : > { %s6035_s0 = scalar_lea.vmem %s6990_s2, %s5379_s8  ;;  %641 = vst.msk [vmem:[#allocation2 + $0x10] sm:$0xff] (!%p5276_p7), %vm638_vm0, %v5722_v4  ;;  %642 = vst.msk [vmem:[#allocation2 + $0x18] sm:$0xff] (!%p5276_p7), %vm638_vm0, %v5722_v4 }
  0x75   : > { %643 = vst.msk [vmem:[#allocation2 + $0x20] sm:$0xff] (!%p5276_p7), %vm638_vm0, %v5722_v4  ;;  %644 = vst.msk [vmem:[#allocation2 + $0x28] sm:$0xff] (!%p5276_p7), %vm638_vm0, %v5722_v4 }
  0x76   : > { %645 = vst.msk [vmem:[#allocation2 + $0x30] sm:$0xff] (!%p5276_p7), %vm638_vm0, %v5722_v4  ;;  %646 = vst.msk [vmem:[#allocation2 + $0x38] sm:$0xff] (!%p5276_p7), %vm638_vm0, %v5722_v4 }
  0x77   : > { %647 = vst.msk [vmem:[#allocation2 + $0x40] sm:$0xff] (!%p5276_p7), %vm638_vm0, %v5722_v4  ;;  %648 = vst.msk [vmem:[#allocation2 + $0x48] sm:$0xff] (!%p5276_p7), %vm638_vm0, %v5722_v4 }
  0x78   : > { %649 = vst.msk [vmem:[#allocation2 + $0x50] sm:$0xff] (!%p5276_p7), %vm638_vm0, %v5722_v4  ;;  %650 = vst.msk [vmem:[#allocation2 + $0x58] sm:$0xff] (!%p5276_p7), %vm638_vm0, %v5722_v4 }
  0x79   : > { %651 = vst.msk [vmem:[#allocation2 + $0x60] sm:$0xff] %vm638_vm0, %v5722_v4  ;;  %652 = vst.msk [vmem:[#allocation2 + $0x68] sm:$0xff] %vm638_vm0, %v5722_v4 }
  0x7a   : > { %653 = vst.msk [vmem:[#allocation2 + $0x70] sm:$0xff] %vm638_vm0, %v5722_v4  ;;  %654 = vst.msk [vmem:[#allocation2 + $0x78] sm:$0xff] %vm638_vm0, %v5722_v4 }
  0x7b   : > { %655 = vst.msk [vmem:[#allocation2 + $0x80] sm:$0xff] %vm638_vm0, %v5722_v4  ;;  %656 = vst.msk [vmem:[#allocation2 + $0x88] sm:$0xff] %vm638_vm0, %v5722_v4 }
  0x7c   : > { %657 = vst.msk [vmem:[#allocation2 + $0x90] sm:$0xff] %vm638_vm0, %v5722_v4  ;;  %658 = vst.msk [vmem:[#allocation2 + $0x98] sm:$0xff] %vm638_vm0, %v5722_v4 }
  0x7d   : > { %659 = vst.msk [vmem:[#allocation2 + $0xa0] sm:$0xff] %vm638_vm0, %v5722_v4  ;;  %660 = vst.msk [vmem:[#allocation2 + $0xa8] sm:$0xff] %vm638_vm0, %v5722_v4 }
  0x7e   : > { %661 = vst.msk [vmem:[#allocation2 + $0xb0] sm:$0xff] %vm638_vm0, %v5722_v4  ;;  %662 = vst.msk [vmem:[#allocation2 + $0xb8] sm:$0xff] %vm638_vm0, %v5722_v4 }
  0x7f   : > { %663 = vst.msk [vmem:[#allocation2 + $0xc0] sm:$0xff] %vm638_vm0, %v5722_v4  ;;  %664 = vst.msk [vmem:[#allocation2 + $0xc8] sm:$0xff] %vm638_vm0, %v5722_v4 }
  0x80   : > { %665 = vst.msk [vmem:[#allocation2 + $0xd0] sm:$0xff] %vm638_vm0, %v5722_v4  ;;  %666 = vst.msk [vmem:[#allocation2 + $0xd8] sm:$0xff] %vm638_vm0, %v5722_v4 }
  0x81   : > { %667 = vst.msk [vmem:[#allocation2 + $0xe0] sm:$0xff] %vm638_vm0, %v5722_v4  ;;  %668 = vst.msk [vmem:[#allocation2 + $0xe8] sm:$0xff] %vm638_vm0, %v5722_v4 }
  0x82   : > { %669 = vst.msk [vmem:[#allocation2 + $0xf0] sm:$0xff] %vm638_vm0, %v5722_v4  ;;  %670 = vst.msk [vmem:[#allocation2 + $0xf8] sm:$0xff] %vm638_vm0, %v5722_v4 }
  0x83   : > { %671 = vst.msk [vmem:[#allocation3] sm:$0xff] %vm638_vm0, %v5723_v5  ;;  %672 = vst.msk [vmem:[#allocation3 + $0x8] sm:$0xff] %vm638_vm0, %v5723_v5 }
  0x84   : > { %673 = vst.msk [vmem:[#allocation3 + $0x10] sm:$0xff] %vm638_vm0, %v5723_v5  ;;  %674 = vst.msk [vmem:[#allocation3 + $0x18] sm:$0xff] %vm638_vm0, %v5723_v5 }
  0x85   : > { %675 = vst.msk [vmem:[#allocation3 + $0x20] sm:$0xff] %vm638_vm0, %v5723_v5  ;;  %676 = vst.msk [vmem:[#allocation3 + $0x28] sm:$0xff] %vm638_vm0, %v5723_v5 }
  0x86   : > { %677 = vst.msk [vmem:[#allocation3 + $0x30] sm:$0xff] %vm638_vm0, %v5723_v5  ;;  %678 = vst.msk [vmem:[#allocation3 + $0x38] sm:$0xff] %vm638_vm0, %v5723_v5 }
  0x87   : > { %679 = vst.msk [vmem:[#allocation3 + $0x40] sm:$0xff] %vm638_vm0, %v5723_v5  ;;  %680 = vst.msk [vmem:[#allocation3 + $0x48] sm:$0xff] %vm638_vm0, %v5723_v5 }
  0x88   : > { %681 = vst.msk [vmem:[#allocation3 + $0x50] sm:$0xff] %vm638_vm0, %v5723_v5  ;;  %682 = vst.msk [vmem:[#allocation3 + $0x58] sm:$0xff] %vm638_vm0, %v5723_v5 }
  0x89   : > { %683 = vst.msk [vmem:[#allocation3 + $0x60] sm:$0xff] %vm638_vm0, %v5723_v5  ;;  %684 = vst.msk [vmem:[#allocation3 + $0x68] sm:$0xff] %vm638_vm0, %v5723_v5 }
  0x8a   : > { %685 = vst.msk [vmem:[#allocation3 + $0x70] sm:$0xff] %vm638_vm0, %v5723_v5  ;;  %686 = vst.msk [vmem:[#allocation3 + $0x78] sm:$0xff] %vm638_vm0, %v5723_v5 }
  0x8b   : > { %687 = vst.msk [vmem:[#allocation3 + $0x80] sm:$0xff] %vm638_vm0, %v5723_v5  ;;  %688 = vst.msk [vmem:[#allocation3 + $0x88] sm:$0xff] %vm638_vm0, %v5723_v5 }
  0x8c   : > { %689 = vst.msk [vmem:[#allocation3 + $0x90] sm:$0xff] %vm638_vm0, %v5723_v5  ;;  %690 = vst.msk [vmem:[#allocation3 + $0x98] sm:$0xff] %vm638_vm0, %v5723_v5 }
  0x8d   : > { %691 = vst.msk [vmem:[#allocation3 + $0xa0] sm:$0xff] %vm638_vm0, %v5723_v5  ;;  %692 = vst.msk [vmem:[#allocation3 + $0xa8] sm:$0xff] %vm638_vm0, %v5723_v5 }
  0x8e   : > { %693 = vst.msk [vmem:[#allocation3 + $0xb0] sm:$0xff] %vm638_vm0, %v5723_v5  ;;  %694 = vst.msk [vmem:[#allocation3 + $0xb8] sm:$0xff] %vm638_vm0, %v5723_v5 }
  0x8f   : > { %695 = vst.msk [vmem:[#allocation3 + $0xc0] sm:$0xff] %vm638_vm0, %v5723_v5  ;;  %696 = vst.msk [vmem:[#allocation3 + $0xc8] sm:$0xff] %vm638_vm0, %v5723_v5 }
  0x90   : > { %697 = vst.msk [vmem:[#allocation3 + $0xd0] sm:$0xff] %vm638_vm0, %v5723_v5  ;;  %698 = vst.msk [vmem:[#allocation3 + $0xd8] sm:$0xff] %vm638_vm0, %v5723_v5 }
  0x91   : > { %699 = vst.msk [vmem:[#allocation3 + $0xe0] sm:$0xff] %vm638_vm0, %v5723_v5  ;;  %700 = vst.msk [vmem:[#allocation3 + $0xe8] sm:$0xff] %vm638_vm0, %v5723_v5 }
  0x92   : > { %701 = vst.msk [vmem:[#allocation3 + $0xf0] sm:$0xff] %vm638_vm0, %v5723_v5  ;;  %702 = vst.msk [vmem:[#allocation3 + $0xf8] sm:$0xff] %vm638_vm0, %v5723_v5 }
  0x93 PF: > { %v735_v6 = vld [vmem:[%s6041_s18] sm:$0xff]  ;;  %v736_v7 = vld [vmem:[%s6041_s18 + $0x8] sm:$0xff]  ;;  %v737_v8 = vld [vmem:[%s6041_s18 + $0x10] sm:$0xff]  ;;  %vm739_vm1 = vcmask 261120   ;;  %vm1253_vm2 = vcmask 7168   ;;  %p5309_p8 = scmp.ne.s32.totalorder %s5704_s22, 1 }
  0x94   : > { %v5473_v9 = vpack.c.bf16 %v736_v7, %v735_v6  ;;  %v738_v10 = vld [vmem:[%s6041_s18 + $0x18] sm:$0xff]  ;;  %v703_v11 = vld [vmem:[%s6035_s0] sm:$0xff]  ;;  %v704_v14 = vld [vmem:[%s6035_s0 + $0x8] sm:$0xff]  ;;  %vm4917_vm3 = vcmask (!%p5309_p8), 130112   ;;  %vm4924_vm4 = vcmask (!%p5309_p8), 195712   ;;  %vm4931_vm5 = vcmask (!%p5309_p8), 261312  }
  0x95   : > { %v719_v12 = vld [vmem:[%s6035_s0 + $0x80] sm:$0xff]  ;;  %v5477_v13 = vpack.c.bf16 %v738_v10, %v737_v8  ;;  %5425 = vmatprep.mubr.msk.f32.mxu0 %vm739_vm1, %v703_v11  ;;  %v720_v15 = vld [vmem:[%s6035_s0 + $0x88] sm:$0xff]  ;;  %v705_v16 = vld [vmem:[%s6035_s0 + $0x10] sm:$0xff]  ;;  %vm4938_vm6 = vcmask (!%p5309_p8), 326912   ;;  %vm4945_vm7 = vcmask (!%p5309_p8), 392512   ;;  %vm4952_vm8 = vcmask (!%p5309_p8), 458112  }
  0x96   : > { %5449 = vmatprep.mubr.msk.f32.mxu1 %vm739_vm1, %v719_v12  ;;  %5474 = vmatprep.subr.bf16.mxu0 %v5473_v9  ;;  %v721_v17 = vld [vmem:[%s6035_s0 + $0x90] sm:$0xff]  ;;  %v706_v18 = vld [vmem:[%s6035_s0 + $0x18] sm:$0xff]  ;;  %v707_v20 = vld [vmem:[%s6035_s0 + $0x20] sm:$0xff]  ;;  %vm4959_vm9 = vcmask (!%p5309_p8), 523712   ;;  %vm4966_vm10 = vcmask (!%p5309_p8), 589312   ;;  %vm4973_vm11 = vcmask (!%p5309_p8), 654912  }
  0x97   : > { %5481 = vmatprep.subr.bf16.mxu1 %v5473_v9  ;;  %5476 = vmatpush3.bf16.msra.mxu0 %v5473_v9  ;;  %v722_v19 = vld [vmem:[%s6035_s0 + $0x98] sm:$0xff]  ;;  %v723_v21 = vld [vmem:[%s6035_s0 + $0xa0] sm:$0xff]  ;;  %v708_v22 = vld [vmem:[%s6035_s0 + $0x28] sm:$0xff]  ;;  %vm4980_vm12 = vcmask (!%p5309_p8), 720512   ;;  %vm4987_vm13 = vcmask (!%p5309_p8), 786112   ;;  %vm4994_vm14 = vcmask (!%p5309_p8), 851712  }
  0x98   : > { %5483 = vmatpush3.bf16.msra.mxu1 %v5473_v9  ;;  %5478 = vmatprep.subr.bf16.mxu0 %v5477_v13  ;;  %v724_v23 = vld [vmem:[%s6035_s0 + $0xa8] sm:$0xff]  ;;  %v709_v24 = vld [vmem:[%s6035_s0 + $0x30] sm:$0xff]  ;;  %v710_v26 = vld [vmem:[%s6035_s0 + $0x38] sm:$0xff]  ;;  %vm5001_vm15 = vcmask (!%p5309_p8), 917312   ;;  %vm5008_vm0 = vcmask (!%p5309_p8), 982912  }
  0x99   : > { %5482 = vmatprep.subr.bf16.mxu1 %v5477_v13  ;;  %v725_v25 = vld [vmem:[%s6035_s0 + $0xb0] sm:$0xff]  ;;  %v726_v27 = vld [vmem:[%s6035_s0 + $0xb8] sm:$0xff]  ;;  %v711_v28 = vld [vmem:[%s6035_s0 + $0x40] sm:$0xff] }
  0x9a   : > { %v727_v29 = vld [vmem:[%s6035_s0 + $0xc0] sm:$0xff]  ;;  %v712_v30 = vld [vmem:[%s6035_s0 + $0x48] sm:$0xff]  ;;  %v713_v32 = vld [vmem:[%s6035_s0 + $0x50] sm:$0xff] }
  0x9b   : > { %5480 = vmatpush3.bf16.msra.mxu0 %v5477_v13  ;;  %v728_v31 = vld [vmem:[%s6035_s0 + $0xc8] sm:$0xff]  ;;  %v729_v33 = vld [vmem:[%s6035_s0 + $0xd0] sm:$0xff]  ;;  %v714_v34 = vld [vmem:[%s6035_s0 + $0x58] sm:$0xff] }
  0x9c   : > { %5484 = vmatpush3.bf16.msra.mxu1 %v5477_v13  ;;  %v730_v35 = vld [vmem:[%s6035_s0 + $0xd8] sm:$0xff]  ;;  %v715_v36 = vld [vmem:[%s6035_s0 + $0x60] sm:$0xff]  ;;  %v716_v38 = vld [vmem:[%s6035_s0 + $0x68] sm:$0xff] }
  0x9d   : > { %v731_v37 = vld [vmem:[%s6035_s0 + $0xe0] sm:$0xff]  ;;  %v732_v39 = vld [vmem:[%s6035_s0 + $0xe8] sm:$0xff]  ;;  %v717_v40 = vld [vmem:[%s6035_s0 + $0x70] sm:$0xff] }
  0x9e   : > { %5426 = vmatmul.mubr.msk.f32.vlgmr.msra.gmra.mrb[0].mxu0 %vm739_vm1, %v704_v14  ;;  %v733_v41 = vld [vmem:[%s6035_s0 + $0xf0] sm:$0xff]  ;;  %v718_v42 = vld [vmem:[%s6035_s0 + $0x78] sm:$0xff]  ;;  %v1110_v44 = vld [vmem:[%s6037_s3 + $0x88] sm:$0xff] }
  0x9f   : > { %5450 = vmatmul.mubr.msk.f32.vlgmr.msra.gmra.mrb[0].mxu1 %vm739_vm1, %v720_v15  ;;  %5428 = vmatprep.mubr.msk.f32.mxu0 %vm739_vm1, %v705_v16  ;;  %v734_v43 = vld [vmem:[%s6035_s0 + $0xf8] sm:$0xff]  ;;  %v1094_v45 = vld [vmem:[%s6037_s3 + $0x8] sm:$0xff]  ;;  %v1093_v53 = vld [vmem:[%s6037_s3] sm:$0xff] }
  0xa0   : > { %5452 = vmatprep.mubr.msk.f32.mxu1 %vm739_vm1, %v721_v17  ;;  %v1319_v52 = vld [vmem:[%s6039_s25 + $0x8] sm:$0xff]  ;;  %v1109_v61 = vld [vmem:[%s6037_s3 + $0x80] sm:$0xff]  ;;  %v1096_v62 = vld [vmem:[%s6037_s3 + $0x18] sm:$0xff] }
  0xa1   : > { %v1335_v60 = vld [vmem:[%s6039_s25 + $0x88] sm:$0xff]  ;;  %v1318_v5 = vld [vmem:[%s6039_s25] sm:$0xff]  ;;  %v1112_v7 = vld [vmem:[%s6037_s3 + $0x98] sm:$0xff] }
  0xa2   : > { %5429 = vmatmul.mubr.msk.f32.gmra.mrb[2].mxu0 %vm739_vm1, %v706_v18  ;;  %v1334_v13 = vld [vmem:[%s6039_s25 + $0x80] sm:$0xff] }
  0xa3   : > { %5453 = vmatmul.mubr.msk.f32.gmra.mrb[2].mxu1 %vm739_vm1, %v722_v19  ;;  %5431 = vmatprep.mubr.msk.f32.mxu0 %vm739_vm1, %v707_v20  ;;  %v1111_v20 = vld [vmem:[%s6037_s3 + $0x90] sm:$0xff] }
  0xa4   : > { %5455 = vmatprep.mubr.msk.f32.mxu1 %vm739_vm1, %v723_v21  ;;  %v1321_v21 = vld [vmem:[%s6039_s25 + $0x18] sm:$0xff] }
  0xa6   : > { %5432 = vmatmul.mubr.msk.f32.gmra.mrb[4].mxu0 %vm739_vm1, %v708_v22 }
  0xa7   : > { %5456 = vmatmul.mubr.msk.f32.gmra.mrb[4].mxu1 %vm739_vm1, %v724_v23  ;;  %5434 = vmatprep.mubr.msk.f32.mxu0 %vm739_vm1, %v709_v24 }
  0xa8   : > { %5458 = vmatprep.mubr.msk.f32.mxu1 %vm739_vm1, %v725_v25 }
  0xaa   : > { %5435 = vmatmul.mubr.msk.f32.gmra.mrb[6].mxu0 %vm739_vm1, %v710_v26 }
  0xab   : > { %5459 = vmatmul.mubr.msk.f32.gmra.mrb[6].mxu1 %vm739_vm1, %v726_v27  ;;  %5437 = vmatprep.mubr.msk.f32.mxu0 %vm739_vm1, %v711_v28  ;;  %v1337_v28 = vld [vmem:[%s6039_s25 + $0x98] sm:$0xff] }
  0xac   : > { %5461 = vmatprep.mubr.msk.f32.mxu1 %vm739_vm1, %v727_v29  ;;  %v1320_v29 = vld [vmem:[%s6039_s25 + $0x10] sm:$0xff] }
  0xae   : > { %5438 = vmatmul.mubr.msk.f32.gmra.mrb[8].mxu0 %vm739_vm1, %v712_v30 }
  0xaf   : > { %5462 = vmatmul.mubr.msk.f32.gmra.mrb[8].mxu1 %vm739_vm1, %v728_v31  ;;  %5440 = vmatprep.mubr.msk.f32.mxu0 %vm739_vm1, %v713_v32 }
  0xb0   : > { %5464 = vmatprep.mubr.msk.f32.mxu1 %vm739_vm1, %v729_v33 }
  0xb2   : > { %5441 = vmatmul.mubr.msk.f32.gmra.mrb[10].mxu0 %vm739_vm1, %v714_v34 }
  0xb3   : > { %5465 = vmatmul.mubr.msk.f32.gmra.mrb[10].mxu1 %vm739_vm1, %v730_v35  ;;  %5443 = vmatprep.mubr.msk.f32.mxu0 %vm739_vm1, %v715_v36  ;;  %v1336_v36 = vld [vmem:[%s6039_s25 + $0x90] sm:$0xff] }
  0xb4   : > { %5467 = vmatprep.mubr.msk.f32.mxu1 %vm739_vm1, %v731_v37  ;;  %v1095_v37 = vld [vmem:[%s6037_s3 + $0x10] sm:$0xff] }
  0xb6   : > { %5444 = vmatmul.mubr.msk.f32.gmra.mrb[12].mxu0 %vm739_vm1, %v716_v38  ;;  %v1098_v38 = vld [vmem:[%s6037_s3 + $0x28] sm:$0xff] }
  0xb7   : > { %5468 = vmatmul.mubr.msk.f32.gmra.mrb[12].mxu1 %vm739_vm1, %v732_v39  ;;  %5446 = vmatprep.mubr.msk.f32.mxu0 %vm739_vm1, %v717_v40  ;;  %v1097_v39 = vld [vmem:[%s6037_s3 + $0x20] sm:$0xff] }
  0xb8   : > { %5470 = vmatprep.mubr.msk.f32.mxu1 %vm739_vm1, %v733_v41 }
  0xba   : > { %5447 = vmatmul.mubr.msk.f32.gmra.mrb[14].mxu0 %vm739_vm1, %v718_v42 }
  0xbb   : > { %5471 = vmatmul.mubr.msk.f32.gmra.mrb[14].mxu1 %vm739_vm1, %v734_v43  ;;  %vm5015_vm1 = vcmask (!%p5309_p8), 1048512  }
 0x171   : > { %v5427_v46 = vpop.f32.mrb[0].mxu0 }
 0x172   : > { %v5451_v47 = vpop.f32.mrb[0].mxu1  ;;  %v902_v48 = vpop.f32.mrb[1].mxu0  ;;  %v1126_v51 = vmul.f32 %v5427_v46, %v1094_v45  ;;  %v1351_v56 = vadd.f32 %v5427_v46, %v1319_v52  ;;  %v1323_v52 = vld [vmem:[%s6039_s25 + $0x28] sm:$0xff] }
 0x173   : > { %v982_v49 = vpop.f32.mrb[1].mxu1  ;;  %v1142_v50 = vmul.f32 %v5451_v47, %v1110_v44  ;;  %v1125_v57 = vmul.f32 %v1093_v53, %v902_v48  ;;  %v1367_v1 = vadd.f32 %v5451_v47, %v1335_v60  ;;  %v1350_v10 = vadd.f32 %v1318_v5, %v902_v48  ;;  %v1114_v48 = vld [vmem:[%s6037_s3 + $0xa8] sm:$0xff]  ;;  %v1322_v53 = vld [vmem:[%s6039_s25 + $0x20] sm:$0xff]  ;;  %v1325_v5 = vld [vmem:[%s6039_s25 + $0x38] sm:$0xff] }
 0x174   : > { %1159 = vadd.xlane.f32.xlu0 %v1126_v51  ;;  %v1141_v2 = vmul.f32 %v1109_v61, %v982_v49  ;;  %v1366_v17 = vadd.f32 %v1334_v13, %v982_v49  ;;  %v1113_v49 = vld [vmem:[%s6037_s3 + $0xa0] sm:$0xff]  ;;  %v1340_v13 = vld [vmem:[%s6039_s25 + $0xb0] sm:$0xff] }
 0x175   : > { %1191 = vadd.xlane.f32.xlu1 %v1142_v50  ;;  %v5430_v54 = vpop.f32.mrb[2].mxu0 }
 0x176   : > { %v5454_v55 = vpop.f32.mrb[2].mxu1  ;;  %v912_v58 = vpop.f32.mrb[3].mxu0  ;;  %v1128_v6 = vmul.f32 %v5430_v54, %v1096_v62  ;;  %v1353_v25 = vadd.f32 %v5430_v54, %v1321_v21 }
 0x177   : > { %v992_v59 = vpop.f32.mrb[3].mxu1  ;;  %v1144_v14 = vmul.f32 %v5454_v55, %v1112_v7  ;;  %v1369_v32 = vadd.f32 %v5454_v55, %v1337_v28  ;;  %v1352_v33 = vadd.f32 %v1320_v29, %v912_v58  ;;  %v1127_v43 = vmul.f32 %v1095_v37, %v912_v58  ;;  %v1100_v58 = vld [vmem:[%s6037_s3 + $0x38] sm:$0xff]  ;;  %v1327_v29 = vld [vmem:[%s6039_s25 + $0x48] sm:$0xff]  ;;  %v1342_v37 = vld [vmem:[%s6039_s25 + $0xc0] sm:$0xff] }
 0x178   : > { %1157 = vadd.xlane.f32.xlu0 %v1125_v57  ;;  %v1143_v24 = vmul.f32 %v1111_v20, %v992_v59  ;;  %v1368_v42 = vadd.f32 %v1336_v36, %v992_v59  ;;  %v1338_v57 = vld [vmem:[%s6039_s25 + $0xa0] sm:$0xff]  ;;  %v1099_v59 = vld [vmem:[%s6037_s3 + $0x30] sm:$0xff]  ;;  %v1343_v36 = vld [vmem:[%s6039_s25 + $0xc8] sm:$0xff] }
 0x179   : > { %1384 = vmax.xlane.f32.xlu1 %v1351_v56  ;;  %v6184_v63 = vpop.f32.mrb[4].mxu0  ;;  %v1339_v56 = vld [vmem:[%s6039_s25 + $0xa8] sm:$0xff] }
 0x17a   : > { %v6186_v0 = vpop.f32.mrb[4].mxu1  ;;  %v6188_v3 = vpop.f32.mrb[5].mxu0  ;;  %v1130_v46 = vmul.f32 %v6184_v63, %v1098_v38  ;;  %v1355_v54 = vadd.f32 %v6184_v63, %v1323_v52  ;;  %v1104_v38 = vld [vmem:[%s6037_s3 + $0x58] sm:$0xff] }
 0x17b   : > { %v6190_v4 = vpop.f32.mrb[5].mxu1  ;;  %v1129_v47 = vmul.f32 %v1097_v39, %v6188_v3  ;;  %v1146_v50 = vmul.f32 %v6186_v0, %v1114_v48  ;;  %v1354_v55 = vadd.f32 %v1322_v53, %v6188_v3  ;;  %v1371_v60 = vadd.f32 %v6186_v0, %v1339_v56  ;;  %v1103_v39 = vld [vmem:[%s6037_s3 + $0x50] sm:$0xff]  ;;  %v1345_v52 = vld [vmem:[%s6039_s25 + $0xd8] sm:$0xff] }
 0x17c   : > { %1189 = vadd.xlane.f32.xlu0 %v1141_v2  ;;  %v1145_v51 = vmul.f32 %v1113_v49, %v6190_v4  ;;  %v1370_v61 = vadd.f32 %v1338_v57, %v6190_v4  ;;  %v1115_v2 = vld [vmem:[%s6037_s3 + $0xb0] sm:$0xff]  ;;  %v1329_v49 = vld [vmem:[%s6039_s25 + $0x58] sm:$0xff] }
 0x17d   : > { %1416 = vmax.xlane.f32.xlu1 %v1367_v1  ;;  %v6194_v8 = vpop.f32.mrb[6].mxu0  ;;  %v1116_v1 = vld [vmem:[%s6037_s3 + $0xb8] sm:$0xff]  ;;  %v1324_v4 = vld [vmem:[%s6039_s25 + $0x30] sm:$0xff] }
 0x17e   : > { %v6196_v9 = vpop.f32.mrb[6].mxu1  ;;  %v6198_v11 = vpop.f32.mrb[7].mxu0  ;;  %v1132_v62 = vmul.f32 %v6194_v8, %v1100_v58  ;;  %v1344_v53 = vld [vmem:[%s6039_s25 + $0xd0] sm:$0xff]  ;;  %v1122_v58 = vld [vmem:[%s6037_s3 + $0xe8] sm:$0xff] }
 0x17f   : > { %v6200_v12 = vpop.f32.mrb[7].mxu1  ;;  %v1131_v63 = vmul.f32 %v1099_v59, %v6198_v11  ;;  %v1148_v3 = vmul.f32 %v6196_v9, %v1116_v1  ;;  %v1356_v7 = vadd.f32 %v1324_v4, %v6198_v11  ;;  %v1121_v59 = vld [vmem:[%s6037_s3 + $0xe0] sm:$0xff]  ;;  %v1347_v1 = vld [vmem:[%s6039_s25 + $0xe8] sm:$0xff] }
 0x180   : > { %1382 = vmax.xlane.f32.xlu0 %v1350_v10  ;;  %v1147_v0 = vmul.f32 %v1115_v2, %v6200_v12  ;;  %v1341_v10 = vld [vmem:[%s6039_s25 + $0xb8] sm:$0xff]  ;;  %v1372_v21 = vadd.f32 %v1340_v13, %v6200_v12  ;;  %v1326_v12 = vld [vmem:[%s6039_s25 + $0x40] sm:$0xff] }
 0x181   : > { %1163 = vadd.xlane.f32.xlu1 %v1128_v6  ;;  %v6203_v15 = vpop.f32.mrb[8].mxu0  ;;  %v1357_v6 = vadd.f32 %v6194_v8, %v1325_v5  ;;  %v1373_v20 = vadd.f32 %v6196_v9, %v1341_v10  ;;  %v1346_v2 = vld [vmem:[%s6039_s25 + $0xe0] sm:$0xff] }
 0x182   : > { %v6205_v16 = vpop.f32.mrb[8].mxu1  ;;  %v6207_v18 = vpop.f32.mrb[9].mxu0 }
 0x183   : > { %v6209_v19 = vpop.f32.mrb[9].mxu1 }
 0x184   : > { %1414 = vmax.xlane.f32.xlu0 %v1366_v17  ;;  %v1101_v17 = vld [vmem:[%s6037_s3 + $0x40] sm:$0xff] }
 0x185   : > { %1195 = vadd.xlane.f32.xlu1 %v1144_v14  ;;  %v6213_v22 = vpop.f32.mrb[10].mxu0  ;;  %v1102_v14 = vld [vmem:[%s6037_s3 + $0x48] sm:$0xff]  ;;  %v1133_v11 = vmul.f32 %v1101_v17, %v6207_v18 }
 0x186   : > { %v6215_v23 = vpop.f32.mrb[10].mxu1  ;;  %v6217_v26 = vpop.f32.mrb[11].mxu0  ;;  %v1134_v8 = vmul.f32 %v6203_v15, %v1102_v14  ;;  %v1332_v14 = vld [vmem:[%s6039_s25 + $0x70] sm:$0xff] }
 0x187   : > { %v6219_v27 = vpop.f32.mrb[11].mxu1  ;;  %v1377_v56 = vadd.f32 %v6215_v23, %v1345_v52 }
 0x188   : > { %1193 = vadd.xlane.f32.xlu0 %v1143_v24  ;;  %v1118_v24 = vld [vmem:[%s6037_s3 + $0xc8] sm:$0xff]  ;;  %v1376_v57 = vadd.f32 %v1344_v53, %v6219_v27 }
 0x189   : > { %1388 = vmax.xlane.f32.xlu1 %v1353_v25  ;;  %v6223_v30 = vpop.f32.mrb[12].mxu0  ;;  %v1117_v25 = vld [vmem:[%s6037_s3 + $0xc0] sm:$0xff]  ;;  %v1150_v28 = vmul.f32 %v6205_v16, %v1118_v24  ;;  %v1078_v24 = vld [vmem:[#allocation3 + $0x88] sm:$0xff] }
 0x18a   : > { %v6225_v31 = vpop.f32.mrb[12].mxu1  ;;  %v6227_v34 = vpop.f32.mrb[13].mxu0  ;;  %v1149_v9 = vmul.f32 %v1117_v25, %v6209_v19  ;;  %v1062_v25 = vld [vmem:[#allocation3 + $0x8] sm:$0xff] }
 0x18b   : > { %v6229_v35 = vpop.f32.mrb[13].mxu1  ;;  %v1379_v5 = vadd.f32 %v6225_v31, %v1347_v1 }
 0x18c   : > { %1386 = vmax.xlane.f32.xlu0 %v1352_v33  ;;  %v1358_v33 = vadd.f32 %v1326_v12, %v6207_v18  ;;  %v1135_v18 = vmul.f32 %v1103_v39, %v6217_v26  ;;  %v1378_v4 = vadd.f32 %v1346_v2, %v6229_v35 }
 0x18d   : > { %1420 = vmax.xlane.f32.xlu1 %v1369_v32  ;;  %v6235_v40 = vpop.f32.mrb[14].mxu0  ;;  %v1359_v32 = vadd.f32 %v6203_v15, %v1327_v29  ;;  %v1136_v15 = vmul.f32 %v6213_v22, %v1104_v38 }
 0x18e   : > { %v6237_v41 = vpop.f32.mrb[14].mxu1  ;;  %v6239_v44 = vpop.f32.mrb[15].mxu0 }
 0x18f   : > { %v6241_v45 = vpop.f32.mrb[15].mxu1 }
 0x190   : > { %1418 = vmax.xlane.f32.xlu0 %v1368_v42  ;;  %v1375_v42 = vadd.f32 %v6205_v16, %v1343_v36 }
 0x191   : > { %1161 = vadd.xlane.f32.xlu1 %v1127_v43  ;;  %v1374_v43 = vadd.f32 %v1342_v37, %v6209_v19  ;;  %v1328_v19 = vld [vmem:[%s6039_s25 + $0x50] sm:$0xff]  ;;  %v1077_v37 = vld [vmem:[#allocation3 + $0x80] sm:$0xff] }
 0x194   : > { %1165 = vadd.xlane.f32.xlu0 %v1129_v47  ;;  %v1119_v47 = vld [vmem:[%s6037_s3 + $0xd0] sm:$0xff] }
 0x195   : > { %1167 = vadd.xlane.f32.xlu1 %v1130_v46  ;;  %v1120_v46 = vld [vmem:[%s6037_s3 + $0xd8] sm:$0xff]  ;;  %v1151_v16 = vmul.f32 %v1119_v47, %v6219_v27  ;;  %v1330_v27 = vld [vmem:[%s6039_s25 + $0x60] sm:$0xff] }
 0x196   : > { %v1152_v48 = vmul.f32 %v6215_v23, %v1120_v46  ;;  %v1153_v23 = vmul.f32 %v1121_v59, %v6229_v35  ;;  %v1364_v35 = vadd.f32 %v1332_v14, %v6239_v44  ;;  %v1288_v59 = vld [vmem:[#allocation2 + $0x10] sm:$0xff] }
 0x198   : > { %1197 = vadd.xlane.f32.xlu0 %v1145_v51  ;;  %v1360_v51 = vadd.f32 %v1328_v19, %v6217_v26  ;;  %v1080_v19 = vld [vmem:[#allocation3 + $0x98] sm:$0xff] }
 0x199   : > { %1199 = vadd.xlane.f32.xlu1 %v1146_v50  ;;  %v1361_v50 = vadd.f32 %v6213_v22, %v1329_v49  ;;  %v1302_v49 = vld [vmem:[#allocation2 + $0x80] sm:$0xff] }
 0x19c   : > { %1390 = vmax.xlane.f32.xlu0 %v1354_v55  ;;  %v1105_v55 = vld [vmem:[%s6037_s3 + $0x60] sm:$0xff] }
 0x19d   : > { %1392 = vmax.xlane.f32.xlu1 %v1355_v54  ;;  %v1106_v54 = vld [vmem:[%s6037_s3 + $0x68] sm:$0xff]  ;;  %v1137_v26 = vmul.f32 %v1105_v55, %v6227_v34  ;;  %v1289_v55 = vld [vmem:[#allocation2 + $0x18] sm:$0xff] }
 0x19e   : > { %v1138_v22 = vmul.f32 %v6223_v30, %v1106_v54  ;;  %v1079_v54 = vld [vmem:[#allocation3 + $0x90] sm:$0xff] }
 0x1a0   : > { %1422 = vmax.xlane.f32.xlu0 %v1370_v61  ;;  %v1331_v61 = vld [vmem:[%s6039_s25 + $0x68] sm:$0xff] }
 0x1a1   : > { %1424 = vmax.xlane.f32.xlu1 %v1371_v60  ;;  %v1154_v60 = vmul.f32 %v6225_v31, %v1122_v58  ;;  %v1333_v31 = vld [vmem:[%s6039_s25 + $0x78] sm:$0xff] }
 0x1a2   : > { %v1365_v17 = vadd.f32 %v6235_v40, %v1333_v31  ;;  %v1305_v58 = vld [vmem:[#allocation2 + $0x98] sm:$0xff] }
 0x1a4   : > { %1169 = vadd.xlane.f32.xlu0 %v1131_v63  ;;  %v1362_v63 = vadd.f32 %v1330_v27, %v6227_v34 }
 0x1a5   : > { %1171 = vadd.xlane.f32.xlu1 %v1132_v62  ;;  %v1363_v62 = vadd.f32 %v6223_v30, %v1331_v61 }
 0x1a8   : > { %1201 = vadd.xlane.f32.xlu0 %v1147_v0  ;;  %v1108_v0 = vld [vmem:[%s6037_s3 + $0x78] sm:$0xff] }
 0x1a9   : > { %1203 = vadd.xlane.f32.xlu1 %v1148_v3  ;;  %v1107_v3 = vld [vmem:[%s6037_s3 + $0x70] sm:$0xff]  ;;  %v1140_v34 = vmul.f32 %v6235_v40, %v1108_v0 }
 0x1aa   : > { %v1139_v30 = vmul.f32 %v1107_v3, %v6239_v44  ;;  %v1287_v44 = vld [vmem:[#allocation2 + $0x8] sm:$0xff] }
 0x1ac   : > { %1394 = vmax.xlane.f32.xlu0 %v1356_v7  ;;  %v1124_v7 = vld [vmem:[%s6037_s3 + $0xf8] sm:$0xff] }
 0x1ad   : > { %1396 = vmax.xlane.f32.xlu1 %v1357_v6  ;;  %v1123_v6 = vld [vmem:[%s6037_s3 + $0xf0] sm:$0xff]  ;;  %v1156_v13 = vmul.f32 %v6237_v41, %v1124_v7 }
 0x1ae   : > { %v1155_v10 = vmul.f32 %v1123_v6, %v6241_v45 }
 0x1b0   : > { %1426 = vmax.xlane.f32.xlu0 %v1372_v21  ;;  %v1349_v21 = vld [vmem:[%s6039_s25 + $0xf8] sm:$0xff] }
 0x1b1   : > { %1428 = vmax.xlane.f32.xlu1 %v1373_v20  ;;  %v1348_v20 = vld [vmem:[%s6039_s25 + $0xf0] sm:$0xff] }
 0x1b4   : > { %1173 = vadd.xlane.f32.xlu0 %v1133_v11  ;;  %v1381_v11 = vadd.f32 %v6237_v41, %v1349_v21  ;;  %v1303_v41 = vld [vmem:[#allocation2 + $0x88] sm:$0xff]  ;;  %v1290_v21 = vld [vmem:[#allocation2 + $0x20] sm:$0xff] }
 0x1b5   : > { %1175 = vadd.xlane.f32.xlu1 %v1134_v8  ;;  %v1380_v8 = vadd.f32 %v1348_v20, %v6241_v45  ;;  %v1291_v20 = vld [vmem:[#allocation2 + $0x28] sm:$0xff] }
 0x1b8   : > { %1205 = vadd.xlane.f32.xlu0 %v1149_v9 }
 0x1b9   : > { %1207 = vadd.xlane.f32.xlu1 %v1150_v28 }
 0x1bc   : > { %1398 = vmax.xlane.f32.xlu0 %v1358_v33 }
 0x1bd   : > { %1400 = vmax.xlane.f32.xlu1 %v1359_v32  ;;  %v1061_v32 = vld [vmem:[#allocation3] sm:$0xff] }
 0x1c0   : > { %1430 = vmax.xlane.f32.xlu0 %v1374_v43 }
 0x1c1   : > { %1432 = vmax.xlane.f32.xlu1 %v1375_v42 }
 0x1c4   : > { %1177 = vadd.xlane.f32.xlu0 %v1135_v18  ;;  %v1064_v18 = vld [vmem:[#allocation3 + $0x18] sm:$0xff] }
 0x1c5   : > { %1179 = vadd.xlane.f32.xlu1 %v1136_v15  ;;  %v1286_v15 = vld [vmem:[#allocation2] sm:$0xff] }
 0x1c8   : > { %1209 = vadd.xlane.f32.xlu0 %v1151_v16 }
 0x1c9   : > { %1211 = vadd.xlane.f32.xlu1 %v1152_v48 }
 0x1cc   : > { %1402 = vmax.xlane.f32.xlu0 %v1360_v51 }
 0x1cd   : > { %1404 = vmax.xlane.f32.xlu1 %v1361_v50 }
 0x1d0   : > { %1434 = vmax.xlane.f32.xlu0 %v1376_v57 }
 0x1d1   : > { %1436 = vmax.xlane.f32.xlu1 %v1377_v56 }
 0x1d4   : > { %1181 = vadd.xlane.f32.xlu0 %v1137_v26 }
 0x1d5   : > { %1183 = vadd.xlane.f32.xlu1 %v1138_v22 }
 0x1d8   : > { %1213 = vadd.xlane.f32.xlu0 %v1153_v23 }
 0x1d9   : > { %1215 = vadd.xlane.f32.xlu1 %v1154_v60 }
 0x1dc   : > { %1406 = vmax.xlane.f32.xlu0 %v1362_v63  ;;  %v1063_v63 = vld [vmem:[#allocation3 + $0x10] sm:$0xff] }
 0x1dd   : > { %1408 = vmax.xlane.f32.xlu1 %v1363_v62  ;;  %v1304_v62 = vld [vmem:[#allocation2 + $0x90] sm:$0xff] }
 0x1e0   : > { %1438 = vmax.xlane.f32.xlu0 %v1378_v4  ;;  %v1065_v4 = vld [vmem:[#allocation3 + $0x20] sm:$0xff] }
 0x1e1   : > { %1440 = vmax.xlane.f32.xlu1 %v1379_v5  ;;  %v1066_v5 = vld [vmem:[#allocation3 + $0x28] sm:$0xff] }
 0x1e4   : > { %1185 = vadd.xlane.f32.xlu0 %v1139_v30 }
 0x1e5   : > { %1187 = vadd.xlane.f32.xlu1 %v1140_v34 }
 0x1e8   : > { %1217 = vadd.xlane.f32.xlu0 %v1155_v10  ;;  %v1082_v10 = vld [vmem:[#allocation3 + $0xa8] sm:$0xff] }
 0x1e9   : > { %1219 = vadd.xlane.f32.xlu1 %v1156_v13  ;;  %v1081_v13 = vld [vmem:[#allocation3 + $0xa0] sm:$0xff] }
 0x1ec   : > { %1410 = vmax.xlane.f32.xlu0 %v1364_v35 }
 0x1ed   : > { %1412 = vmax.xlane.f32.xlu1 %v1365_v17 }
 0x1f0   : > { %1442 = vmax.xlane.f32.xlu0 %v1380_v8 }
 0x1f1   : > { %1444 = vmax.xlane.f32.xlu1 %v1381_v11 }
 0x201   : > { %v1160_v9 = vpop.xlane.xlu0 %1159 }
 0x202   : > { %v1192_v28 = vpop.xlane.xlu1 %1191  ;;  %v1222_v12 = vadd.f32 %v1160_v9, %v1062_v25  ;;  %v1306_v9 = vld [vmem:[#allocation2 + $0xa0] sm:$0xff] }
 0x203   : > { %v1238_v29 = vadd.f32 %v1192_v28, %v1078_v24  ;;  %v1307_v28 = vld [vmem:[#allocation2 + $0xa8] sm:$0xff] }
 0x204   : > { %1255 = vst.msk [vmem:[#allocation3 + $0x8] sm:$0xff] %vm1253_vm2, %v1222_v12 }
 0x205   : > { %1271 = vst.msk [vmem:[#allocation3 + $0x88] sm:$0xff] %vm1253_vm2, %v1238_v29  ;;  %v1158_v33 = vpop.xlane.xlu0 %1157 }
 0x206   : > { %v1385_v40 = vpop.xlane.xlu1 %1384  ;;  %v1221_v36 = vadd.f32 %v1158_v33, %v1061_v32  ;;  %v1067_v33 = vld [vmem:[#allocation3 + $0x30] sm:$0xff] }
 0x207   : > { %v1447_v45 = vmax.f32 %v1287_v44, %v1385_v40  ;;  %v1068_v40 = vld [vmem:[#allocation3 + $0x38] sm:$0xff] }
 0x208   : > { %1254 = vst.msk [vmem:[#allocation3] sm:$0xff] %vm1253_vm2, %v1221_v36 }
 0x209   : > { %1479 = vst.msk [vmem:[#allocation2 + $0x8] sm:$0xff] %vm1253_vm2, %v1447_v45  ;;  %v1190_v39 = vpop.xlane.xlu0 %1189 }
 0x20a   : > { %v1417_v38 = vpop.xlane.xlu1 %1416  ;;  %v1237_v43 = vadd.f32 %v1190_v39, %v1077_v37  ;;  %v1083_v39 = vld [vmem:[#allocation3 + $0xb0] sm:$0xff] }
 0x20b   : > { %v1463_v42 = vmax.f32 %v1303_v41, %v1417_v38  ;;  %v1084_v38 = vld [vmem:[#allocation3 + $0xb8] sm:$0xff] }
 0x20c   : > { %1270 = vst.msk [vmem:[#allocation3 + $0x80] sm:$0xff] %vm1253_vm2, %v1237_v43 }
 0x20d   : > { %1495 = vst.msk [vmem:[#allocation2 + $0x88] sm:$0xff] %vm1253_vm2, %v1463_v42  ;;  %v1383_v46 = vpop.xlane.xlu0 %1382 }
 0x20e   : > { %v1164_v47 = vpop.xlane.xlu1 %1163  ;;  %v1446_v48 = vmax.f32 %v1286_v15, %v1383_v46  ;;  %v1293_v46 = vld [vmem:[#allocation2 + $0x38] sm:$0xff] }
 0x20f   : > { %v1224_v16 = vadd.f32 %v1164_v47, %v1064_v18  ;;  %v1292_v47 = vld [vmem:[#allocation2 + $0x30] sm:$0xff] }
 0x210   : > { %1478 = vst.msk [vmem:[#allocation2] sm:$0xff] %vm1253_vm2, %v1446_v48 }
 0x211   : > { %1257 = vst.msk [vmem:[#allocation3 + $0x18] sm:$0xff] %vm1253_vm2, %v1224_v16  ;;  %v1415_v50 = vpop.xlane.xlu0 %1414 }
 0x212   : > { %v1196_v51 = vpop.xlane.xlu1 %1195  ;;  %v1462_v52 = vmax.f32 %v1302_v49, %v1415_v50  ;;  %v1309_v50 = vld [vmem:[#allocation2 + $0xb8] sm:$0xff] }
 0x213   : > { %v1240_v53 = vadd.f32 %v1196_v51, %v1080_v19  ;;  %v1308_v51 = vld [vmem:[#allocation2 + $0xb0] sm:$0xff] }
 0x214   : > { %1494 = vst.msk [vmem:[#allocation2 + $0x80] sm:$0xff] %vm1253_vm2, %v1462_v52 }
 0x215   : > { %1273 = vst.msk [vmem:[#allocation3 + $0x98] sm:$0xff] %vm1253_vm2, %v1240_v53  ;;  %v1194_v56 = vpop.xlane.xlu0 %1193 }
 0x216   : > { %v1389_v57 = vpop.xlane.xlu1 %1388  ;;  %v1239_v22 = vadd.f32 %v1194_v56, %v1079_v54  ;;  %v1070_v56 = vld [vmem:[#allocation3 + $0x48] sm:$0xff] }
 0x217   : > { %v1449_v26 = vmax.f32 %v1289_v55, %v1389_v57  ;;  %v1069_v57 = vld [vmem:[#allocation3 + $0x40] sm:$0xff] }
 0x218   : > { %1272 = vst.msk [vmem:[#allocation3 + $0x90] sm:$0xff] %vm1253_vm2, %v1239_v22 }
 0x219   : > { %1481 = vst.msk [vmem:[#allocation2 + $0x18] sm:$0xff] %vm1253_vm2, %v1449_v26  ;;  %v1387_v23 = vpop.xlane.xlu0 %1386 }
 0x21a   : > { %v1421_v60 = vpop.xlane.xlu1 %1420  ;;  %v1448_v27 = vmax.f32 %v1288_v59, %v1387_v23  ;;  %v1085_v23 = vld [vmem:[#allocation3 + $0xc0] sm:$0xff] }
 0x21b   : > { %v1465_v61 = vmax.f32 %v1305_v58, %v1421_v60  ;;  %v1086_v60 = vld [vmem:[#allocation3 + $0xc8] sm:$0xff] }
 0x21c   : > { %1480 = vst.msk [vmem:[#allocation2 + $0x10] sm:$0xff] %vm1253_vm2, %v1448_v27 }
 0x21d   : > { %1497 = vst.msk [vmem:[#allocation2 + $0x98] sm:$0xff] %vm1253_vm2, %v1465_v61  ;;  %v1419_v1 = vpop.xlane.xlu0 %1418 }
 0x21e   : > { %v1162_v2 = vpop.xlane.xlu1 %1161  ;;  %v1464_v3 = vmax.f32 %v1304_v62, %v1419_v1  ;;  %v1295_v1 = vld [vmem:[#allocation2 + $0x48] sm:$0xff] }
 0x21f   : > { %v1223_v0 = vadd.f32 %v1162_v2, %v1063_v63  ;;  %v1294_v2 = vld [vmem:[#allocation2 + $0x40] sm:$0xff] }
 0x220   : > { %1496 = vst.msk [vmem:[#allocation2 + $0x90] sm:$0xff] %vm1253_vm2, %v1464_v3 }
 0x221   : > { %1256 = vst.msk [vmem:[#allocation3 + $0x10] sm:$0xff] %vm1253_vm2, %v1223_v0  ;;  %v1166_v34 = vpop.xlane.xlu0 %1165 }
 0x222   : > { %v1168_v30 = vpop.xlane.xlu1 %1167  ;;  %v1225_v7 = vadd.f32 %v1166_v34, %v1065_v4  ;;  %v1310_v34 = vld [vmem:[#allocation2 + $0xc0] sm:$0xff] }
 0x223   : > { %v1226_v6 = vadd.f32 %v1168_v30, %v1066_v5  ;;  %v1311_v30 = vld [vmem:[#allocation2 + $0xc8] sm:$0xff] }
 0x224   : > { %1258 = vst.msk [vmem:[#allocation3 + $0x20] sm:$0xff] %vm1253_vm2, %v1225_v7 }
 0x225   : > { %1259 = vst.msk [vmem:[#allocation3 + $0x28] sm:$0xff] %vm1253_vm2, %v1226_v6  ;;  %v1198_v31 = vpop.xlane.xlu0 %1197 }
 0x226   : > { %v1200_v14 = vpop.xlane.xlu1 %1199  ;;  %v1241_v17 = vadd.f32 %v1198_v31, %v1081_v13  ;;  %v1071_v31 = vld [vmem:[#allocation3 + $0x50] sm:$0xff] }
 0x227   : > { %v1242_v35 = vadd.f32 %v1200_v14, %v1082_v10  ;;  %v1072_v14 = vld [vmem:[#allocation3 + $0x58] sm:$0xff] }
 0x228   : > { %1274 = vst.msk [vmem:[#allocation3 + $0xa0] sm:$0xff] %vm1253_vm2, %v1241_v17 }
 0x229   : > { %1275 = vst.msk [vmem:[#allocation3 + $0xa8] sm:$0xff] %vm1253_vm2, %v1242_v35  ;;  %v1391_v11 = vpop.xlane.xlu0 %1390 }
 0x22a   : > { %v1393_v8 = vpop.xlane.xlu1 %1392  ;;  %v1450_v25 = vmax.f32 %v1290_v21, %v1391_v11  ;;  %v1087_v11 = vld [vmem:[#allocation3 + $0xd0] sm:$0xff] }
 0x22b   : > { %v1451_v24 = vmax.f32 %v1291_v20, %v1393_v8  ;;  %v1088_v8 = vld [vmem:[#allocation3 + $0xd8] sm:$0xff] }
 0x22c   : > { %1482 = vst.msk [vmem:[#allocation2 + $0x20] sm:$0xff] %vm1253_vm2, %v1450_v25 }
 0x22d   : > { %1483 = vst.msk [vmem:[#allocation2 + $0x28] sm:$0xff] %vm1253_vm2, %v1451_v24  ;;  %v1423_v12 = vpop.xlane.xlu0 %1422 }
 0x22e   : > { %v1425_v29 = vpop.xlane.xlu1 %1424  ;;  %v1466_v32 = vmax.f32 %v1306_v9, %v1423_v12  ;;  %v1296_v12 = vld [vmem:[#allocation2 + $0x50] sm:$0xff] }
 0x22f   : > { %v1467_v44 = vmax.f32 %v1307_v28, %v1425_v29  ;;  %v1297_v29 = vld [vmem:[#allocation2 + $0x58] sm:$0xff] }
 0x230   : > { %1498 = vst.msk [vmem:[#allocation2 + $0xa0] sm:$0xff] %vm1253_vm2, %v1466_v32 }
 0x231   : > { %1499 = vst.msk [vmem:[#allocation2 + $0xa8] sm:$0xff] %vm1253_vm2, %v1467_v44  ;;  %v1170_v36 = vpop.xlane.xlu0 %1169 }
 0x232   : > { %v1172_v45 = vpop.xlane.xlu1 %1171  ;;  %v1227_v37 = vadd.f32 %v1170_v36, %v1067_v33  ;;  %v1312_v36 = vld [vmem:[#allocation2 + $0xd0] sm:$0xff] }
 0x233   : > { %v1228_v41 = vadd.f32 %v1172_v45, %v1068_v40  ;;  %v1313_v45 = vld [vmem:[#allocation2 + $0xd8] sm:$0xff] }
 0x234   : > { %1260 = vst.msk [vmem:[#allocation3 + $0x30] sm:$0xff] %vm1253_vm2, %v1227_v37 }
 0x235   : > { %1261 = vst.msk [vmem:[#allocation3 + $0x38] sm:$0xff] %vm1253_vm2, %v1228_v41  ;;  %v1202_v43 = vpop.xlane.xlu0 %1201 }
 0x236   : > { %v1204_v42 = vpop.xlane.xlu1 %1203  ;;  %v1243_v18 = vadd.f32 %v1202_v43, %v1083_v39  ;;  %v1073_v43 = vld [vmem:[#allocation3 + $0x60] sm:$0xff] }
 0x237   : > { %v1244_v15 = vadd.f32 %v1204_v42, %v1084_v38  ;;  %v1074_v42 = vld [vmem:[#allocation3 + $0x68] sm:$0xff] }
 0x238   : > { %1276 = vst.msk [vmem:[#allocation3 + $0xb0] sm:$0xff] %vm1253_vm2, %v1243_v18 }
 0x239   : > { %1277 = vst.msk [vmem:[#allocation3 + $0xb8] sm:$0xff] %vm1253_vm2, %v1244_v15  ;;  %v1395_v16 = vpop.xlane.xlu0 %1394 }
 0x23a   : > { %v1397_v48 = vpop.xlane.xlu1 %1396  ;;  %v1452_v19 = vmax.f32 %v1292_v47, %v1395_v16  ;;  %v1089_v16 = vld [vmem:[#allocation3 + $0xe0] sm:$0xff] }
 0x23b   : > { %v1453_v49 = vmax.f32 %v1293_v46, %v1397_v48  ;;  %v1090_v48 = vld [vmem:[#allocation3 + $0xe8] sm:$0xff] }
 0x23c   : > { %1484 = vst.msk [vmem:[#allocation2 + $0x30] sm:$0xff] %vm1253_vm2, %v1452_v19 }
 0x23d   : > { %1485 = vst.msk [vmem:[#allocation2 + $0x38] sm:$0xff] %vm1253_vm2, %v1453_v49  ;;  %v1427_v53 = vpop.xlane.xlu0 %1426 }
 0x23e   : > { %v1429_v52 = vpop.xlane.xlu1 %1428  ;;  %v1468_v55 = vmax.f32 %v1308_v51, %v1427_v53  ;;  %v1298_v53 = vld [vmem:[#allocation2 + $0x60] sm:$0xff] }
 0x23f   : > { %v1469_v54 = vmax.f32 %v1309_v50, %v1429_v52  ;;  %v1299_v52 = vld [vmem:[#allocation2 + $0x68] sm:$0xff] }
 0x240   : > { %1500 = vst.msk [vmem:[#allocation2 + $0xb0] sm:$0xff] %vm1253_vm2, %v1468_v55 }
 0x241   : > { %1501 = vst.msk [vmem:[#allocation2 + $0xb8] sm:$0xff] %vm1253_vm2, %v1469_v54  ;;  %v1174_v26 = vpop.xlane.xlu0 %1173 }
 0x242   : > { %v1176_v22 = vpop.xlane.xlu1 %1175  ;;  %v1229_v59 = vadd.f32 %v1174_v26, %v1069_v57  ;;  %v1314_v26 = vld [vmem:[#allocation2 + $0xe0] sm:$0xff] }
 0x243   : > { %v1230_v58 = vadd.f32 %v1176_v22, %v1070_v56  ;;  %v1315_v22 = vld [vmem:[#allocation2 + $0xe8] sm:$0xff] }
 0x244   : > { %1262 = vst.msk [vmem:[#allocation3 + $0x40] sm:$0xff] %vm1253_vm2, %v1229_v59 }
 0x245   : > { %1263 = vst.msk [vmem:[#allocation3 + $0x48] sm:$0xff] %vm1253_vm2, %v1230_v58  ;;  %v1206_v27 = vpop.xlane.xlu0 %1205 }
 0x246   : > { %v1208_v61 = vpop.xlane.xlu1 %1207  ;;  %v1245_v63 = vadd.f32 %v1206_v27, %v1085_v23  ;;  %v1075_v27 = vld [vmem:[#allocation3 + $0x70] sm:$0xff] }
 0x247   : > { %v1246_v62 = vadd.f32 %v1208_v61, %v1086_v60  ;;  %v1076_v61 = vld [vmem:[#allocation3 + $0x78] sm:$0xff] }
 0x248   : > { %1278 = vst.msk [vmem:[#allocation3 + $0xc0] sm:$0xff] %vm1253_vm2, %v1245_v63 }
 0x249   : > { %1279 = vst.msk [vmem:[#allocation3 + $0xc8] sm:$0xff] %vm1253_vm2, %v1246_v62  ;;  %v1399_v0 = vpop.xlane.xlu0 %1398 }
 0x24a   : > { %v1401_v3 = vpop.xlane.xlu1 %1400  ;;  %v1454_v4 = vmax.f32 %v1294_v2, %v1399_v0  ;;  %v1091_v0 = vld [vmem:[#allocation3 + $0xf0] sm:$0xff] }
 0x24b   : > { %v1455_v5 = vmax.f32 %v1295_v1, %v1401_v3  ;;  %v1092_v3 = vld [vmem:[#allocation3 + $0xf8] sm:$0xff] }
 0x24c   : > { %1486 = vst.msk [vmem:[#allocation2 + $0x40] sm:$0xff] %vm1253_vm2, %v1454_v4 }
 0x24d   : > { %1487 = vst.msk [vmem:[#allocation2 + $0x48] sm:$0xff] %vm1253_vm2, %v1455_v5  ;;  %v1431_v7 = vpop.xlane.xlu0 %1430 }
 0x24e   : > { %v1433_v6 = vpop.xlane.xlu1 %1432  ;;  %v1470_v13 = vmax.f32 %v1310_v34, %v1431_v7  ;;  %v1300_v7 = vld [vmem:[#allocation2 + $0x70] sm:$0xff] }
 0x24f   : > { %v1471_v10 = vmax.f32 %v1311_v30, %v1433_v6  ;;  %v1301_v6 = vld [vmem:[#allocation2 + $0x78] sm:$0xff] }
 0x250   : > { %1502 = vst.msk [vmem:[#allocation2 + $0xc0] sm:$0xff] %vm1253_vm2, %v1470_v13 }
 0x251   : > { %1503 = vst.msk [vmem:[#allocation2 + $0xc8] sm:$0xff] %vm1253_vm2, %v1471_v10  ;;  %v1178_v17 = vpop.xlane.xlu0 %1177 }
 0x252   : > { %v1180_v35 = vpop.xlane.xlu1 %1179  ;;  %v1231_v21 = vadd.f32 %v1178_v17, %v1071_v31  ;;  %v1316_v17 = vld [vmem:[#allocation2 + $0xf0] sm:$0xff] }
 0x253   : > { %v1232_v20 = vadd.f32 %v1180_v35, %v1072_v14  ;;  %v1317_v35 = vld [vmem:[#allocation2 + $0xf8] sm:$0xff] }
 0x254   : > { %1264 = vst.msk [vmem:[#allocation3 + $0x50] sm:$0xff] %vm1253_vm2, %v1231_v21 }
 0x255   : > { %1265 = vst.msk [vmem:[#allocation3 + $0x58] sm:$0xff] %vm1253_vm2, %v1232_v20  ;;  %v1210_v25 = vpop.xlane.xlu0 %1209 }
 0x256   : > { %v1212_v24 = vpop.xlane.xlu1 %1211  ;;  %v1247_v9 = vadd.f32 %v1210_v25, %v1087_v11  ;;  %v1548_v25 = vld [vmem:[#allocation3 + $0x10] sm:$0xff] (!%p5309_p8) }
 0x257   : > { %v1248_v28 = vadd.f32 %v1212_v24, %v1088_v8  ;;  %v1516_v24 = vld [vmem:[#allocation2 + $0x10] sm:$0xff] (!%p5309_p8) }
 0x258   : > { %1280 = vst.msk [vmem:[#allocation3 + $0xd0] sm:$0xff] %vm1253_vm2, %v1247_v9  ;;  %v1514_v9 = vld [vmem:[#allocation2] sm:$0xff] (!%p5309_p8) }
 0x259   : > { %1281 = vst.msk [vmem:[#allocation3 + $0xd8] sm:$0xff] %vm1253_vm2, %v1248_v28  ;;  %v1403_v32 = vpop.xlane.xlu0 %1402  ;;  %v1678_v28 = vlaneseq (!%p5309_p8) }
 0x25a   : > { %v1405_v44 = vpop.xlane.xlu1 %1404  ;;  %v1456_v33 = vmax.f32 %v1296_v12, %v1403_v32  ;;  %v1580_v12 = vmul.f32 (!%p5309_p8), 0.00390625, %v1548_v25 }
 0x25b   : > { %v1457_v40 = vmax.f32 %v1297_v29, %v1405_v44  ;;  %v5724_v29 = vmov (!%p5309_p8), 0   ;;  %v5725_v44 = vmov (!%p5309_p8), 1966171168  }
 0x25c   : > { %1488 = vst.msk [vmem:[#allocation2 + $0x50] sm:$0xff] %vm1253_vm2, %v1456_v33  ;;  %5593 = vset.pattern.permute.xlu1 (!%p5309_p8), %v5724_v29  ;;  %5592 = vset.pattern.permute.xlu0 (!%p5309_p8), %v5724_v29  ;;  %v1676_v32 = vunpack.c.l.s4 (!%p5309_p8), %v5725_v44  ;;  %v1517_v33 = vld [vmem:[#allocation2 + $0x18] sm:$0xff] (!%p5309_p8) }
 0x25d   : > { %1489 = vst.msk [vmem:[#allocation2 + $0x58] sm:$0xff] %vm1253_vm2, %v1457_v40  ;;  %v1435_v37 = vpop.xlane.xlu0 %1434  ;;  %v1546_v40 = vld [vmem:[#allocation3] sm:$0xff] (!%p5309_p8) }
 0x25e   : > { %v1437_v41 = vpop.xlane.xlu1 %1436  ;;  %v1472_v39 = vmax.f32 %v1312_v36, %v1435_v37  ;;  %v6403_v36 = vshrl.u32 (!%p5309_p8), %v1678_v28, 7 }
 0x25f   : > { %v1473_v38 = vmax.f32 %v1313_v45, %v1437_v41  ;;  %v1549_v45 = vld [vmem:[#allocation3 + $0x18] sm:$0xff] (!%p5309_p8)  ;;  %v1578_v41 = vmul.f32 (!%p5309_p8), 0.00390625, %v1546_v40 }
 0x260   : > { %1504 = vst.msk [vmem:[#allocation2 + $0xd0] sm:$0xff] %vm1253_vm2, %v1472_v39  ;;  %v1581_v37 = vmul.f32 (!%p5309_p8), 0.00390625, %v1549_v45  ;;  %v1547_v39 = vld [vmem:[#allocation3 + $0x8] sm:$0xff] (!%p5309_p8) }
 0x261   : > { %1505 = vst.msk [vmem:[#allocation2 + $0xd8] sm:$0xff] %vm1253_vm2, %v1473_v38  ;;  %v1182_v18 = vpop.xlane.xlu0 %1181  ;;  %v1515_v38 = vld [vmem:[#allocation2 + $0x8] sm:$0xff] (!%p5309_p8) }
 0x262   : > { %v1184_v15 = vpop.xlane.xlu1 %1183  ;;  %v1233_v47 = vadd.f32 %v1182_v18, %v1073_v43  ;;  %v1612_v43 = vsub.f32 (!%p5309_p8), %v1516_v24, %v1580_v12  ;;  %v1579_v18 = vmul.f32 (!%p5309_p8), 0.00390625, %v1547_v39 }
 0x263   : > { %v1234_v46 = vadd.f32 %v1184_v15, %v1074_v42  ;;  %v1519_v42 = vld [vmem:[#allocation2 + $0x28] sm:$0xff] (!%p5309_p8)  ;;  %v1677_v15 = vunpack.c.0.s8 (!%p5309_p8), %v1676_v32 }
 0x264   : > { %1266 = vst.msk [vmem:[#allocation3 + $0x60] sm:$0xff] %vm1253_vm2, %v1233_v47  ;;  %v1518_v47 = vld [vmem:[#allocation2 + $0x20] sm:$0xff] (!%p5309_p8) }
 0x265   : > { %1267 = vst.msk [vmem:[#allocation3 + $0x68] sm:$0xff] %vm1253_vm2, %v1234_v46  ;;  %v1214_v19 = vpop.xlane.xlu0 %1213  ;;  %v1551_v46 = vld [vmem:[#allocation3 + $0x28] sm:$0xff] (!%p5309_p8) }
 0x266   : > { %v1216_v49 = vpop.xlane.xlu1 %1215  ;;  %v1249_v51 = vadd.f32 %v1214_v19, %v1089_v16  ;;  %v1610_v16 = vsub.f32 (!%p5309_p8), %v1514_v9, %v1578_v41  ;;  %v1583_v19 = vmul.f32 (!%p5309_p8), 0.00390625, %v1551_v46 }
 0x267   : > { %v1250_v50 = vadd.f32 %v1216_v49, %v1090_v48  ;;  %v1550_v48 = vld [vmem:[#allocation3 + $0x20] sm:$0xff] (!%p5309_p8)  ;;  %v1613_v49 = vsub.f32 (!%p5309_p8), %v1517_v33, %v1581_v37 }
 0x268   : > { %1282 = vst.msk [vmem:[#allocation3 + $0xe0] sm:$0xff] %vm1253_vm2, %v1249_v51  ;;  %v1553_v51 = vld [vmem:[#allocation3 + $0x38] sm:$0xff] (!%p5309_p8) }
 0x269   : > { %1283 = vst.msk [vmem:[#allocation3 + $0xe8] sm:$0xff] %vm1253_vm2, %v1250_v50  ;;  %v1407_v55 = vpop.xlane.xlu0 %1406  ;;  %v1582_v50 = vmul.f32 (!%p5309_p8), 0.00390625, %v1550_v48 }
 0x26a   : > { %v1409_v54 = vpop.xlane.xlu1 %1408  ;;  %v1458_v57 = vmax.f32 %v1298_v53, %v1407_v55  ;;  %v1772_v53 = vcombine.high (!%p5309_p8), %v1612_v43, %v1612_v43  ;;  %v6408_v55 = vmul.f32 (!%p5309_p8), 0.00390625, %v1553_v51 }
 0x26b   : > { %v1459_v56 = vmax.f32 %v1299_v52, %v1409_v54  ;;  %v6406_v52 = vsub.s32 (!%p5309_p8), %v1677_v15, %v6403_v36  ;;  %v1611_v54 = vsub.f32 (!%p5309_p8), %v1515_v38, %v1579_v18 }
 0x26c   : > { %1490 = vst.msk [vmem:[#allocation2 + $0x60] sm:$0xff] %vm1253_vm2, %v1458_v57  ;;  %v1821_v57 = vcombine.high (!%p5309_p8), %v1613_v49, %v1613_v49 }
 0x26d   : > { %1491 = vst.msk [vmem:[#allocation2 + $0x68] sm:$0xff] %vm1253_vm2, %v1459_v56  ;;  %v1439_v59 = vpop.xlane.xlu0 %1438  ;;  %v1674_v56 = vcombine.high (!%p5309_p8), %v1610_v16, %v1610_v16 }
 0x26e   : > { %v1441_v58 = vpop.xlane.xlu1 %1440  ;;  %v1474_v23 = vmax.f32 %v1314_v26, %v1439_v59  ;;  %v6412_v26 = vsub.f32 (!%p5309_p8), %v1518_v47, %v1582_v50  ;;  %v1786_v59 = vrot.slane (!%p5309_p8), %v1772_v53, %v6406_v52 }
 0x26f   : > { %v1475_v60 = vmax.f32 %v1315_v22, %v1441_v58  ;;  %v6410_v22 = vsub.f32 (!%p5309_p8), %v1519_v42, %v1583_v19  ;;  %v1779_v58 = vrot.slane (!%p5309_p8), %v1612_v43, %v6406_v52 }
 0x270   : > { %1506 = vst.msk [vmem:[#allocation2 + $0xe0] sm:$0xff] %vm1253_vm2, %v1474_v23  ;;  %v1828_v23 = vrot.slane (!%p5309_p8), %v1613_v49, %v6406_v52 }
 0x271   : > { %1507 = vst.msk [vmem:[#allocation2 + $0xe8] sm:$0xff] %vm1253_vm2, %v1475_v60  ;;  %v1186_v63 = vpop.xlane.xlu0 %1185  ;;  %v1681_v60 = vrot.slane (!%p5309_p8), %v1610_v16, %v6406_v52 }
 0x272   : > { %v1188_v62 = vpop.xlane.xlu1 %1187  ;;  %v1235_v2 = vadd.f32 %v1186_v63, %v1075_v27  ;;  %v1835_v27 = vrot.slane (!%p5309_p8), %v1821_v57, %v6406_v52  ;;  %v1730_v63 = vrot.slane (!%p5309_p8), %v1611_v54, %v6406_v52 }
 0x273   : > { %v1236_v1 = vadd.f32 %v1188_v62, %v1076_v61  ;;  %v1688_v61 = vrot.slane (!%p5309_p8), %v1674_v56, %v6406_v52  ;;  %v1723_v62 = vcombine.high (!%p5309_p8), %v1611_v54, %v1611_v54 }
 0x274   : > { %1268 = vst.msk [vmem:[#allocation3 + $0x70] sm:$0xff] %vm1253_vm2, %v1235_v2  ;;  %v1788_v2 = vcombine.high (!%p5309_p8), %v1786_v59, %v1786_v59  ;;  %v1738_v47 = vcombine.high (!%p5309_p8), %v1730_v63, %v1730_v63 }
 0x275   : > { %1269 = vst.msk [vmem:[#allocation3 + $0x78] sm:$0xff] %vm1253_vm2, %v1236_v1  ;;  %v1218_v4 = vpop.xlane.xlu0 %1217  ;;  %v1787_v1 = vcombine.high (!%p5309_p8), %v1779_v58, %v1779_v58  ;;  %v1737_v46 = vrot.slane (!%p5309_p8), %v1723_v62, %v6406_v52 }
 0x276   : > { %v1220_v5 = vpop.xlane.xlu1 %1219  ;;  %v1251_v34 = vadd.f32 %v1218_v4, %v1091_v0  ;;  %v1802_v0 = vrot.slane (!%p5309_p8), %v1786_v59, %v6406_v52  ;;  %v1690_v4 = vcombine.high (!%p5309_p8), %v1688_v61, %v1688_v61 }
 0x277   : > { %v1252_v30 = vadd.f32 %v1220_v5, %v1092_v3  ;;  %v1795_v3 = vrot.slane (!%p5309_p8), %v1779_v58, %v6406_v52  ;;  %v1689_v5 = vcombine.high (!%p5309_p8), %v1681_v60, %v1681_v60  ;;  %v1739_v59 = vcombine.high (!%p5309_p8), %v1737_v46, %v1737_v46 }
 0x278   : > { %1284 = vst.msk [vmem:[#allocation3 + $0xf0] sm:$0xff] %vm1253_vm2, %v1251_v34  ;;  %v1704_v34 = vrot.slane (!%p5309_p8), %v1688_v61, %v6406_v52 }
 0x279   : > { %1285 = vst.msk [vmem:[#allocation3 + $0xf8] sm:$0xff] %vm1253_vm2, %v1252_v30  ;;  %v1411_v13 = vpop.xlane.xlu0 %1410  ;;  %v1697_v30 = vrot.slane (!%p5309_p8), %v1681_v60, %v6406_v52 }
 0x27a   : > { %v1413_v10 = vpop.xlane.xlu1 %1412  ;;  %v1460_v31 = vmax.f32 %v1300_v7, %v1411_v13  ;;  %v1816_v7 = vrot.slane (!%p5309_p8), %v1788_v2, %v6406_v52  ;;  %v1837_v13 = vcombine.high (!%p5309_p8), %v1835_v27, %v1835_v27  ;;  %v1760_v2 = vrot.slane (!%p5309_p8), %v1738_v47, %v6406_v52 }
 0x27b   : > { %v1461_v14 = vmax.f32 %v1301_v6, %v1413_v10  ;;  %1513 = sbr.rel (%p5309_p8) target bundleno = 965 (0x3c5), region = 158  ;;  %v1809_v6 = vrot.slane (!%p5309_p8), %v1787_v1, %v6406_v52  ;;  %v1836_v10 = vcombine.high (!%p5309_p8), %v1828_v23, %v1828_v23  ;;  %v1753_v1 = vrot.slane (!%p5309_p8), %v1737_v46, %v6406_v52 }
 0x27c   : > { %1492 = vst.msk [vmem:[#allocation2 + $0x70] sm:$0xff] %vm1253_vm2, %v1460_v31  ;;  %v1718_v31 = vrot.slane (!%p5309_p8), %v1690_v4, %v6406_v52  ;;  %v1865_v43 = vrot.slane (!%p5309_p8), %v1837_v13, %v6406_v52  ;;  %v1926_v4 = vrot.slane (!%p5309_p8), %v6410_v22, %v6406_v52 }
 0x27d   : > { %1493 = vst.msk [vmem:[#allocation2 + $0x78] sm:$0xff] %vm1253_vm2, %v1461_v14  ;;  %v1443_v21 = vpop.xlane.xlu0 %1442  ;;  %v1711_v14 = vrot.slane (!%p5309_p8), %v1689_v5, %v6406_v52  ;;  %v1858_v42 = vrot.slane (!%p5309_p8), %v1836_v10, %v6406_v52  ;;  %v1919_v5 = vcombine.high (!%p5309_p8), %v6410_v22, %v6410_v22 }
 0x27e   : > { %v1445_v20 = vpop.xlane.xlu1 %1444  ;;  %v1476_v11 = vmax.f32 %v1316_v17, %v1443_v21  ;;  %v1851_v17 = vrot.slane (!%p5309_p8), %v1835_v27, %v6406_v52  ;;  %v5314_v21 = vcombine.high (!%p5309_p8), %v1795_v3, %v1809_v6  ;;  %v3244_v9 = vcombine.low (!%p5309_p8), %v1704_v34, %v1718_v31 }
 0x27f   : > { %v1477_v8 = vmax.f32 %v1317_v35, %v1445_v20  ;;  %v1844_v35 = vrot.slane (!%p5309_p8), %v1828_v23, %v6406_v52  ;;  %v3340_v20 = vcombine.low (!%p5309_p8), %v1795_v3, %v1809_v6  ;;  %v3242_v24 = vcombine.low (!%p5309_p8), %v1697_v30, %v1711_v14 }
 0x280   : > { %1508 = vst.msk [vmem:[#allocation2 + $0xf0] sm:$0xff] %vm1253_vm2, %v1476_v11  ;;  %v5315_v11 = vcombine.high (!%p5309_p8), %v1802_v0, %v1816_v7  ;;  %v5310_v25 = vcombine.high (!%p5309_p8), %v1697_v30, %v1711_v14  ;;  %v5311_v29 = vcombine.high (!%p5309_p8), %v1704_v34, %v1718_v31  ;;  %v3357_v44 = vrot.slane (!%p5309_p8), %v5314_v21, %v6406_v52  ;;  %v1521_v21 = vld [vmem:[#allocation2 + $0x38] sm:$0xff] (!%p5309_p8) }
 0x281   : > { %1509 = vst.msk [vmem:[#allocation2 + $0xf8] sm:$0xff] %vm1253_vm2, %v1477_v8  ;;  %v3342_v8 = vcombine.low (!%p5309_p8), %v1802_v0, %v1816_v7  ;;  %v3350_v12 = vrot.slane (!%p5309_p8), %v3340_v20, %v6406_v52  ;;  %v3252_v33 = vrot.slane (!%p5309_p8), %v3242_v24, %v6406_v52  ;;  %v3266_v41 = vrot.slane (!%p5309_p8), %v3244_v9, %v6406_v52 }
 0x282   : > { %v3371_v40 = vrot.slane %v5315_v11, %v6406_v52  ;;  %v3259_v45 = vrot.slane %v5310_v25, %v6406_v52  ;;  %v3273_v37 = vrot.slane %v5311_v29, %v6406_v52  ;;  %v3389_v49 = vcombine.low %v1844_v35, %v1858_v42 }
 0x283   : > { %v3364_v32 = vrot.slane %v3342_v8, %v6406_v52  ;;  %v3372_v38 = vcombine.low %v3350_v12, %v3357_v44  ;;  %v5316_v19 = vcombine.high %v1844_v35, %v1858_v42  ;;  %v3391_v53 = vcombine.low %v1851_v17, %v1865_v43  ;;  %v1552_v8 = vld [vmem:[#allocation3 + $0x30] sm:$0xff] }
 0x284   : > { %v3274_v15 = vcombine.low %v3252_v33, %v3259_v45  ;;  %v3275_v18 = vcombine.low %v3266_v41, %v3273_v37  ;;  %v5317_v54 = vcombine.high %v1851_v17, %v1865_v43  ;;  %v3399_v57 = vrot.slane %v3389_v49, %v6406_v52 }
 0x285   : > { %v3373_v39 = vcombine.low %v3364_v32, %v3371_v40  ;;  %v3380_v48 = vrot.slane %v3372_v38, %v6406_v52  ;;  %v3406_v58 = vrot.slane %v5316_v19, %v6406_v52  ;;  %v3413_v23 = vrot.slane %v3391_v53, %v6406_v52 }
 0x286   : > { %v3282_v50 = vrot.slane %v3274_v15, %v6406_v52  ;;  %v3289_v51 = vrot.slane %v3275_v18, %v6406_v52  ;;  %v3420_v61 = vrot.slane %v5317_v54, %v6406_v52  ;;  %v1746_v27 = vrot.slane %v1730_v63, %v6406_v52 }
 0x287   : > { %v3387_v16 = vrot.slane %v3373_v39, %v6406_v52  ;;  %v3421_v62 = vcombine.low %v3399_v57, %v3406_v58  ;;  %v1767_v3 = vrot.slane %v1739_v59, %v6406_v52  ;;  %v1870_v30 = vcombine.high %v6412_v26, %v6412_v26 }
 0x288   : > { %v3290_v60 = vcombine.low %v3282_v50, %v3289_v51  ;;  %v3422_v0 = vcombine.low %v3413_v23, %v3420_v61  ;;  %v3291_v34 = vcombine.low %v1746_v27, %v1760_v2  ;;  %v5312_v6 = vcombine.high %v1746_v27, %v1760_v2 }
 0x289   : > { %v3388_v56 = vcombine.low %v3380_v48, %v3387_v16  ;;  %v3429_v63 = vrot.slane %v3421_v62, %v6406_v52  ;;  %v3293_v7 = vcombine.low %v1753_v1, %v1767_v3  ;;  %v5313_v13 = vcombine.high %v1753_v1, %v1767_v3 }
 0x28a   : > { %4811 = vperm.xlu0 %5592, %v3290_v60   ;;  %v3436_v10 = vrot.slane %v3422_v0, %v6406_v52  ;;  %v1933_v14 = vrot.slane %v1919_v5, %v6406_v52  ;;  %v1934_v31 = vcombine.high %v1926_v4, %v1926_v4  ;;  %v3301_v35 = vrot.slane %v3291_v34, %v6406_v52 }
 0x28b   : > { %4817 = vperm.xlu1 %5593, %v3388_v56   ;;  %v3308_v17 = vrot.slane %v5312_v6, %v6406_v52  ;;  %v3315_v22 = vrot.slane %v3293_v7, %v6406_v52  ;;  %v1942_v20 = vrot.slane %v1926_v4, %v6406_v52  ;;  %v3322_v24 = vrot.slane %v5313_v13, %v6406_v52  ;;  %v1555_v6 = vld [vmem:[#allocation3 + $0x48] sm:$0xff] }
 0x28c   : > { %v3437_v11 = vcombine.low %v3429_v63, %v3436_v10  ;;  %v1935_v25 = vcombine.high %v1933_v14, %v1933_v14  ;;  %v1949_v9 = vrot.slane %v1933_v14, %v6406_v52  ;;  %v1956_v12 = vrot.slane %v1934_v31, %v6406_v52 }
 0x28d   : > { %v3323_v29 = vcombine.low %v3301_v35, %v3308_v17  ;;  %v1877_v44 = vrot.slane %v6412_v26, %v6406_v52  ;;  %v1884_v32 = vrot.slane %v1870_v30, %v6406_v52  ;;  %v3324_v40 = vcombine.low %v3315_v22, %v3322_v24 }
 0x28e   : > { %v1963_v33 = vrot.slane %v1935_v25, %v6406_v52  ;;  %v1617_v45 = vsub.f32 %v1521_v21, %v6408_v55  ;;  %v1584_v41 = vmul.f32 0.00390625, %v1552_v8  ;;  %v3487_v38 = vcombine.low %v1942_v20, %v1956_v12  ;;  %v1520_v55 = vld [vmem:[#allocation2 + $0x30] sm:$0xff] }
 0x28f   : > { %4820 = vperm.xlu1 %5593, %v3437_v11   ;;  %v3331_v37 = vrot.slane %v3323_v29, %v6406_v52  ;;  %v5320_v39 = vcombine.high %v1942_v20, %v1956_v12  ;;  %v1885_v42 = vcombine.high %v1877_v44, %v1877_v44  ;;  %v3338_v43 = vrot.slane %v3324_v40, %v6406_v52  ;;  %v1523_v12 = vld [vmem:[#allocation2 + $0x48] sm:$0xff] }
 0x290   : > { %v3489_v15 = vcombine.low %v1949_v9, %v1963_v33  ;;  %v5321_v18 = vcombine.high %v1949_v9, %v1963_v33  ;;  %v1886_v46 = vcombine.high %v1884_v32, %v1884_v32  ;;  %v3497_v26 = vrot.slane %v3487_v38, %v6406_v52 }
 0x291   : > { %v3504_v47 = vrot.slane %v5320_v39, %v6406_v52  ;;  %v1893_v48 = vrot.slane %v1877_v44, %v6406_v52  ;;  %v1900_v16 = vrot.slane %v1884_v32, %v6406_v52  ;;  %v3339_v49 = vcombine.low %v3331_v37, %v3338_v43 }
 0x292   : > { %v3511_v19 = vrot.slane %v3489_v15, %v6406_v52  ;;  %v3518_v50 = vrot.slane %v5321_v18, %v6406_v52  ;;  %v1907_v51 = vrot.slane %v1885_v42, %v6406_v52  ;;  %v1914_v54 = vrot.slane %v1886_v46, %v6406_v52 }
 0x293   : > { %v3519_v53 = vcombine.low %v3497_v26, %v3504_v47  ;;  %v2017_v56 = vcombine.high %v1617_v45, %v1617_v45  ;;  %v2024_v57 = vrot.slane %v1617_v45, %v6406_v52  ;;  %4814 = vperm.xlu0 %5592, %v3339_v49   ;;  %v1616_v23 = vsub.f32 %v1520_v55, %v1584_v41  ;;  %v1554_v45 = vld [vmem:[#allocation3 + $0x40] sm:$0xff]  ;;  %v1563_v41 = vld [vmem:[#allocation3 + $0x88] sm:$0xff] }
 0x294   : > { %v3520_v58 = vcombine.low %v3511_v19, %v3518_v50  ;;  %v3438_v59 = vcombine.low %v1893_v48, %v1907_v51  ;;  %v5318_v60 = vcombine.high %v1893_v48, %v1907_v51  ;;  %v3440_v27 = vcombine.low %v1900_v16, %v1914_v54  ;;  %v1522_v48 = vld [vmem:[#allocation2 + $0x40] sm:$0xff] }
 0x295   : > { %v3527_v61 = vrot.slane %v3519_v53, %v6406_v52  ;;  %v5319_v62 = vcombine.high %v1900_v16, %v1914_v54  ;;  %v2031_v1 = vrot.slane %v2017_v56, %v6406_v52  ;;  %v2032_v5 = vcombine.high %v2024_v57, %v2024_v57 }
 0x296   : > { %v3534_v2 = vrot.slane %v3520_v58, %v6406_v52  ;;  %v3448_v3 = vrot.slane %v3438_v59, %v6406_v52  ;;  %v3455_v0 = vrot.slane %v5318_v60, %v6406_v52  ;;  %v3462_v4 = vrot.slane %v3440_v27, %v6406_v52 }
 0x297   : > { %v3469_v30 = vrot.slane %v5319_v62, %v6406_v52  ;;  %v2033_v63 = vcombine.high %v2031_v1, %v2031_v1  ;;  %v2040_v34 = vrot.slane %v2024_v57, %v6406_v52  ;;  %v2047_v13 = vrot.slane %v2031_v1, %v6406_v52 }
 0x298   : > { %v3535_v7 = vcombine.low %v3527_v61, %v3534_v2  ;;  %v3470_v10 = vcombine.low %v3448_v3, %v3455_v0  ;;  %v2054_v14 = vrot.slane %v2032_v5, %v6406_v52  ;;  %v1968_v17 = vcombine.high %v1616_v23, %v1616_v23  ;;  %v1531_v2 = vld [vmem:[#allocation2 + $0x88] sm:$0xff]  ;;  %v1562_v3 = vld [vmem:[#allocation3 + $0x80] sm:$0xff] }
 0x299   : > { %v3471_v31 = vcombine.low %v3462_v4, %v3469_v30  ;;  %v2061_v35 = vrot.slane %v2033_v63, %v6406_v52  ;;  %v1975_v22 = vrot.slane %v1616_v23, %v6406_v52  ;;  %v1587_v11 = vmul.f32 0.00390625, %v1555_v6 }
 0x29a   : > { %4826 = vperm.xlu1 %5593, %v3535_v7   ;;  %v3478_v20 = vrot.slane %v3470_v10, %v6406_v52  ;;  %v3585_v21 = vcombine.low %v2040_v34, %v2054_v14  ;;  %v5324_v8 = vcombine.high %v2040_v34, %v2054_v14  ;;  %v1982_v29 = vrot.slane %v1968_v17, %v6406_v52 }
 0x29b   : > { %v3485_v24 = vrot.slane %v3471_v31, %v6406_v52  ;;  %v3587_v25 = vcombine.low %v2047_v13, %v2061_v35  ;;  %v5325_v9 = vcombine.high %v2047_v13, %v2061_v35  ;;  %v1983_v40 = vcombine.high %v1975_v22, %v1975_v22 }
 0x29c   : > { %v3595_v44 = vrot.slane %v3585_v21, %v6406_v52  ;;  %v3602_v32 = vrot.slane %v5324_v8, %v6406_v52  ;;  %v1991_v33 = vrot.slane %v1975_v22, %v6406_v52  ;;  %v1984_v42 = vcombine.high %v1982_v29, %v1982_v29 }
 0x29d   : > { %v3486_v37 = vcombine.low %v3478_v20, %v3485_v24  ;;  %v3609_v38 = vrot.slane %v3587_v25, %v6406_v52  ;;  %v3616_v39 = vrot.slane %v5325_v9, %v6406_v52  ;;  %v1998_v15 = vrot.slane %v1982_v29, %v6406_v52 }
 0x29e   : > { %v3617_v43 = vcombine.low %v3595_v44, %v3602_v32  ;;  %v2005_v18 = vrot.slane %v1983_v40, %v6406_v52  ;;  %v1619_v46 = vsub.f32 %v1523_v12, %v1587_v11  ;;  %v2012_v47 = vrot.slane %v1984_v42, %v6406_v52  ;;  %v1530_v44 = vld [vmem:[#allocation2 + $0x80] sm:$0xff] }
 0x29f   : > { %4823 = vperm.xlu0 %5592, %v3486_v37   ;;  %v3618_v26 = vcombine.low %v3609_v38, %v3616_v39  ;;  %v1586_v16 = vmul.f32 0.00390625, %v1554_v45  ;;  %v1595_v55 = vmul.f32 0.00390625, %v1563_v41  ;;  %v1594_v31 = vmul.f32 0.00390625, %v1562_v3 }
 0x2a0   : > { %v3625_v49 = vrot.slane %v3617_v43, %v6406_v52  ;;  %v3536_v19 = vcombine.low %v1991_v33, %v2005_v18  ;;  %v5322_v50 = vcombine.high %v1991_v33, %v2005_v18  ;;  %v2115_v51 = vcombine.high %v1619_v46, %v1619_v46 }
 0x2a1   : > { %v3632_v53 = vrot.slane %v3618_v26, %v6406_v52  ;;  %v3538_v54 = vcombine.low %v1998_v15, %v2012_v47  ;;  %v5323_v56 = vcombine.high %v1998_v15, %v2012_v47  ;;  %v2122_v57 = vrot.slane %v1619_v46, %v6406_v52 }
 0x2a2   : > { %v3546_v58 = vrot.slane %v3536_v19, %v6406_v52  ;;  %v3553_v59 = vrot.slane %v5322_v50, %v6406_v52  ;;  %v2129_v60 = vrot.slane %v2115_v51, %v6406_v52  ;;  %v1618_v23 = vsub.f32 %v1522_v48, %v1586_v16 }
 0x2a3   : > { %v3633_v61 = vcombine.low %v3625_v49, %v3632_v53  ;;  %v3560_v27 = vrot.slane %v3538_v54, %v6406_v52  ;;  %v3567_v62 = vrot.slane %v5323_v56, %v6406_v52  ;;  %v2130_v1 = vcombine.high %v2122_v57, %v2122_v57  ;;  %v1565_v56 = vld [vmem:[#allocation3 + $0x98] sm:$0xff] }
 0x2a4   : > { %v3568_v0 = vcombine.low %v3546_v58, %v3553_v59  ;;  %v2131_v5 = vcombine.high %v2129_v60, %v2129_v60  ;;  %v2138_v4 = vrot.slane %v2122_v57, %v6406_v52  ;;  %v2145_v30 = vrot.slane %v2129_v60, %v6406_v52 }
 0x2a5   : > { %4832 = vperm.xlu1 %5593, %v3633_v61   ;;  %v3569_v63 = vcombine.low %v3560_v27, %v3567_v62  ;;  %v2152_v34 = vrot.slane %v2130_v1, %v6406_v52  ;;  %v2066_v6 = vcombine.high %v1618_v23, %v1618_v23  ;;  %v2073_v7 = vrot.slane %v1618_v23, %v6406_v52 }
 0x2a6   : > { %v3576_v10 = vrot.slane %v3568_v0, %v6406_v52  ;;  %v2159_v13 = vrot.slane %v2131_v5, %v6406_v52  ;;  %v1627_v14 = vsub.f32 %v1531_v2, %v1595_v55  ;;  %v1626_v18 = vsub.f32 %v1530_v44, %v1594_v31  ;;  %v1567_v31 = vld [vmem:[#allocation3 + $0xa8] sm:$0xff] }
 0x2a7   : > { %v3583_v35 = vrot.slane %v3569_v63, %v6406_v52  ;;  %v3683_v17 = vcombine.low %v2138_v4, %v2152_v34  ;;  %v5328_v22 = vcombine.high %v2138_v4, %v2152_v34  ;;  %v2080_v20 = vrot.slane %v2066_v6, %v6406_v52  ;;  %v1533_v34 = vld [vmem:[#allocation2 + $0x98] sm:$0xff] }
 0x2a8   : > { %v3685_v21 = vcombine.low %v2145_v30, %v2159_v13  ;;  %v5329_v8 = vcombine.high %v2145_v30, %v2159_v13  ;;  %v2081_v11 = vcombine.high %v2073_v7, %v2073_v7  ;;  %v2089_v24 = vrot.slane %v2073_v7, %v6406_v52 }
 0x2a9   : > { %v3584_v25 = vcombine.low %v3576_v10, %v3583_v35  ;;  %v3693_v9 = vrot.slane %v3683_v17, %v6406_v52  ;;  %v3700_v29 = vrot.slane %v5328_v22, %v6406_v52  ;;  %v2082_v12 = vcombine.high %v2080_v20, %v2080_v20 }
 0x2aa   : > { %v3707_v32 = vrot.slane %v3685_v21, %v6406_v52  ;;  %v3714_v40 = vrot.slane %v5329_v8, %v6406_v52  ;;  %v2096_v33 = vrot.slane %v2080_v20, %v6406_v52  ;;  %v2103_v45 = vrot.slane %v2081_v11, %v6406_v52 }
 0x2ab   : > { %4829 = vperm.xlu0 %5592, %v3584_v25   ;;  %v3715_v41 = vcombine.low %v3693_v9, %v3700_v29  ;;  %v2110_v37 = vrot.slane %v2082_v12, %v6406_v52  ;;  %v2507_v38 = vcombine.high %v1627_v14, %v1627_v14  ;;  %v2514_v39 = vrot.slane %v1627_v14, %v6406_v52  ;;  %v1564_v14 = vld [vmem:[#allocation3 + $0x90] sm:$0xff] }
 0x2ac   : > { %v3716_v42 = vcombine.low %v3707_v32, %v3714_v40  ;;  %v3634_v43 = vcombine.low %v2089_v24, %v2103_v45  ;;  %v5326_v15 = vcombine.high %v2089_v24, %v2103_v45  ;;  %v2458_v27 = vcombine.high %v1626_v18, %v1626_v18  ;;  %v1532_v29 = vld [vmem:[#allocation2 + $0x90] sm:$0xff] }
 0x2ad   : > { %v3723_v46 = vrot.slane %v3715_v41, %v6406_v52  ;;  %v3636_v26 = vcombine.low %v2096_v33, %v2110_v37  ;;  %v5327_v47 = vcombine.high %v2096_v33, %v2110_v37  ;;  %v2521_v48 = vrot.slane %v2507_v38, %v6406_v52 }
 0x2ae   : > { %v3730_v16 = vrot.slane %v3716_v42, %v6406_v52  ;;  %v3644_v55 = vrot.slane %v3634_v43, %v6406_v52  ;;  %v3651_v49 = vrot.slane %v5326_v15, %v6406_v52  ;;  %v2522_v19 = vcombine.high %v2514_v39, %v2514_v39 }
 0x2af   : > { %v3658_v50 = vrot.slane %v3636_v26, %v6406_v52  ;;  %v3665_v51 = vrot.slane %v5327_v47, %v6406_v52  ;;  %v2523_v53 = vcombine.high %v2521_v48, %v2521_v48  ;;  %v2530_v54 = vrot.slane %v2514_v39, %v6406_v52 }
 0x2b0   : > { %v3731_v57 = vcombine.low %v3723_v46, %v3730_v16  ;;  %v3666_v58 = vcombine.low %v3644_v55, %v3651_v49  ;;  %v2537_v59 = vrot.slane %v2521_v48, %v6406_v52  ;;  %v2544_v60 = vrot.slane %v2522_v19, %v6406_v52  ;;  %v1535_v16 = vld [vmem:[#allocation2 + $0xa8] sm:$0xff]  ;;  %v1566_v55 = vld [vmem:[#allocation3 + $0xa0] sm:$0xff] }
 0x2b1   : > { %v3667_v23 = vcombine.low %v3658_v50, %v3665_v51  ;;  %v2551_v61 = vrot.slane %v2523_v53, %v6406_v52  ;;  %v2465_v62 = vrot.slane %v1626_v18, %v6406_v52  ;;  %v1597_v0 = vmul.f32 0.00390625, %v1565_v56 }
 0x2b2   : > { %4838 = vperm.xlu1 %5593, %v3731_v57   ;;  %v3674_v1 = vrot.slane %v3666_v58, %v6406_v52  ;;  %v4075_v2 = vcombine.low %v2530_v54, %v2544_v60  ;;  %v5344_v3 = vcombine.high %v2530_v54, %v2544_v60  ;;  %v2472_v63 = vrot.slane %v2458_v27, %v6406_v52 }
 0x2b3   : > { %v3681_v5 = vrot.slane %v3667_v23, %v6406_v52  ;;  %v4077_v4 = vcombine.low %v2537_v59, %v2551_v61  ;;  %v5345_v30 = vcombine.high %v2537_v59, %v2551_v61  ;;  %v2473_v10 = vcombine.high %v2465_v62, %v2465_v62 }
 0x2b4   : > { %v4085_v6 = vrot.slane %v4075_v2, %v6406_v52  ;;  %v4092_v7 = vrot.slane %v5344_v3, %v6406_v52  ;;  %v2481_v13 = vrot.slane %v2465_v62, %v6406_v52  ;;  %v2474_v20 = vcombine.high %v2472_v63, %v2472_v63 }
 0x2b5   : > { %v3682_v35 = vcombine.low %v3674_v1, %v3681_v5  ;;  %v4099_v17 = vrot.slane %v4077_v4, %v6406_v52  ;;  %v4106_v22 = vrot.slane %v5345_v30, %v6406_v52  ;;  %v2488_v8 = vrot.slane %v2472_v63, %v6406_v52 }
 0x2b6   : > { %v4107_v21 = vcombine.low %v4085_v6, %v4092_v7  ;;  %v2495_v11 = vrot.slane %v2473_v10, %v6406_v52  ;;  %v1629_v24 = vsub.f32 %v1533_v34, %v1597_v0  ;;  %v2502_v9 = vrot.slane %v2474_v20, %v6406_v52  ;;  %v1534_v6 = vld [vmem:[#allocation2 + $0xa0] sm:$0xff] }
 0x2b7   : > { %4835 = vperm.xlu0 %5592, %v3682_v35   ;;  %v4108_v25 = vcombine.low %v4099_v17, %v4106_v22  ;;  %v1596_v12 = vmul.f32 0.00390625, %v1564_v14  ;;  %v1599_v44 = vmul.f32 0.00390625, %v1567_v31  ;;  %v1598_v23 = vmul.f32 0.00390625, %v1566_v55 }
 0x2b8   : > { %v4115_v32 = vrot.slane %v4107_v21, %v6406_v52  ;;  %v4026_v40 = vcombine.low %v2481_v13, %v2495_v11  ;;  %v5342_v33 = vcombine.high %v2481_v13, %v2495_v11  ;;  %v2605_v45 = vcombine.high %v1629_v24, %v1629_v24 }
 0x2b9   : > { %v4122_v41 = vrot.slane %v4108_v25, %v6406_v52  ;;  %v4028_v37 = vcombine.low %v2488_v8, %v2502_v9  ;;  %v5343_v38 = vcombine.high %v2488_v8, %v2502_v9  ;;  %v2612_v39 = vrot.slane %v1629_v24, %v6406_v52 }
 0x2ba   : > { %v4036_v42 = vrot.slane %v4026_v40, %v6406_v52  ;;  %v4043_v43 = vrot.slane %v5342_v33, %v6406_v52  ;;  %v2619_v15 = vrot.slane %v2605_v45, %v6406_v52  ;;  %v1628_v18 = vsub.f32 %v1532_v29, %v1596_v12 }
 0x2bb   : > { %v4123_v46 = vcombine.low %v4115_v32, %v4122_v41  ;;  %v4050_v26 = vrot.slane %v4028_v37, %v6406_v52  ;;  %v4057_v47 = vrot.slane %v5343_v38, %v6406_v52  ;;  %v2620_v48 = vcombine.high %v2612_v39, %v2612_v39  ;;  %v1569_v38 = vld [vmem:[#allocation3 + $0xb8] sm:$0xff] }
 0x2bc   : > { %v4058_v49 = vcombine.low %v4036_v42, %v4043_v43  ;;  %v2621_v19 = vcombine.high %v2619_v15, %v2619_v15  ;;  %v2628_v50 = vrot.slane %v2612_v39, %v6406_v52  ;;  %v2635_v51 = vrot.slane %v2619_v15, %v6406_v52 }
 0x2bd   : > { %4862 = vperm.xlu1 %5593, %v4123_v46   ;;  %v4059_v53 = vcombine.low %v4050_v26, %v4057_v47  ;;  %v2642_v54 = vrot.slane %v2620_v48, %v6406_v52  ;;  %v2556_v56 = vcombine.high %v1628_v18, %v1628_v18  ;;  %v2563_v57 = vrot.slane %v1628_v18, %v6406_v52 }
 0x2be   : > { %v4066_v58 = vrot.slane %v4058_v49, %v6406_v52  ;;  %v2649_v59 = vrot.slane %v2621_v19, %v6406_v52  ;;  %v1631_v60 = vsub.f32 %v1535_v16, %v1599_v44  ;;  %v1630_v11 = vsub.f32 %v1534_v6, %v1598_v23  ;;  %v1571_v23 = vld [vmem:[#allocation3 + $0xc8] sm:$0xff] }
 0x2bf   : > { %v4073_v61 = vrot.slane %v4059_v53, %v6406_v52  ;;  %v4173_v27 = vcombine.low %v2628_v50, %v2642_v54  ;;  %v5348_v62 = vcombine.high %v2628_v50, %v2642_v54  ;;  %v2570_v1 = vrot.slane %v2556_v56, %v6406_v52  ;;  %v1537_v54 = vld [vmem:[#allocation2 + $0xb8] sm:$0xff] }
 0x2c0   : > { %v4175_v2 = vcombine.low %v2635_v51, %v2649_v59  ;;  %v5349_v3 = vcombine.high %v2635_v51, %v2649_v59  ;;  %v2571_v0 = vcombine.high %v2563_v57, %v2563_v57  ;;  %v2579_v5 = vrot.slane %v2563_v57, %v6406_v52 }
 0x2c1   : > { %v4074_v4 = vcombine.low %v4066_v58, %v4073_v61  ;;  %v4183_v30 = vrot.slane %v4173_v27, %v6406_v52  ;;  %v4190_v63 = vrot.slane %v5348_v62, %v6406_v52  ;;  %v2572_v34 = vcombine.high %v2570_v1, %v2570_v1 }
 0x2c2   : > { %v4197_v7 = vrot.slane %v4175_v2, %v6406_v52  ;;  %v4204_v10 = vrot.slane %v5349_v3, %v6406_v52  ;;  %v2586_v13 = vrot.slane %v2570_v1, %v6406_v52  ;;  %v2593_v14 = vrot.slane %v2571_v0, %v6406_v52 }
 0x2c3   : > { %4859 = vperm.xlu0 %5592, %v4074_v4   ;;  %v4205_v31 = vcombine.low %v4183_v30, %v4190_v63  ;;  %v2600_v35 = vrot.slane %v2572_v34, %v6406_v52  ;;  %v2703_v17 = vcombine.high %v1631_v60, %v1631_v60  ;;  %v2710_v22 = vrot.slane %v1631_v60, %v6406_v52  ;;  %v1568_v60 = vld [vmem:[#allocation3 + $0xb0] sm:$0xff] }
 0x2c4   : > { %v4206_v20 = vcombine.low %v4197_v7, %v4204_v10  ;;  %v4124_v21 = vcombine.low %v2579_v5, %v2593_v14  ;;  %v5346_v8 = vcombine.high %v2579_v5, %v2593_v14  ;;  %v2654_v26 = vcombine.high %v1630_v11, %v1630_v11  ;;  %v1536_v63 = vld [vmem:[#allocation2 + $0xb0] sm:$0xff] }
 0x2c5   : > { %v4213_v24 = vrot.slane %v4205_v31, %v6406_v52  ;;  %v4126_v25 = vcombine.low %v2586_v13, %v2600_v35  ;;  %v5347_v9 = vcombine.high %v2586_v13, %v2600_v35  ;;  %v2717_v29 = vrot.slane %v2703_v17, %v6406_v52 }
 0x2c6   : > { %v4220_v12 = vrot.slane %v4206_v20, %v6406_v52  ;;  %v4134_v44 = vrot.slane %v4124_v21, %v6406_v52  ;;  %v4141_v32 = vrot.slane %v5346_v8, %v6406_v52  ;;  %v2718_v40 = vcombine.high %v2710_v22, %v2710_v22 }
 0x2c7   : > { %v4148_v33 = vrot.slane %v4126_v25, %v6406_v52  ;;  %v4155_v45 = vrot.slane %v5347_v9, %v6406_v52  ;;  %v2719_v41 = vcombine.high %v2717_v29, %v2717_v29  ;;  %v2726_v37 = vrot.slane %v2710_v22, %v6406_v52 }
 0x2c8   : > { %v4221_v39 = vcombine.low %v4213_v24, %v4220_v12  ;;  %v4156_v42 = vcombine.low %v4134_v44, %v4141_v32  ;;  %v2733_v43 = vrot.slane %v2717_v29, %v6406_v52  ;;  %v2740_v15 = vrot.slane %v2718_v40, %v6406_v52  ;;  %v1539_v12 = vld [vmem:[#allocation2 + $0xc8] sm:$0xff]  ;;  %v1570_v44 = vld [vmem:[#allocation3 + $0xc0] sm:$0xff] }
 0x2c9   : > { %v4157_v18 = vcombine.low %v4148_v33, %v4155_v45  ;;  %v2747_v46 = vrot.slane %v2719_v41, %v6406_v52  ;;  %v2661_v47 = vrot.slane %v1630_v11, %v6406_v52  ;;  %v1601_v49 = vmul.f32 0.00390625, %v1569_v38 }
 0x2ca   : > { %4868 = vperm.xlu1 %5593, %v4221_v39   ;;  %v4164_v48 = vrot.slane %v4156_v42, %v6406_v52  ;;  %v4271_v16 = vcombine.low %v2726_v37, %v2740_v15  ;;  %v5352_v55 = vcombine.high %v2726_v37, %v2740_v15  ;;  %v2668_v53 = vrot.slane %v2654_v26, %v6406_v52 }
 0x2cb   : > { %v4171_v19 = vrot.slane %v4157_v18, %v6406_v52  ;;  %v4273_v50 = vcombine.low %v2733_v43, %v2747_v46  ;;  %v5353_v51 = vcombine.high %v2733_v43, %v2747_v46  ;;  %v2669_v58 = vcombine.high %v2661_v47, %v2661_v47 }
 0x2cc   : > { %v4281_v56 = vrot.slane %v4271_v16, %v6406_v52  ;;  %v4288_v57 = vrot.slane %v5352_v55, %v6406_v52  ;;  %v2677_v59 = vrot.slane %v2661_v47, %v6406_v52  ;;  %v2670_v1 = vcombine.high %v2668_v53, %v2668_v53 }
 0x2cd   : > { %v4172_v61 = vcombine.low %v4164_v48, %v4171_v19  ;;  %v4295_v27 = vrot.slane %v4273_v50, %v6406_v52  ;;  %v4302_v62 = vrot.slane %v5353_v51, %v6406_v52  ;;  %v2684_v3 = vrot.slane %v2668_v53, %v6406_v52 }
 0x2ce   : > { %v4303_v2 = vcombine.low %v4281_v56, %v4288_v57  ;;  %v2691_v0 = vrot.slane %v2669_v58, %v6406_v52  ;;  %v1633_v5 = vsub.f32 %v1537_v54, %v1601_v49  ;;  %v2698_v30 = vrot.slane %v2670_v1, %v6406_v52  ;;  %v1538_v56 = vld [vmem:[#allocation2 + $0xc0] sm:$0xff] }
 0x2cf   : > { %4865 = vperm.xlu0 %5592, %v4172_v61   ;;  %v4304_v4 = vcombine.low %v4295_v27, %v4302_v62  ;;  %v1600_v34 = vmul.f32 0.00390625, %v1568_v60  ;;  %v1603_v6 = vmul.f32 0.00390625, %v1571_v23  ;;  %v1602_v18 = vmul.f32 0.00390625, %v1570_v44 }
 0x2d0   : > { %v4311_v7 = vrot.slane %v4303_v2, %v6406_v52  ;;  %v4222_v10 = vcombine.low %v2677_v59, %v2691_v0  ;;  %v5350_v13 = vcombine.high %v2677_v59, %v2691_v0  ;;  %v2801_v14 = vcombine.high %v1633_v5, %v1633_v5 }
 0x2d1   : > { %v4318_v31 = vrot.slane %v4304_v4, %v6406_v52  ;;  %v4224_v35 = vcombine.low %v2684_v3, %v2698_v30  ;;  %v5351_v17 = vcombine.high %v2684_v3, %v2698_v30  ;;  %v2808_v22 = vrot.slane %v1633_v5, %v6406_v52 }
 0x2d2   : > { %v4232_v20 = vrot.slane %v4222_v10, %v6406_v52  ;;  %v4239_v21 = vrot.slane %v5350_v13, %v6406_v52  ;;  %v2815_v8 = vrot.slane %v2801_v14, %v6406_v52  ;;  %v1632_v11 = vsub.f32 %v1536_v63, %v1600_v34 }
 0x2d3   : > { %v4319_v24 = vcombine.low %v4311_v7, %v4318_v31  ;;  %v4246_v25 = vrot.slane %v4224_v35, %v6406_v52  ;;  %v4253_v9 = vrot.slane %v5351_v17, %v6406_v52  ;;  %v2816_v29 = vcombine.high %v2808_v22, %v2808_v22  ;;  %v1572_v17 = vld [vmem:[#allocation3 + $0xd0] sm:$0xff] }
 0x2d4   : > { %v4254_v32 = vcombine.low %v4232_v20, %v4239_v21  ;;  %v2817_v40 = vcombine.high %v2815_v8, %v2815_v8  ;;  %v2824_v33 = vrot.slane %v2808_v22, %v6406_v52  ;;  %v2831_v45 = vrot.slane %v2815_v8, %v6406_v52 }
 0x2d5   : > { %4874 = vperm.xlu1 %5593, %v4319_v24   ;;  %v4255_v41 = vcombine.low %v4246_v25, %v4253_v9  ;;  %v2838_v37 = vrot.slane %v2816_v29, %v6406_v52  ;;  %v2752_v38 = vcombine.high %v1632_v11, %v1632_v11  ;;  %v2759_v39 = vrot.slane %v1632_v11, %v6406_v52 }
 0x2d6   : > { %v4262_v42 = vrot.slane %v4254_v32, %v6406_v52  ;;  %v2845_v43 = vrot.slane %v2817_v40, %v6406_v52  ;;  %v1635_v15 = vsub.f32 %v1539_v12, %v1603_v6  ;;  %v1634_v0 = vsub.f32 %v1538_v56, %v1602_v18  ;;  %v1573_v18 = vld [vmem:[#allocation3 + $0xd8] sm:$0xff] }
 0x2d7   : > { %v4269_v46 = vrot.slane %v4255_v41, %v6406_v52  ;;  %v4369_v26 = vcombine.low %v2824_v33, %v2838_v37  ;;  %v5356_v47 = vcombine.high %v2824_v33, %v2838_v37  ;;  %v2766_v48 = vrot.slane %v2752_v38, %v6406_v52  ;;  %v1540_v37 = vld [vmem:[#allocation2 + $0xd0] sm:$0xff] }
 0x2d8   : > { %v4371_v16 = vcombine.low %v2831_v45, %v2845_v43  ;;  %v5357_v55 = vcombine.high %v2831_v45, %v2845_v43  ;;  %v2767_v49 = vcombine.high %v2759_v39, %v2759_v39  ;;  %v2775_v19 = vrot.slane %v2759_v39, %v6406_v52 }
 0x2d9   : > { %v4270_v50 = vcombine.low %v4262_v42, %v4269_v46  ;;  %v4379_v51 = vrot.slane %v4369_v26, %v6406_v52  ;;  %v4386_v53 = vrot.slane %v5356_v47, %v6406_v52  ;;  %v2768_v54 = vcombine.high %v2766_v48, %v2766_v48 }
 0x2da   : > { %v4393_v57 = vrot.slane %v4371_v16, %v6406_v52  ;;  %v4400_v58 = vrot.slane %v5357_v55, %v6406_v52  ;;  %v2782_v59 = vrot.slane %v2766_v48, %v6406_v52  ;;  %v2789_v60 = vrot.slane %v2767_v49, %v6406_v52 }
 0x2db   : > { %4871 = vperm.xlu0 %5592, %v4270_v50   ;;  %v4401_v23 = vcombine.low %v4379_v51, %v4386_v53  ;;  %v2796_v61 = vrot.slane %v2768_v54, %v6406_v52  ;;  %v2899_v27 = vcombine.high %v1635_v15, %v1635_v15  ;;  %v2906_v62 = vrot.slane %v1635_v15, %v6406_v52  ;;  %v1556_v15 = vld [vmem:[#allocation3 + $0x50] sm:$0xff] }
 0x2dc   : > { %v4402_v1 = vcombine.low %v4393_v57, %v4400_v58  ;;  %v4320_v2 = vcombine.low %v2775_v19, %v2789_v60  ;;  %v5354_v3 = vcombine.high %v2775_v19, %v2789_v60  ;;  %v2850_v25 = vcombine.high %v1634_v0, %v1634_v0  ;;  %v1524_v53 = vld [vmem:[#allocation2 + $0x50] sm:$0xff] }
 0x2dd   : > { %v4409_v5 = vrot.slane %v4401_v23, %v6406_v52  ;;  %v4322_v4 = vcombine.low %v2782_v59, %v2796_v61  ;;  %v5355_v30 = vcombine.high %v2782_v59, %v2796_v61  ;;  %v2913_v63 = vrot.slane %v2899_v27, %v6406_v52 }
 0x2de   : > { %v4416_v34 = vrot.slane %v4402_v1, %v6406_v52  ;;  %v4330_v6 = vrot.slane %v4320_v2, %v6406_v52  ;;  %v4337_v7 = vrot.slane %v5354_v3, %v6406_v52  ;;  %v2914_v10 = vcombine.high %v2906_v62, %v2906_v62 }
 0x2df   : > { %v4344_v13 = vrot.slane %v4322_v4, %v6406_v52  ;;  %v4351_v14 = vrot.slane %v5355_v30, %v6406_v52  ;;  %v2915_v31 = vcombine.high %v2913_v63, %v2913_v63  ;;  %v2922_v35 = vrot.slane %v2906_v62, %v6406_v52 }
 0x2e0   : > { %v4417_v22 = vcombine.low %v4409_v5, %v4416_v34  ;;  %v4352_v20 = vcombine.low %v4330_v6, %v4337_v7  ;;  %v2929_v21 = vrot.slane %v2913_v63, %v6406_v52  ;;  %v2936_v8 = vrot.slane %v2914_v10, %v6406_v52  ;;  %v1541_v34 = vld [vmem:[#allocation2 + $0xd8] sm:$0xff] }
 0x2e1   : > { %v4353_v11 = vcombine.low %v4344_v13, %v4351_v14  ;;  %v2943_v24 = vrot.slane %v2915_v31, %v6406_v52  ;;  %v2857_v9 = vrot.slane %v1634_v0, %v6406_v52  ;;  %v1604_v32 = vmul.f32 0.00390625, %v1572_v17  ;;  %v1557_v6 = vld [vmem:[#allocation3 + $0x58] sm:$0xff] }
 0x2e2   : > { %4880 = vperm.xlu1 %5593, %v4417_v22   ;;  %v4360_v29 = vrot.slane %v4352_v20, %v6406_v52  ;;  %v4467_v12 = vcombine.low %v2922_v35, %v2936_v8  ;;  %v5360_v44 = vcombine.high %v2922_v35, %v2936_v8  ;;  %v2864_v41 = vrot.slane %v2850_v25, %v6406_v52 }
 0x2e3   : > { %v4367_v40 = vrot.slane %v4353_v11, %v6406_v52  ;;  %v4469_v33 = vcombine.low %v2929_v21, %v2943_v24  ;;  %v5361_v45 = vcombine.high %v2929_v21, %v2943_v24  ;;  %v2865_v42 = vcombine.high %v2857_v9, %v2857_v9 }
 0x2e4   : > { %v4477_v38 = vrot.slane %v4467_v12, %v6406_v52  ;;  %v4484_v39 = vrot.slane %v5360_v44, %v6406_v52  ;;  %v2873_v43 = vrot.slane %v2857_v9, %v6406_v52  ;;  %v2866_v48 = vcombine.high %v2864_v41, %v2864_v41 }
 0x2e5   : > { %v4368_v46 = vcombine.low %v4360_v29, %v4367_v40  ;;  %v4491_v26 = vrot.slane %v4469_v33, %v6406_v52  ;;  %v4498_v47 = vrot.slane %v5361_v45, %v6406_v52  ;;  %v2880_v55 = vrot.slane %v2864_v41, %v6406_v52 }
 0x2e6   : > { %v4499_v16 = vcombine.low %v4477_v38, %v4484_v39  ;;  %v2887_v49 = vrot.slane %v2865_v42, %v6406_v52  ;;  %v1636_v19 = vsub.f32 %v1540_v37, %v1604_v32  ;;  %v2894_v51 = vrot.slane %v2866_v48, %v6406_v52  ;;  %v1525_v38 = vld [vmem:[#allocation2 + $0x58] sm:$0xff] }
 0x2e7   : > { %4877 = vperm.xlu0 %5592, %v4368_v46   ;;  %v4500_v50 = vcombine.low %v4491_v26, %v4498_v47  ;;  %v1588_v54 = vmul.f32 0.00390625, %v1556_v15  ;;  %v1605_v56 = vmul.f32 0.00390625, %v1573_v18  ;;  %v1589_v11 = vmul.f32 0.00390625, %v1557_v6 }
 0x2e8   : > { %v4507_v57 = vrot.slane %v4499_v16, %v6406_v52  ;;  %v4418_v58 = vcombine.low %v2873_v43, %v2887_v49  ;;  %v5358_v59 = vcombine.high %v2873_v43, %v2887_v49  ;;  %v2948_v60 = vcombine.high %v1636_v19, %v1636_v19 }
 0x2e9   : > { %v4514_v23 = vrot.slane %v4500_v50, %v6406_v52  ;;  %v4420_v61 = vcombine.low %v2880_v55, %v2894_v51  ;;  %v5359_v27 = vcombine.high %v2880_v55, %v2894_v51  ;;  %v2955_v62 = vrot.slane %v1636_v19, %v6406_v52 }
 0x2ea   : > { %v4428_v1 = vrot.slane %v4418_v58, %v6406_v52  ;;  %v4435_v2 = vrot.slane %v5358_v59, %v6406_v52  ;;  %v2962_v3 = vrot.slane %v2948_v60, %v6406_v52  ;;  %v1620_v0 = vsub.f32 %v1524_v53, %v1588_v54 }
 0x2eb   : > { %v4515_v5 = vcombine.low %v4507_v57, %v4514_v23  ;;  %v4442_v4 = vrot.slane %v4420_v61, %v6406_v52  ;;  %v4449_v30 = vrot.slane %v5359_v27, %v6406_v52  ;;  %v2963_v63 = vcombine.high %v2955_v62, %v2955_v62  ;;  %v1574_v27 = vld [vmem:[#allocation3 + $0xe0] sm:$0xff] }
 0x2ec   : > { %v4450_v7 = vcombine.low %v4428_v1, %v4435_v2  ;;  %v2964_v10 = vcombine.high %v2962_v3, %v2962_v3  ;;  %v2971_v13 = vrot.slane %v2955_v62, %v6406_v52  ;;  %v2978_v14 = vrot.slane %v2962_v3, %v6406_v52 }
 0x2ed   : > { %4886 = vperm.xlu1 %5593, %v4515_v5   ;;  %v4451_v31 = vcombine.low %v4442_v4, %v4449_v30  ;;  %v2985_v35 = vrot.slane %v2963_v63, %v6406_v52  ;;  %v2164_v17 = vcombine.high %v1620_v0, %v1620_v0  ;;  %v2171_v22 = vrot.slane %v1620_v0, %v6406_v52 }
 0x2ee   : > { %v4458_v20 = vrot.slane %v4450_v7, %v6406_v52  ;;  %v2992_v21 = vrot.slane %v2964_v10, %v6406_v52  ;;  %v1637_v8 = vsub.f32 %v1541_v34, %v1605_v56  ;;  %v1621_v49 = vsub.f32 %v1525_v38, %v1589_v11  ;;  %v1575_v11 = vld [vmem:[#allocation3 + $0xe8] sm:$0xff] }
 0x2ef   : > { %v4465_v24 = vrot.slane %v4451_v31, %v6406_v52  ;;  %v4516_v25 = vcombine.low %v2971_v13, %v2985_v35  ;;  %v5362_v9 = vcombine.high %v2971_v13, %v2985_v35  ;;  %v2178_v29 = vrot.slane %v2164_v17, %v6406_v52  ;;  %v1542_v35 = vld [vmem:[#allocation2 + $0xe0] sm:$0xff] }
 0x2f0   : > { %v4518_v12 = vcombine.low %v2978_v14, %v2992_v21  ;;  %v5363_v44 = vcombine.high %v2978_v14, %v2992_v21  ;;  %v2179_v32 = vcombine.high %v2171_v22, %v2171_v22  ;;  %v2187_v40 = vrot.slane %v2171_v22, %v6406_v52 }
 0x2f1   : > { %v4466_v33 = vcombine.low %v4458_v20, %v4465_v24  ;;  %v4526_v45 = vrot.slane %v4516_v25, %v6406_v52  ;;  %v4533_v41 = vrot.slane %v5362_v9, %v6406_v52  ;;  %v2180_v37 = vcombine.high %v2178_v29, %v2178_v29 }
 0x2f2   : > { %v4540_v39 = vrot.slane %v4518_v12, %v6406_v52  ;;  %v4547_v42 = vrot.slane %v5363_v44, %v6406_v52  ;;  %v2194_v43 = vrot.slane %v2178_v29, %v6406_v52  ;;  %v2201_v15 = vrot.slane %v2179_v32, %v6406_v52 }
 0x2f3   : > { %4883 = vperm.xlu0 %5592, %v4466_v33   ;;  %v4548_v18 = vcombine.low %v4526_v45, %v4533_v41  ;;  %v2208_v46 = vrot.slane %v2180_v37, %v6406_v52  ;;  %v2997_v26 = vcombine.high %v1637_v8, %v1637_v8  ;;  %v3004_v47 = vrot.slane %v1637_v8, %v6406_v52  ;;  %v1558_v8 = vld [vmem:[#allocation3 + $0x60] sm:$0xff] }
 0x2f4   : > { %v4549_v48 = vcombine.low %v4540_v39, %v4547_v42  ;;  %v3732_v16 = vcombine.low %v2187_v40, %v2201_v15  ;;  %v5330_v55 = vcombine.high %v2187_v40, %v2201_v15  ;;  %v2213_v4 = vcombine.high %v1621_v49, %v1621_v49  ;;  %v1526_v41 = vld [vmem:[#allocation2 + $0x60] sm:$0xff] }
 0x2f5   : > { %v4556_v19 = vrot.slane %v4548_v18, %v6406_v52  ;;  %v3734_v50 = vcombine.low %v2194_v43, %v2208_v46  ;;  %v5331_v51 = vcombine.high %v2194_v43, %v2208_v46  ;;  %v3011_v53 = vrot.slane %v2997_v26, %v6406_v52 }
 0x2f6   : > { %v4563_v54 = vrot.slane %v4549_v48, %v6406_v52  ;;  %v3742_v56 = vrot.slane %v3732_v16, %v6406_v52  ;;  %v3749_v57 = vrot.slane %v5330_v55, %v6406_v52  ;;  %v3012_v58 = vcombine.high %v3004_v47, %v3004_v47 }
 0x2f7   : > { %v3756_v59 = vrot.slane %v3734_v50, %v6406_v52  ;;  %v3763_v60 = vrot.slane %v5331_v51, %v6406_v52  ;;  %v3013_v23 = vcombine.high %v3011_v53, %v3011_v53  ;;  %v3020_v61 = vrot.slane %v3004_v47, %v6406_v52 }
 0x2f8   : > { %v4564_v62 = vcombine.low %v4556_v19, %v4563_v54  ;;  %v3764_v1 = vcombine.low %v3742_v56, %v3749_v57  ;;  %v3027_v2 = vrot.slane %v3011_v53, %v6406_v52  ;;  %v3034_v3 = vrot.slane %v3012_v58, %v6406_v52  ;;  %v1543_v54 = vld [vmem:[#allocation2 + $0xe8] sm:$0xff] }
 0x2f9   : > { %v3765_v0 = vcombine.low %v3756_v59, %v3763_v60  ;;  %v3041_v5 = vrot.slane %v3013_v23, %v6406_v52  ;;  %v2220_v30 = vrot.slane %v1621_v49, %v6406_v52  ;;  %v1606_v7 = vmul.f32 0.00390625, %v1574_v27  ;;  %v1559_v56 = vld [vmem:[#allocation3 + $0x68] sm:$0xff] }
 0x2fa   : > { %4889 = vperm.xlu1 %5593, %v4564_v62   ;;  %v3772_v63 = vrot.slane %v3764_v1, %v6406_v52  ;;  %v4565_v34 = vcombine.low %v3020_v61, %v3034_v3  ;;  %v5364_v6 = vcombine.high %v3020_v61, %v3034_v3  ;;  %v2227_v31 = vrot.slane %v2213_v4, %v6406_v52 }
 0x2fb   : > { %v3779_v10 = vrot.slane %v3765_v0, %v6406_v52  ;;  %v4567_v13 = vcombine.low %v3027_v2, %v3041_v5  ;;  %v5365_v14 = vcombine.high %v3027_v2, %v3041_v5  ;;  %v2228_v20 = vcombine.high %v2220_v30, %v2220_v30 }
 0x2fc   : > { %v4575_v17 = vrot.slane %v4565_v34, %v6406_v52  ;;  %v4582_v22 = vrot.slane %v5364_v6, %v6406_v52  ;;  %v2236_v21 = vrot.slane %v2220_v30, %v6406_v52  ;;  %v2229_v29 = vcombine.high %v2227_v31, %v2227_v31 }
 0x2fd   : > { %v3780_v24 = vcombine.low %v3772_v63, %v3779_v10  ;;  %v4589_v25 = vrot.slane %v4567_v13, %v6406_v52  ;;  %v4596_v9 = vrot.slane %v5365_v14, %v6406_v52  ;;  %v2243_v44 = vrot.slane %v2227_v31, %v6406_v52 }
 0x2fe   : > { %v4597_v12 = vcombine.low %v4575_v17, %v4582_v22  ;;  %v2250_v32 = vrot.slane %v2228_v20, %v6406_v52  ;;  %v1638_v40 = vsub.f32 %v1542_v35, %v1606_v7  ;;  %v2257_v45 = vrot.slane %v2229_v29, %v6406_v52  ;;  %v1527_v17 = vld [vmem:[#allocation2 + $0x68] sm:$0xff] }
 0x2ff   : > { %4841 = vperm.xlu0 %5592, %v3780_v24   ;;  %v4598_v33 = vcombine.low %v4589_v25, %v4596_v9  ;;  %v1590_v37 = vmul.f32 0.00390625, %v1558_v8  ;;  %v1607_v38 = vmul.f32 0.00390625, %v1575_v11  ;;  %v1591_v0 = vmul.f32 0.00390625, %v1559_v56 }
 0x300   : > { %v4605_v39 = vrot.slane %v4597_v12, %v6406_v52  ;;  %v3781_v42 = vcombine.low %v2236_v21, %v2250_v32  ;;  %v5332_v43 = vcombine.high %v2236_v21, %v2250_v32  ;;  %v3046_v15 = vcombine.high %v1638_v40, %v1638_v40 }
 0x301   : > { %v4612_v18 = vrot.slane %v4598_v33, %v6406_v52  ;;  %v3783_v46 = vcombine.low %v2243_v44, %v2257_v45  ;;  %v5333_v26 = vcombine.high %v2243_v44, %v2257_v45  ;;  %v3053_v47 = vrot.slane %v1638_v40, %v6406_v52 }
 0x302   : > { %v3791_v48 = vrot.slane %v3781_v42, %v6406_v52  ;;  %v3798_v16 = vrot.slane %v5332_v43, %v6406_v52  ;;  %v3060_v55 = vrot.slane %v3046_v15, %v6406_v52  ;;  %v1622_v49 = vsub.f32 %v1526_v41, %v1590_v37 }
 0x303   : > { %v4613_v19 = vcombine.low %v4605_v39, %v4612_v18  ;;  %v3805_v50 = vrot.slane %v3783_v46, %v6406_v52  ;;  %v3812_v51 = vrot.slane %v5333_v26, %v6406_v52  ;;  %v3061_v53 = vcombine.high %v3053_v47, %v3053_v47  ;;  %v1576_v26 = vld [vmem:[#allocation3 + $0xf0] sm:$0xff] }
 0x304   : > { %v3813_v57 = vcombine.low %v3791_v48, %v3798_v16  ;;  %v3062_v58 = vcombine.high %v3060_v55, %v3060_v55  ;;  %v3069_v59 = vrot.slane %v3053_v47, %v6406_v52  ;;  %v3076_v60 = vrot.slane %v3060_v55, %v6406_v52 }
 0x305   : > { %4892 = vperm.xlu1 %5593, %v4613_v19   ;;  %v3814_v23 = vcombine.low %v3805_v50, %v3812_v51  ;;  %v3083_v61 = vrot.slane %v3061_v53, %v6406_v52  ;;  %v2262_v27 = vcombine.high %v1622_v49, %v1622_v49  ;;  %v2269_v62 = vrot.slane %v1622_v49, %v6406_v52 }
 0x306   : > { %v3821_v1 = vrot.slane %v3813_v57, %v6406_v52  ;;  %v3090_v2 = vrot.slane %v3062_v58, %v6406_v52  ;;  %v1639_v3 = vsub.f32 %v1543_v54, %v1607_v38  ;;  %v1623_v32 = vsub.f32 %v1527_v17, %v1591_v0  ;;  %v1577_v0 = vld [vmem:[#allocation3 + $0xf8] sm:$0xff] }
 0x307   : > { %v3828_v5 = vrot.slane %v3814_v23, %v6406_v52  ;;  %v4614_v4 = vcombine.low %v3069_v59, %v3083_v61  ;;  %v5366_v30 = vcombine.high %v3069_v59, %v3083_v61  ;;  %v2276_v63 = vrot.slane %v2262_v27, %v6406_v52  ;;  %v1544_v61 = vld [vmem:[#allocation2 + $0xf0] sm:$0xff] }
 0x308   : > { %v4616_v34 = vcombine.low %v3076_v60, %v3090_v2  ;;  %v5367_v6 = vcombine.high %v3076_v60, %v3090_v2  ;;  %v2277_v7 = vcombine.high %v2269_v62, %v2269_v62  ;;  %v2285_v10 = vrot.slane %v2269_v62, %v6406_v52 }
 0x309   : > { %v3829_v13 = vcombine.low %v3821_v1, %v3828_v5  ;;  %v4624_v14 = vrot.slane %v4614_v4, %v6406_v52  ;;  %v4631_v31 = vrot.slane %v5366_v30, %v6406_v52  ;;  %v2278_v35 = vcombine.high %v2276_v63, %v2276_v63 }
 0x30a   : > { %v4638_v22 = vrot.slane %v4616_v34, %v6406_v52  ;;  %v4645_v20 = vrot.slane %v5367_v6, %v6406_v52  ;;  %v2292_v21 = vrot.slane %v2276_v63, %v6406_v52  ;;  %v2299_v8 = vrot.slane %v2277_v7, %v6406_v52 }
 0x30b   : > { %4844 = vperm.xlu0 %5592, %v3829_v13   ;;  %v4646_v11 = vcombine.low %v4624_v14, %v4631_v31  ;;  %v2306_v24 = vrot.slane %v2278_v35, %v6406_v52  ;;  %v3095_v25 = vcombine.high %v1639_v3, %v1639_v3  ;;  %v3102_v9 = vrot.slane %v1639_v3, %v6406_v52  ;;  %v1560_v3 = vld [vmem:[#allocation3 + $0x70] sm:$0xff] }
 0x30c   : > { %v4647_v29 = vcombine.low %v4638_v22, %v4645_v20  ;;  %v3830_v12 = vcombine.low %v2285_v10, %v2299_v8  ;;  %v5334_v44 = vcombine.high %v2285_v10, %v2299_v8  ;;  %v2311_v50 = vcombine.high %v1623_v32, %v1623_v32  ;;  %v1528_v31 = vld [vmem:[#allocation2 + $0x70] sm:$0xff] }
 0x30d   : > { %v4654_v40 = vrot.slane %v4646_v11, %v6406_v52  ;;  %v3832_v33 = vcombine.low %v2292_v21, %v2306_v24  ;;  %v5335_v45 = vcombine.high %v2292_v21, %v2306_v24  ;;  %v3109_v41 = vrot.slane %v3095_v25, %v6406_v52 }
 0x30e   : > { %v4661_v37 = vrot.slane %v4647_v29, %v6406_v52  ;;  %v3840_v38 = vrot.slane %v3830_v12, %v6406_v52  ;;  %v3847_v39 = vrot.slane %v5334_v44, %v6406_v52  ;;  %v3110_v42 = vcombine.high %v3102_v9, %v3102_v9 }
 0x30f   : > { %v3854_v43 = vrot.slane %v3832_v33, %v6406_v52  ;;  %v3861_v15 = vrot.slane %v5335_v45, %v6406_v52  ;;  %v3111_v18 = vcombine.high %v3109_v41, %v3109_v41  ;;  %v3118_v46 = vrot.slane %v3102_v9, %v6406_v52 }
 0x310   : > { %v4662_v47 = vcombine.low %v4654_v40, %v4661_v37  ;;  %v3862_v48 = vcombine.low %v3840_v38, %v3847_v39  ;;  %v3125_v16 = vrot.slane %v3109_v41, %v6406_v52  ;;  %v3132_v55 = vrot.slane %v3110_v42, %v6406_v52  ;;  %v1545_v37 = vld [vmem:[#allocation2 + $0xf8] sm:$0xff] }
 0x311   : > { %v3863_v49 = vcombine.low %v3854_v43, %v3861_v15  ;;  %v3139_v19 = vrot.slane %v3111_v18, %v6406_v52  ;;  %v2318_v51 = vrot.slane %v1623_v32, %v6406_v52  ;;  %v1608_v57 = vmul.f32 0.00390625, %v1576_v26  ;;  %v1561_v38 = vld [vmem:[#allocation3 + $0x78] sm:$0xff] }
 0x312   : > { %4895 = vperm.xlu1 %5593, %v4662_v47   ;;  %v3870_v53 = vrot.slane %v3862_v48, %v6406_v52  ;;  %v4663_v54 = vcombine.low %v3118_v46, %v3132_v55  ;;  %v5368_v56 = vcombine.high %v3118_v46, %v3132_v55  ;;  %v2325_v23 = vrot.slane %v2311_v50, %v6406_v52 }
 0x313   : > { %v3877_v58 = vrot.slane %v3863_v49, %v6406_v52  ;;  %v4665_v59 = vcombine.low %v3125_v16, %v3139_v19  ;;  %v5369_v60 = vcombine.high %v3125_v16, %v3139_v19  ;;  %v2326_v1 = vcombine.high %v2318_v51, %v2318_v51 }
 0x314   : > { %v4673_v27 = vrot.slane %v4663_v54, %v6406_v52  ;;  %v4680_v62 = vrot.slane %v5368_v56, %v6406_v52  ;;  %v2334_v2 = vrot.slane %v2318_v51, %v6406_v52  ;;  %v2327_v63 = vcombine.high %v2325_v23, %v2325_v23 }
 0x315   : > { %v3878_v5 = vcombine.low %v3870_v53, %v3877_v58  ;;  %v4687_v4 = vrot.slane %v4665_v59, %v6406_v52  ;;  %v4694_v30 = vrot.slane %v5369_v60, %v6406_v52  ;;  %v2341_v6 = vrot.slane %v2325_v23, %v6406_v52 }
 0x316   : > { %v4695_v34 = vcombine.low %v4673_v27, %v4680_v62  ;;  %v2348_v7 = vrot.slane %v2326_v1, %v6406_v52  ;;  %v1640_v10 = vsub.f32 %v1544_v61, %v1608_v57  ;;  %v2355_v14 = vrot.slane %v2327_v63, %v6406_v52  ;;  %v1529_v27 = vld [vmem:[#allocation2 + $0x78] sm:$0xff] }
 0x317   : > { %4847 = vperm.xlu0 %5592, %v3878_v5   ;;  %v4696_v13 = vcombine.low %v4687_v4, %v4694_v30  ;;  %v1592_v35 = vmul.f32 0.00390625, %v1560_v3  ;;  %v1609_v17 = vmul.f32 0.00390625, %v1577_v0  ;;  %v1593_v49 = vmul.f32 0.00390625, %v1561_v38 }
 0x318   : > { %v4703_v22 = vrot.slane %v4695_v34, %v6406_v52  ;;  %v3879_v20 = vcombine.low %v2334_v2, %v2348_v7  ;;  %v5336_v21 = vcombine.high %v2334_v2, %v2348_v7  ;;  %v3144_v8 = vcombine.high %v1640_v10, %v1640_v10 }
 0x319   : > { %v4710_v11 = vrot.slane %v4696_v13, %v6406_v52  ;;  %v3881_v24 = vcombine.low %v2341_v6, %v2355_v14  ;;  %v5337_v25 = vcombine.high %v2341_v6, %v2355_v14  ;;  %v3151_v9 = vrot.slane %v1640_v10, %v6406_v52 }
 0x31a   : > { %v3889_v29 = vrot.slane %v3879_v20, %v6406_v52  ;;  %v3896_v12 = vrot.slane %v5336_v21, %v6406_v52  ;;  %v3158_v44 = vrot.slane %v3144_v8, %v6406_v52  ;;  %v1624_v32 = vsub.f32 %v1528_v31, %v1592_v35 }
 0x31b   : > { %v4711_v40 = vcombine.low %v4703_v22, %v4710_v11  ;;  %v3903_v33 = vrot.slane %v3881_v24, %v6406_v52  ;;  %v3910_v45 = vrot.slane %v5337_v25, %v6406_v52  ;;  %v3159_v41 = vcombine.high %v3151_v9, %v3151_v9 }
 0x31c   : > { %v3911_v39 = vcombine.low %v3889_v29, %v3896_v12  ;;  %v3160_v42 = vcombine.high %v3158_v44, %v3158_v44  ;;  %v3167_v43 = vrot.slane %v3151_v9, %v6406_v52  ;;  %v3174_v15 = vrot.slane %v3158_v44, %v6406_v52 }
 0x31d   : > { %4898 = vperm.xlu1 %5593, %v4711_v40   ;;  %v3912_v18 = vcombine.low %v3903_v33, %v3910_v45  ;;  %v3181_v46 = vrot.slane %v3159_v41, %v6406_v52  ;;  %v2360_v26 = vcombine.high %v1624_v32, %v1624_v32  ;;  %v2367_v47 = vrot.slane %v1624_v32, %v6406_v52 }
 0x31e   : > { %v3919_v48 = vrot.slane %v3911_v39, %v6406_v52  ;;  %v3188_v16 = vrot.slane %v3160_v42, %v6406_v52  ;;  %v1641_v55 = vsub.f32 %v1545_v37, %v1609_v17  ;;  %v1625_v7 = vsub.f32 %v1529_v27, %v1593_v49 }
 0x31f   : > { %v3926_v19 = vrot.slane %v3912_v18, %v6406_v52  ;;  %v4712_v50 = vcombine.low %v3167_v43, %v3181_v46  ;;  %v5370_v51 = vcombine.high %v3167_v43, %v3181_v46  ;;  %v2374_v53 = vrot.slane %v2360_v26, %v6406_v52 }
 0x320   : > { %v4714_v54 = vcombine.low %v3174_v15, %v3188_v16  ;;  %v5371_v56 = vcombine.high %v3174_v15, %v3188_v16  ;;  %v2375_v57 = vcombine.high %v2367_v47, %v2367_v47  ;;  %v2383_v58 = vrot.slane %v2367_v47, %v6406_v52 }
 0x321   : > { %v3927_v59 = vcombine.low %v3919_v48, %v3926_v19  ;;  %v4722_v60 = vrot.slane %v4712_v50, %v6406_v52  ;;  %v4729_v23 = vrot.slane %v5370_v51, %v6406_v52  ;;  %v2376_v61 = vcombine.high %v2374_v53, %v2374_v53 }
 0x322   : > { %v4736_v62 = vrot.slane %v4714_v54, %v6406_v52  ;;  %v4743_v1 = vrot.slane %v5371_v56, %v6406_v52  ;;  %v2390_v2 = vrot.slane %v2374_v53, %v6406_v52  ;;  %v2397_v3 = vrot.slane %v2375_v57, %v6406_v52 }
 0x323   : > { %4850 = vperm.xlu0 %5592, %v3927_v59   ;;  %v4744_v0 = vcombine.low %v4722_v60, %v4729_v23  ;;  %v2404_v5 = vrot.slane %v2376_v61, %v6406_v52  ;;  %v3193_v4 = vcombine.high %v1641_v55, %v1641_v55  ;;  %v3200_v30 = vrot.slane %v1641_v55, %v6406_v52 }
 0x324   : > { %v4745_v63 = vcombine.low %v4736_v62, %v4743_v1  ;;  %v3928_v34 = vcombine.low %v2383_v58, %v2397_v3  ;;  %v5338_v6 = vcombine.high %v2383_v58, %v2397_v3  ;;  %v2409_v40 = vcombine.high %v1625_v7, %v1625_v7 }
 0x325   : > { %v4752_v10 = vrot.slane %v4744_v0, %v6406_v52  ;;  %v3930_v13 = vcombine.low %v2390_v2, %v2404_v5  ;;  %v5339_v14 = vcombine.high %v2390_v2, %v2404_v5  ;;  %v3207_v31 = vrot.slane %v3193_v4, %v6406_v52 }
 0x326   : > { %v4759_v35 = vrot.slane %v4745_v63, %v6406_v52  ;;  %v3938_v17 = vrot.slane %v3928_v34, %v6406_v52  ;;  %v3945_v22 = vrot.slane %v5338_v6, %v6406_v52  ;;  %v3208_v20 = vcombine.high %v3200_v30, %v3200_v30  ;;  %v4812_v63 = vpop.permute.xlu0 %4811 }
 0x327   : > { %v3952_v21 = vrot.slane %v3930_v13, %v6406_v52  ;;  %v3959_v8 = vrot.slane %v5339_v14, %v6406_v52  ;;  %v3209_v11 = vcombine.high %v3207_v31, %v3207_v31  ;;  %v3216_v24 = vrot.slane %v3200_v30, %v6406_v52  ;;  %v4818_v30 = vpop.permute.xlu1 %4817 }
 0x328   : > { %v4760_v25 = vcombine.low %v4752_v10, %v4759_v35  ;;  %v3960_v9 = vcombine.low %v3938_v17, %v3945_v22  ;;  %v3223_v29 = vrot.slane %v3207_v31, %v6406_v52  ;;  %v3230_v12 = vrot.slane %v3208_v20, %v6406_v52 }
 0x329   : > { %v3961_v44 = vcombine.low %v3952_v21, %v3959_v8  ;;  %v3237_v32 = vrot.slane %v3209_v11, %v6406_v52  ;;  %v2416_v33 = vrot.slane %v1625_v7, %v6406_v52  ;;  %v2423_v43 = vrot.slane %v2409_v40, %v6406_v52 }
 0x32a   : > { %4901 = vperm.xlu1 %5593, %v4760_v25   ;;  %v3968_v45 = vrot.slane %v3960_v9, %v6406_v52  ;;  %v4761_v41 = vcombine.low %v3216_v24, %v3230_v12  ;;  %v5372_v37 = vcombine.high %v3216_v24, %v3230_v12  ;;  %v4815_v6 = vpop.permute.xlu0 %4814  ;;  %vm5114_vm2 = vcmp.lt.s32.totalorder %v1678_v28, 256 }
 0x32b   : > { %v3975_v38 = vrot.slane %v3961_v44, %v6406_v52  ;;  %v4763_v39 = vcombine.low %v3223_v29, %v3237_v32  ;;  %v5373_v42 = vcombine.high %v3223_v29, %v3237_v32  ;;  %v2424_v46 = vcombine.high %v2416_v33, %v2416_v33  ;;  %v4821_v34 = vpop.permute.xlu1 %4820 }
 0x32c   : > { %v4771_v15 = vrot.slane %v4761_v41, %v6406_v52  ;;  %v4778_v18 = vrot.slane %v5372_v37, %v6406_v52  ;;  %v2432_v26 = vrot.slane %v2416_v33, %v6406_v52  ;;  %v2425_v55 = vcombine.high %v2423_v43, %v2423_v43 }
 0x32d   : > { %v3976_v47 = vcombine.low %v3968_v45, %v3975_v38  ;;  %v4785_v48 = vrot.slane %v4763_v39, %v6406_v52  ;;  %v4792_v16 = vrot.slane %v5373_v42, %v6406_v52  ;;  %v2439_v19 = vrot.slane %v2423_v43, %v6406_v52 }
 0x32e   : > { %v4793_v49 = vcombine.low %v4771_v15, %v4778_v18  ;;  %v2446_v50 = vrot.slane %v2424_v46, %v6406_v52  ;;  %v2453_v53 = vrot.slane %v2425_v55, %v6406_v52  ;;  %v6807_v10 = vpop.permute.xlu0 %4823  ;;  %v6826_v29 = vand.u32 127, %v1678_v28 }
 0x32f   : > { %4853 = vperm.xlu0 %5592, %v3976_v47   ;;  %v4794_v51 = vcombine.low %v4785_v48, %v4792_v16  ;;  %v6805_v7 = vpop.permute.xlu1 %4826 }
 0x330   : > { %v4801_v54 = vrot.slane %v4793_v49, %v6406_v52  ;;  %v3977_v56 = vcombine.low %v2432_v26, %v2446_v50  ;;  %v5340_v57 = vcombine.high %v2432_v26, %v2446_v50  ;;  %v3979_v59 = vcombine.low %v2439_v19, %v2453_v53 }
 0x331   : > { %v4808_v58 = vrot.slane %v4794_v51, %v6406_v52  ;;  %v5341_v60 = vcombine.high %v2439_v19, %v2453_v53  ;;  %v4912_v12 = vadd.s32 4294967288, %v6826_v29  ;;  %v4919_v33 = vadd.s32 4294967280, %v6826_v29 }
 0x332   : > { %v3987_v23 = vrot.slane %v3977_v56, %v6406_v52  ;;  %v3994_v61 = vrot.slane %v5340_v57, %v6406_v52  ;;  %v4001_v62 = vrot.slane %v3979_v59, %v6406_v52  ;;  %v6811_v14 = vpop.permute.xlu0 %4829  ;;  %v4910_v45 = vsub.s32 %v6826_v29, %v6403_v36 }
 0x333   : > { %v4809_v27 = vcombine.low %v4801_v54, %v4808_v58  ;;  %v4008_v1 = vrot.slane %v5341_v60, %v6406_v52  ;;  %v6809_v13 = vpop.permute.xlu1 %4832  ;;  %v4915_v40 = vsub.s32 %v4912_v12, %v6403_v36  ;;  %v4926_v41 = vadd.s32 4294967272, %v6826_v29 }
 0x334   : > { %v4009_v2 = vcombine.low %v3987_v23, %v3994_v61  ;;  %v4922_v42 = vsub.s32 %v4919_v33, %v6403_v36  ;;  %v4933_v43 = vadd.s32 4294967264, %v6826_v29  ;;  %v4911_v15 = vrot.slane %v4812_v63, %v4910_v45 }
 0x335   : > { %4904 = vperm.xlu1 %5593, %v4809_v27   ;;  %v4010_v3 = vcombine.low %v4001_v62, %v4008_v1  ;;  %v4916_v39 = vrot.slane %v4815_v6, %v4915_v40  ;;  %v4929_v18 = vsub.s32 %v4926_v41, %v6403_v36  ;;  %v4940_v26 = vadd.s32 4294967256, %v6826_v29 }
 0x336   : > { %v4017_v0 = vrot.slane %v4009_v2, %v6406_v52  ;;  %v6815_v35 = vpop.permute.xlu0 %4835  ;;  %v4923_v16 = vrot.slane %v4818_v30, %v4922_v42  ;;  %v4936_v55 = vsub.s32 %v4933_v43, %v6403_v36  ;;  %v4947_v51 = vadd.s32 4294967248, %v6826_v29 }
 0x337   : > { %v4024_v5 = vrot.slane %v4010_v3, %v6406_v52  ;;  %v6813_v31 = vpop.permute.xlu1 %4838  ;;  %v4918_v46 = vsel %vm4917_vm3, %v4916_v39, %v4911_v15  ;;  %v4954_v54 = vadd.s32 4294967240, %v6826_v29  ;;  %v4930_v56 = vrot.slane %v4821_v34, %v4929_v18 }
 0x338   : > { %v4925_v53 = vsel %vm4924_vm4, %v4923_v16, %v4918_v46  ;;  %v4943_v57 = vsub.s32 %v4940_v26, %v6403_v36  ;;  %v4937_v60 = vrot.slane %v6807_v10, %v4936_v55  ;;  %v4950_v62 = vsub.s32 %v4947_v51, %v6403_v36 }
 0x339   : > { %v4025_v4 = vcombine.low %v4017_v0, %v4024_v5  ;;  %v4932_v27 = vsel %vm4931_vm5, %v4930_v56, %v4925_v53  ;;  %v4961_v1 = vadd.s32 4294967232, %v6826_v29  ;;  %v4957_v2 = vsub.s32 %v4954_v54, %v6403_v36 }
 0x33a   : > { %v4968_v3 = vadd.s32 4294967224, %v6826_v29  ;;  %v4939_v34 = vsel %vm4938_vm6, %v4937_v60, %v4932_v27  ;;  %v4996_v33 = vadd.s32 4294967192, %v6826_v29  ;;  %v5003_v39 = vadd.s32 4294967184, %v6826_v29 }
 0x33b   : > { %4856 = vperm.xlu0 %5592, %v4025_v4   ;;  %v4944_v4 = vrot.slane %v6805_v7, %v4943_v57  ;;  %v4958_v7 = vrot.slane %v6809_v13, %v4957_v2 }
 0x33c   : > { %v4863_v17 = vpop.permute.xlu1 %4862 }
 0x33d   : > { %v5024_v47 = vrot.slane %v4863_v17, %v4915_v40  ;;  %v4975_v17 = vadd.s32 4294967216, %v6826_v29  ;;  %v4946_v12 = vsel %vm4945_vm7, %v4944_v4, %v4939_v34 }
 0x33f   : > { %v4978_v41 = vsub.s32 %v4975_v17, %v6403_v36 }
 0x342   : > { %v4860_v22 = vpop.permute.xlu0 %4859 }
 0x343   : > { %v5020_v48 = vrot.slane %v4860_v22, %v4910_v45  ;;  %v4951_v22 = vrot.slane %v6811_v14, %v4950_v62 }
 0x345   : > { %v5025_v58 = vsel %vm4917_vm3, %v5024_v47, %v5020_v48  ;;  %v4953_v43 = vsel %vm4952_vm8, %v4951_v22, %v4946_v12  ;;  %v4999_v48 = vsub.s32 %v4996_v33, %v6403_v36 }
 0x346   : > { %v4960_v16 = vsel %vm4959_vm9, %v4958_v7, %v4953_v43 }
 0x349   : > { %v4869_v20 = vpop.permute.xlu1 %4868 }
 0x34a   : > { %v5034_v59 = vrot.slane %v4869_v20, %v4929_v18  ;;  %v4964_v20 = vsub.s32 %v4961_v1, %v6403_v36  ;;  %v5010_v18 = vadd.s32 4294967176, %v6826_v29 }
 0x34c   : > { %v4965_v15 = vrot.slane %v6815_v35, %v4964_v20  ;;  %v5013_v53 = vsub.s32 %v5010_v18, %v6403_v36 }
 0x34e   : > { %v4866_v21 = vpop.permute.xlu0 %4865 }
 0x34f   : > { %v5029_v49 = vrot.slane %v4866_v21, %v4922_v42  ;;  %v4982_v21 = vadd.s32 4294967208, %v6826_v29 }
 0x351   : > { %v5030_v23 = vsel %vm4924_vm4, %v5029_v49, %v5025_v58  ;;  %v5006_v49 = vsub.s32 %v5003_v39, %v6403_v36 }
 0x352   : > { %v5035_v63 = vsel %vm4931_vm5, %v5034_v59, %v5030_v23 }
 0x354   : > { %v6817_v8 = vpop.permute.xlu1 %4874 }
 0x355   : > { %v5044_v30 = vrot.slane %v6817_v8, %v4943_v57  ;;  %v4989_v8 = vadd.s32 4294967200, %v6826_v29  ;;  %v4967_v29 = vsel %vm4966_vm10, %v4965_v15, %v4960_v16 }
 0x357   : > { %v4992_v46 = vsub.s32 %v4989_v8, %v6403_v36 }
 0x35a   : > { %v4872_v11 = vpop.permute.xlu0 %4871 }
 0x35b   : > { %v5039_v61 = vrot.slane %v4872_v11, %v4936_v55  ;;  %v4971_v11 = vsub.s32 %v4968_v3, %v6403_v36 }
 0x35d   : > { %v5040_v6 = vsel %vm4938_vm6, %v5039_v61, %v5035_v63 }
 0x35e   : > { %v5045_v40 = vsel %vm4945_vm7, %v5044_v30, %v5040_v6 }
 0x361   : > { %v6819_v24 = vpop.permute.xlu1 %4880 }
 0x366   : > { %v6821_v25 = vpop.permute.xlu0 %4877 }
 0x367   : > { %v5049_v10 = vrot.slane %v6821_v25, %v4950_v62  ;;  %v5054_v25 = vrot.slane %v6819_v24, %v4957_v2  ;;  %v4985_v24 = vsub.s32 %v4982_v21, %v6403_v36 }
 0x369   : > { %v5050_v14 = vsel %vm4952_vm8, %v5049_v10, %v5045_v40 }
 0x36a   : > { %v5055_v47 = vsel %vm4959_vm9, %v5054_v25, %v5050_v14 }
 0x36c   : > { %v6823_v9 = vpop.permute.xlu1 %4886 }
 0x36d   : > { %v5064_v26 = vrot.slane %v6823_v9, %v4971_v11 }
 0x372   : > { %v6829_v44 = vpop.permute.xlu0 %4883 }
 0x373   : > { %v5059_v45 = vrot.slane %v6829_v44, %v4964_v20  ;;  %v4972_v44 = vrot.slane %v6813_v31, %v4971_v11 }
 0x375   : > { %v5060_v55 = vsel %vm4966_vm10, %v5059_v45, %v5055_v47 }
 0x376   : > { %v5065_v57 = vsel %vm4973_vm11, %v5064_v26, %v5060_v55 }
 0x379   : > { %v6831_v32 = vpop.permute.xlu1 %4889 }
 0x37a   : > { %v5069_v35 = vrot.slane %v6831_v32, %v4978_v41 }
 0x37c   : > { %v5070_v59 = vsel %vm4980_vm12, %v5069_v35, %v5065_v57 }
 0x37e   : > { %v6838_v37 = vpop.permute.xlu0 %4841 }
 0x37f   : > { %v4979_v31 = vrot.slane %v6838_v37, %v4978_v41 }
 0x384   : > { %v6840_v38 = vpop.permute.xlu1 %4892 }
 0x385   : > { %v5074_v51 = vrot.slane %v6840_v38, %v4985_v24  ;;  %v4974_v38 = vsel %vm4973_vm11, %v4972_v44, %v4967_v29 }
 0x386   : > { %v4981_v61 = vsel %vm4980_vm12, %v4979_v31, %v4974_v38 }
 0x387   : > { %v5075_v60 = vsel %vm4987_vm13, %v5074_v51, %v5070_v59 }
 0x38a   : > { %v6848_v19 = vpop.permute.xlu0 %4844 }
 0x38b   : > { %v4986_v32 = vrot.slane %v6848_v19, %v4985_v24 }
 0x38d   : > { %v4988_v62 = vsel %vm4987_vm13, %v4986_v32, %v4981_v61 }
 0x391   : > { %v6850_v50 = vpop.permute.xlu1 %4895 }
 0x392   : > { %v5079_v9 = vrot.slane %v6850_v50, %v4992_v46 }
 0x394   : > { %v5080_v27 = vsel %vm4994_vm14, %v5079_v9, %v5075_v60 }
 0x396   : > { %v6864_v0 = vpop.permute.xlu0 %4847 }
 0x397   : > { %v4993_v36 = vrot.slane %v6864_v0, %v4992_v46 }
 0x399   : > { %v4995_v2 = vsel %vm4994_vm14, %v4993_v36, %v4988_v62 }
 0x39c   : > { %v6866_v5 = vpop.permute.xlu1 %4898 }
 0x39d   : > { %v5084_v58 = vrot.slane %v6866_v5, %v4999_v48 }
 0x39f   : > { %v5085_v1 = vsel %vm5001_vm15, %v5084_v58, %v5080_v27 }
 0x3a2   : > { %v4851_v13 = vpop.permute.xlu0 %4850 }
 0x3a3   : > { %v5000_v23 = vrot.slane %v4851_v13, %v4999_v48 }
 0x3a5   : > { %v5002_v5 = vsel %vm5001_vm15, %v5000_v23, %v4995_v2 }
 0x3a9   : > { %v4902_v42 = vpop.permute.xlu1 %4901 }
 0x3aa   : > { %v5089_v37 = vrot.slane %v4902_v42, %v5006_v49 }
 0x3ac   : > { %v5090_v3 = vsel %vm5008_vm0, %v5089_v37, %v5085_v1 }
 0x3ae   : > { %v4854_v54 = vpop.permute.xlu0 %4853 }
 0x3af   : > { %v5007_v19 = vrot.slane %v4854_v54, %v5006_v49 }
 0x3b1   : > { %v5009_v63 = vsel %vm5008_vm0, %v5007_v19, %v5002_v5 }
 0x3b4   : > { %v4905_v56 = vpop.permute.xlu1 %4904 }
 0x3b5   : > { %v5094_v50 = vrot.slane %v4905_v56, %v5013_v53 }
 0x3b7   : > { %v5095_v4 = vsel %vm5015_vm1, %v5094_v50, %v5090_v3 }
 0x3ba   : > { %v4857_v0 = vpop.permute.xlu0 %4856 }
 0x3bb   : > { %v5014_v30 = vrot.slane %v4857_v0, %v5013_v53 }
 0x3bd   : > { %v5016_v34 = vsel %vm5015_vm1, %v5014_v30, %v5009_v63 }
 0x3be   : > { %v5096_v6 = vcombine.low %v5016_v34, %v5095_v4 }
 0x3c0   : > { %v5103_v10 = vrot.slane %v5096_v6, %v6406_v52 }
 0x3c2   : > { %v5110_v17 = vrot.slane %v5103_v10, %v6406_v52 }
 0x3c4   : > { %5116 = vst.msk [vmem:[%s628_s20] sm:$0x3] %vm5114_vm2, %v5110_v17 }
 0x3c5 PF: > { %s5380_s3 = sshll.u32 %s5708_s23, 5  ;;  %s5132_s7 = sshll.u32 %s628_s20, 4  ;;  %s5133_s7 = int_to_ptr.vmem [resolvable:$true] %s5132_s7 }
 0x3c6   : > { %s6925_s11 = scalar_lea.hbm %s6992_s4, %s5380_s3  ;;  %s5118_s12 = scalar_lea.sflag [#allocation8], %s626_s1 }
 0x3c7   : > { %s5594_s13 = scalar_lea.vmem %s5133_s7, 32  ;;  %s5726_s27 = smov [#allocation7]  }
 0x3c8   : > { %p5595_p9 = scmp.ne.s32.totalorder %s5133_s7, %s5594_s13  ;;  %s5598_s8 = sshll.u32 %s5726_s27, 4  ;;  %s5599_s8 = int_to_ptr.vmem [resolvable:$false] %s5598_s8 }
 0x3c9   : > { %s5600_s28 = scalar_lea.vmem %s5599_s8, 64  ;;  %p5601_p12 = scmp.lt.s32.totalorder %s5133_s7, %s5599_s8 }
 0x3ca   : > { %p5596_p10 = pnand %p5595_p9, %p5854_p0  ;;  %p5602_p13 = scmp.lt.s32.totalorder %s5600_s28, %s5594_s13 }
 0x3cc   : > { %p5597_p11 = pneg %p5596_p10  ;;  %p5603_p2 = por %p5602_p13, %p5601_p12 }
 0x3ce   : > { %p5604_p3 = pnand %p5603_p2, %p5597_p11 }
 0x3d0   : > { %5607 = shalt.err (!%p5604_p3)
}
 0x3d1   : > { %s5608_s23 = scalar_lea.hbm %s6925_s11, 32  ;;  %s5612_s10 = scalar_lea.hbm %s6992_s4, 256 }
 0x3d2   : > { %p5609_p4 = scmp.ne.s32.totalorder %s6925_s11, %s5608_s23  ;;  %p5613_p7 = scmp.lt.u32.totalorder %s6925_s11, %s6992_s4 }
 0x3d3   : > { %p5614_p8 = scmp.lt.u32.totalorder %s5612_s10, %s5608_s23  ;;  %p5616_p10 = scmp.lt.u32.totalorder %s5608_s23, %s6925_s11 }
 0x3d4   : > { %p5610_p5 = pnand %p5609_p4, %p5854_p0 }
 0x3d5   : > { %p5615_p9 = por %p5614_p8, %p5613_p7 }
 0x3d6   : > { %p5611_p6 = pneg %p5610_p5 }
 0x3d7   : > { %p5617_p11 = por %p5616_p10, %p5615_p9 }
 0x3d9   : > { %p5618_p12 = pnand %p5617_p11, %p5611_p6 }
 0x3db   : > { %5621 = shalt.err (!%p5618_p12)
}
 0x3dc   : > { %5485 = dma.vmem_to_hbm [thread:$0]  (%p5854_p0), %s5133_s7, 32, %s6925_s11, %s5118_s12  }
 0x3dd PF: > { %p5491_p13 = scmp.ge.s32.totalorder %s5720_s26, 2  ;;  %s5144_s20 = sand.u32 1, %s5676_s15  }
 0x3de   : > { %s5145_s3 = scalar_lea.sflag [#allocation8], %s5144_s20 }
 0x3df   : > { %p5488_p2 = pnand %p5491_p13, %p5858_p1 }
 0x3e1   : > { %5671 = dma.done.wait (!%p5488_p2), %s5145_s3, 32  }
 0x3e2   : > { %5673 = vsyncadd (!%p5488_p2), %s5145_s3, 4294967264  ;;  %s17_s26 = sadd.s32 1, %s5720_s26   ;;  %s7009_s23 = sld [smem:[#allocation10_spill]] }
 0x3e3   : > { %p14_p3 = scmp.ge.s32.totalorder %s17_s26, 18   ;;  %s7010_s5 = sld [smem:[#allocation11_spill]] }
 0x3e4   : > { %s7011_s25 = sld [smem:[#allocation12_spill]]  ;;  %s7012_s15 = smov %s5680_s16 }
 0x3e5   : > { %s7013_s16 = smov %s5684_s17  ;;  %s7014_s17 = smov %s5845_s14 }
 0x3e6   : > { %s7015_s18 = smov %s5692_s19  ;;  %s7016_s19 = smov %s5848_s29 }
 0x3e7   : > { %s7017_s20 = smov %s5700_s21  ;;  %s7018_s21 = smov %s5835_s9 }
 0x3e8   : > { %s7019_s22 = smov %s5712_s24  ;;  %16 = sbr.rel (!%p14_p3) target bundleno = 11 (0xb), region = 217 }
 0x3e9   : > { %s7020_s24 = smov %s7010_s5 }
 0x3ef   :  { %5150 = vsyncpa [#allocation8], 1 }
 0x3f0   :  { %5152 = vsyncpa [#allocation8 + $0x1], 1 }

</bundles_post_ra>
